<compile_context>
chip_gen: v5e
topology: v5e:2x2
jax: 0.10.0
libtpu: 0.0.40
codegen_flags: <defaults>
</compile_context>

<pallas_src>
import numpy as np
import jax
import jax.numpy as jnp
from jax.experimental import pallas as pl
from jax.experimental.pallas import tpu as pltpu

K = 4        # kernel size of every layer
STRIDE = 2   # stride of every layer
PAD = 1      # padding of every layer

_LAYER_DEFS = (
    ("conv", 3, 12), ("conv", 12, 24), ("conv", 24, 48),        # encoder
    ("convT", 48, 24), ("convT", 24, 12), ("convT", 12, 3),     # decoder
)
_ACTS = ("relu", "relu", "relu", "relu", "relu", "tanh")
# Encoder: row count shrinks -> select rows first.  Decoder: row count grows ->
# project lanes first, interleave/select rows last.  (Pure flop-ordering choice.)
_SELECT_FIRST = (True, True, True, False, False, False)


# ------------------------------ Pallas kernel ------------------------------ #
def _fused_autoencoder_kernel(*refs):
    """refs = (x, s1, m1, b1, ..., s6, m6, b6, out).

    x   : (N*H0, W0*C0)   input slab, rows=(n, h), lanes=(w, c)
    s_l : (4, R_out, R_in)          0/1 row-selection matrices (one per kernel row)
    m_l : (4, Win*Cin, Wout*Cout)   banded per-kernel-row weight matrices
    b_l : (1, Wout*Cout)            bias tiled per output column
    out : (N*H0, W0*C0)   reconstructed slab
    """
    x_ref, o_ref = refs[0], refs[-1]
    layer_refs = refs[1:-1]

    a = x_ref[...]
    for l in range(6):
        s_ref = layer_refs[3 * l]
        m_ref = layer_refs[3 * l + 1]
        b_ref = layer_refs[3 * l + 2]
        acc = jnp.zeros((s_ref.shape[1], m_ref.shape[2]), jnp.float32)
        for t in range(4):                        # 4 kernel rows, fully unrolled
            if _SELECT_FIRST[l]:
                rows = jnp.dot(s_ref[t], a, preferred_element_type=jnp.float32)
                acc = acc + jnp.dot(rows, m_ref[t],
                                    preferred_element_type=jnp.float32)
            else:
                proj = jnp.dot(a, m_ref[t], preferred_element_type=jnp.float32)
                acc = acc + jnp.dot(s_ref[t], proj,
                                    preferred_element_type=jnp.float32)
        acc = acc + b_ref[...]
        a = jnp.maximum(acc, 0.0) if _ACTS[l] == "relu" else jnp.tanh(acc)
    o_ref[...] = a


# --------------------------------- wrapper --------------------------------- #
def conv_autoencoder_forward(x_nchw, packed_params):
    n, c, h, w = x_nchw.shape
    # NCHW -> (rows=(n,h), lanes=(w,c)) slab; done exactly once on a 24 KB array.
    x_slab = jnp.transpose(x_nchw, (0, 2, 3, 1)).reshape(n * h, w * c)
    out_slab = pl.pallas_call(
        _fused_autoencoder_kernel,
        out_shape=jax.ShapeDtypeStruct((n * h, w * c), jnp.float32),
        compiler_params=pltpu.CompilerParams(
            vmem_limit_bytes=32 * 1024 * 1024),
    )(x_slab, *packed_params)
    return jnp.transpose(out_slab.reshape(n, h, w, c), (0, 3, 1, 2))


# -------------------------- one-time weight packing ------------------------- #
def pack_params(params, *, batch, height, width):
    """Host-side repack of PyTorch-layout weights into per-kernel-row matrices.

    For every layer produces:
      S (4, batch*H_out, batch*H_in) : 0/1 row selection.  Conv: picks input row
          2*oh + kh - 1 (zero-pad rows dropped).  ConvT: picks row
          (oh + 1 - kh)/2 when it exists (sub-pixel interleave + padding).
      M (4, W_in*C_in, W_out*C_out)  : banded weight matrix of kernel row kh,
          acting on an unpadded (w, c)-packed row vector.
      b (1, W_out*C_out)             : bias tiled per output column.
    """
    packed = []
    h, w = height, width
    eye_n = np.eye(batch, dtype=np.float32)
    for idx, (kind, cin, cout) in enumerate(_LAYER_DEFS):
        wgt = np.asarray(params[idx][0], np.float32)
        bias = np.asarray(params[idx][1], np.float32)
        if kind == "conv":
            h_out, w_out = h // 2, w // 2
        else:
            h_out, w_out = h * 2, w * 2

        s_one = np.zeros((4, h_out, h), np.float32)
        m = np.zeros((4, w * cin, w_out * cout), np.float32)
        for kh in range(4):
            for oh in range(h_out):
                if kind == "conv":
                    r = 2 * oh + kh - 1
                else:
                    num = oh + 1 - kh
                    r = num // 2 if num % 2 == 0 else -1
                if 0 <= r < h:
                    s_one[kh, oh, r] = 1.0
            for ow in range(w_out):
                for kw in range(4):
                    if kind == "conv":
                        wi = 2 * ow + kw - 1
                        blk = wgt[:, :, kh, kw].T          # (cin, cout)
                    else:
                        num = ow + 1 - kw
                        wi = num // 2 if num % 2 == 0 else -1
                        blk = wgt[:, :, kh, kw]            # (cin, cout)
                    if 0 <= wi < w:
                        m[kh, wi * cin:(wi + 1) * cin,
                          ow * cout:(ow + 1) * cout] = blk

        s = np.stack([np.kron(eye_n, s_one[kh]) for kh in range(4)])
        b_row = np.tile(bias, w_out).reshape(1, w_out * cout)
        packed += [jnp.asarray(s), jnp.asarray(m), jnp.asarray(b_row)]
        h, w = h_out, w_out
    return packed


# --------------------------- deterministic parameters ----------------------- #
def init_params(key):
    def uconv(k, oc, ic):         # Conv2d: weight (OC, IC, K, K)
        kw_, kb = jax.random.split(k)
        bound = 1.0 / jnp.sqrt(ic * K * K)
        w = jax.random.uniform(kw_, (oc, ic, K, K), jnp.float32, -bound, bound)
        b = jax.random.uniform(kb, (oc,), jnp.float32, -bound, bound)
        return w, b

    def uconvT(k, ic, oc):        # ConvTranspose2d: weight (IC, OC, K, K)
        kw_, kb = jax.random.split(k)
        bound = 1.0 / jnp.sqrt(oc * K * K)
        w = jax.random.uniform(kw_, (ic, oc, K, K), jnp.float32, -bound, bound)
        b = jax.random.uniform(kb, (oc,), jnp.float32, -bound, bound)
        return w, b

    ks = jax.random.split(key, 6)
    return [
        uconv(ks[0], 12, 3), uconv(ks[1], 24, 12), uconv(ks[2], 48, 24),
        uconvT(ks[3], 48, 24), uconvT(ks[4], 24, 12), uconvT(ks[5], 12, 3),
    ]


# ----------------------------- pure-JAX reference --------------------------- #
def _ref_forward(x, params):
    def conv(x, w, b):
        y = jax.lax.conv_general_dilated(
            x, w, (STRIDE, STRIDE), ((PAD, PAD), (PAD, PAD)),
            dimension_numbers=("NCHW", "OIHW", "NCHW"))
        return y + b.reshape(1, -1, 1, 1)

    def convT(x, w, b):
        wc = jnp.transpose(w[:, :, ::-1, ::-1], (1, 0, 2, 3))
        p = K - 1 - PAD
        y = jax.lax.conv_general_dilated(
            x, wc, (1, 1), ((p, p), (p, p)), lhs_dilation=(STRIDE, STRIDE),
            dimension_numbers=("NCHW", "OIHW", "NCHW"))
        return y + b.reshape(1, -1, 1, 1)

    (w1, b1), (w2, b2), (w3, b3), (w4, b4), (w5, b5), (w6, b6) = params
    x = jax.nn.relu(conv(x, w1, b1))
    x = jax.nn.relu(conv(x, w2, b2))
    x = jax.nn.relu(conv(x, w3, b3))
    x = jax.nn.relu(convT(x, w4, b4))
    x = jax.nn.relu(convT(x, w5, b5))
    x = jnp.tanh(convT(x, w6, b6))
    return x


if __name__ == "__main__":
    key = jax.random.PRNGKey(0)
    kx, kp = jax.random.split(key)
    x = jax.random.uniform(kx, (2, 3, 32, 32), jnp.float32)   # NCHW like PyTorch
    params = init_params(kp)
    packed = pack_params(params, batch=2, height=32, width=32)  # one-time repack

    fwd = jax.jit(conv_autoencoder_forward)
    out = jax.block_until_ready(fwd(x, packed))
    assert out.shape == (2, 3, 32, 32), out.shape

    ref = jax.block_until_ready(jax.jit(_ref_forward)(x, params))
    max_err = float(jnp.max(jnp.abs(out - ref)))
    assert max_err < 1e-3, f"mismatch vs reference: {max_err}"

    print("KERNEL_OK")
</pallas_src>

<mosaic_0001>
module attributes {stable_mosaic.version = 11 : i64} {
  func.func @_fused_autoencoder_kernel(%arg0: memref<64x96xf32, #tpu.memory_space<vmem>>, %arg1: memref<4x32x64xf32, #tpu.memory_space<vmem>>, %arg2: memref<4x96x192xf32, #tpu.memory_space<vmem>>, %arg3: memref<1x192xf32, #tpu.memory_space<vmem>>, %arg4: memref<4x16x32xf32, #tpu.memory_space<vmem>>, %arg5: memref<4x192x192xf32, #tpu.memory_space<vmem>>, %arg6: memref<1x192xf32, #tpu.memory_space<vmem>>, %arg7: memref<4x8x16xf32, #tpu.memory_space<vmem>>, %arg8: memref<4x192x192xf32, #tpu.memory_space<vmem>>, %arg9: memref<1x192xf32, #tpu.memory_space<vmem>>, %arg10: memref<4x16x8xf32, #tpu.memory_space<vmem>>, %arg11: memref<4x192x192xf32, #tpu.memory_space<vmem>>, %arg12: memref<1x192xf32, #tpu.memory_space<vmem>>, %arg13: memref<4x32x16xf32, #tpu.memory_space<vmem>>, %arg14: memref<4x192x192xf32, #tpu.memory_space<vmem>>, %arg15: memref<1x192xf32, #tpu.memory_space<vmem>>, %arg16: memref<4x64x32xf32, #tpu.memory_space<vmem>>, %arg17: memref<4x192x96xf32, #tpu.memory_space<vmem>>, %arg18: memref<1x96xf32, #tpu.memory_space<vmem>>, %arg19: memref<64x96xf32, #tpu.memory_space<vmem>>) attributes {dimension_semantics = [], scalar_prefetch = 0 : i64, scratch_operands = 0 : i64, tpu.core_type = #tpu.core_type<tc>} {
    %c0 = arith.constant 0 : index
    %c0_0 = arith.constant 0 : index
    %0 = vector.load %arg0[%c0, %c0_0] : memref<64x96xf32, #tpu.memory_space<vmem>>, vector<64x96xf32>
    %cst = arith.constant 0.000000e+00 : f32
    %1 = vector.broadcast %cst : f32 to vector<32x192xf32>
    %c0_1 = arith.constant 0 : index
    %c0_2 = arith.constant 0 : index
    %c0_3 = arith.constant 0 : index
    %2 = vector.load %arg1[%c0_1, %c0_2, %c0_3] : memref<4x32x64xf32, #tpu.memory_space<vmem>>, vector<1x32x64xf32>
    %3 = vector.shape_cast %2 : vector<1x32x64xf32> to vector<32x64xf32>
    %cst_4 = arith.constant dense<0.000000e+00> : vector<32x96xf32>
    %4 = tpu.matmul %3, %0, %cst_4 {dimension_numbers = #tpu.dot_dimension_numbers<[1], [0], [0], [1], [0, 0, 1, 1], [], []>} : vector<32x64xf32>, vector<64x96xf32>, vector<32x96xf32> -> vector<32x96xf32>
    %c0_5 = arith.constant 0 : index
    %c0_6 = arith.constant 0 : index
    %c0_7 = arith.constant 0 : index
    %5 = vector.load %arg2[%c0_5, %c0_6, %c0_7] : memref<4x96x192xf32, #tpu.memory_space<vmem>>, vector<1x96x192xf32>
    %6 = vector.shape_cast %5 : vector<1x96x192xf32> to vector<96x192xf32>
    %cst_8 = arith.constant dense<0.000000e+00> : vector<32x192xf32>
    %7 = tpu.matmul %4, %6, %cst_8 {dimension_numbers = #tpu.dot_dimension_numbers<[1], [0], [0], [1], [0, 0, 1, 1], [], []>} : vector<32x96xf32>, vector<96x192xf32>, vector<32x192xf32> -> vector<32x192xf32>
    %8 = arith.addf %1, %7 : vector<32x192xf32>
    %c1 = arith.constant 1 : index
    %c0_9 = arith.constant 0 : index
    %c0_10 = arith.constant 0 : index
    %9 = vector.load %arg1[%c1, %c0_9, %c0_10] : memref<4x32x64xf32, #tpu.memory_space<vmem>>, vector<1x32x64xf32>
    %10 = vector.shape_cast %9 : vector<1x32x64xf32> to vector<32x64xf32>
    %cst_11 = arith.constant dense<0.000000e+00> : vector<32x96xf32>
    %11 = tpu.matmul %10, %0, %cst_11 {dimension_numbers = #tpu.dot_dimension_numbers<[1], [0], [0], [1], [0, 0, 1, 1], [], []>} : vector<32x64xf32>, vector<64x96xf32>, vector<32x96xf32> -> vector<32x96xf32>
    %c1_12 = arith.constant 1 : index
    %c0_13 = arith.constant 0 : index
    %c0_14 = arith.constant 0 : index
    %12 = vector.load %arg2[%c1_12, %c0_13, %c0_14] : memref<4x96x192xf32, #tpu.memory_space<vmem>>, vector<1x96x192xf32>
    %13 = vector.shape_cast %12 : vector<1x96x192xf32> to vector<96x192xf32>
    %cst_15 = arith.constant dense<0.000000e+00> : vector<32x192xf32>
    %14 = tpu.matmul %11, %13, %cst_15 {dimension_numbers = #tpu.dot_dimension_numbers<[1], [0], [0], [1], [0, 0, 1, 1], [], []>} : vector<32x96xf32>, vector<96x192xf32>, vector<32x192xf32> -> vector<32x192xf32>
    %15 = arith.addf %8, %14 : vector<32x192xf32>
    %c2 = arith.constant 2 : index
    %c0_16 = arith.constant 0 : index
    %c0_17 = arith.constant 0 : index
    %16 = vector.load %arg1[%c2, %c0_16, %c0_17] : memref<4x32x64xf32, #tpu.memory_space<vmem>>, vector<1x32x64xf32>
    %17 = vector.shape_cast %16 : vector<1x32x64xf32> to vector<32x64xf32>
    %cst_18 = arith.constant dense<0.000000e+00> : vector<32x96xf32>
    %18 = tpu.matmul %17, %0, %cst_18 {dimension_numbers = #tpu.dot_dimension_numbers<[1], [0], [0], [1], [0, 0, 1, 1], [], []>} : vector<32x64xf32>, vector<64x96xf32>, vector<32x96xf32> -> vector<32x96xf32>
    %c2_19 = arith.constant 2 : index
    %c0_20 = arith.constant 0 : index
    %c0_21 = arith.constant 0 : index
    %19 = vector.load %arg2[%c2_19, %c0_20, %c0_21] : memref<4x96x192xf32, #tpu.memory_space<vmem>>, vector<1x96x192xf32>
    %20 = vector.shape_cast %19 : vector<1x96x192xf32> to vector<96x192xf32>
    %cst_22 = arith.constant dense<0.000000e+00> : vector<32x192xf32>
    %21 = tpu.matmul %18, %20, %cst_22 {dimension_numbers = #tpu.dot_dimension_numbers<[1], [0], [0], [1], [0, 0, 1, 1], [], []>} : vector<32x96xf32>, vector<96x192xf32>, vector<32x192xf32> -> vector<32x192xf32>
    %22 = arith.addf %15, %21 : vector<32x192xf32>
    %c3 = arith.constant 3 : index
    %c0_23 = arith.constant 0 : index
    %c0_24 = arith.constant 0 : index
    %23 = vector.load %arg1[%c3, %c0_23, %c0_24] : memref<4x32x64xf32, #tpu.memory_space<vmem>>, vector<1x32x64xf32>
    %24 = vector.shape_cast %23 : vector<1x32x64xf32> to vector<32x64xf32>
    %cst_25 = arith.constant dense<0.000000e+00> : vector<32x96xf32>
    %25 = tpu.matmul %24, %0, %cst_25 {dimension_numbers = #tpu.dot_dimension_numbers<[1], [0], [0], [1], [0, 0, 1, 1], [], []>} : vector<32x64xf32>, vector<64x96xf32>, vector<32x96xf32> -> vector<32x96xf32>
    %c3_26 = arith.constant 3 : index
    %c0_27 = arith.constant 0 : index
    %c0_28 = arith.constant 0 : index
    %26 = vector.load %arg2[%c3_26, %c0_27, %c0_28] : memref<4x96x192xf32, #tpu.memory_space<vmem>>, vector<1x96x192xf32>
    %27 = vector.shape_cast %26 : vector<1x96x192xf32> to vector<96x192xf32>
    %cst_29 = arith.constant dense<0.000000e+00> : vector<32x192xf32>
    %28 = tpu.matmul %25, %27, %cst_29 {dimension_numbers = #tpu.dot_dimension_numbers<[1], [0], [0], [1], [0, 0, 1, 1], [], []>} : vector<32x96xf32>, vector<96x192xf32>, vector<32x192xf32> -> vector<32x192xf32>
    %29 = arith.addf %22, %28 : vector<32x192xf32>
    %c0_30 = arith.constant 0 : index
    %c0_31 = arith.constant 0 : index
    %30 = vector.load %arg3[%c0_30, %c0_31] : memref<1x192xf32, #tpu.memory_space<vmem>>, vector<1x192xf32>
    %31 = vector.broadcast %30 : vector<1x192xf32> to vector<32x192xf32>
    %32 = arith.addf %29, %31 : vector<32x192xf32>
    %cst_32 = arith.constant 0.000000e+00 : f32
    %33 = vector.broadcast %cst_32 : f32 to vector<32x192xf32>
    %34 = arith.maximumf %32, %33 : vector<32x192xf32>
    %cst_33 = arith.constant 0.000000e+00 : f32
    %35 = vector.broadcast %cst_33 : f32 to vector<16x192xf32>
    %c0_34 = arith.constant 0 : index
    %c0_35 = arith.constant 0 : index
    %c0_36 = arith.constant 0 : index
    %36 = vector.load %arg4[%c0_34, %c0_35, %c0_36] : memref<4x16x32xf32, #tpu.memory_space<vmem>>, vector<1x16x32xf32>
    %37 = vector.shape_cast %36 : vector<1x16x32xf32> to vector<16x32xf32>
    %cst_37 = arith.constant dense<0.000000e+00> : vector<16x192xf32>
    %38 = tpu.matmul %37, %34, %cst_37 {dimension_numbers = #tpu.dot_dimension_numbers<[1], [0], [0], [1], [0, 0, 1, 1], [], []>} : vector<16x32xf32>, vector<32x192xf32>, vector<16x192xf32> -> vector<16x192xf32>
    %c0_38 = arith.constant 0 : index
    %c0_39 = arith.constant 0 : index
    %c0_40 = arith.constant 0 : index
    %39 = vector.load %arg5[%c0_38, %c0_39, %c0_40] : memref<4x192x192xf32, #tpu.memory_space<vmem>>, vector<1x192x192xf32>
    %40 = vector.shape_cast %39 : vector<1x192x192xf32> to vector<192x192xf32>
    %cst_41 = arith.constant dense<0.000000e+00> : vector<16x192xf32>
    %41 = tpu.matmul %38, %40, %cst_41 {dimension_numbers = #tpu.dot_dimension_numbers<[1], [0], [0], [1], [0, 0, 1, 1], [], []>} : vector<16x192xf32>, vector<192x192xf32>, vector<16x192xf32> -> vector<16x192xf32>
    %42 = arith.addf %35, %41 : vector<16x192xf32>
    %c1_42 = arith.constant 1 : index
    %c0_43 = arith.constant 0 : index
    %c0_44 = arith.constant 0 : index
    %43 = vector.load %arg4[%c1_42, %c0_43, %c0_44] : memref<4x16x32xf32, #tpu.memory_space<vmem>>, vector<1x16x32xf32>
    %44 = vector.shape_cast %43 : vector<1x16x32xf32> to vector<16x32xf32>
    %cst_45 = arith.constant dense<0.000000e+00> : vector<16x192xf32>
    %45 = tpu.matmul %44, %34, %cst_45 {dimension_numbers = #tpu.dot_dimension_numbers<[1], [0], [0], [1], [0, 0, 1, 1], [], []>} : vector<16x32xf32>, vector<32x192xf32>, vector<16x192xf32> -> vector<16x192xf32>
    %c1_46 = arith.constant 1 : index
    %c0_47 = arith.constant 0 : index
    %c0_48 = arith.constant 0 : index
    %46 = vector.load %arg5[%c1_46, %c0_47, %c0_48] : memref<4x192x192xf32, #tpu.memory_space<vmem>>, vector<1x192x192xf32>
    %47 = vector.shape_cast %46 : vector<1x192x192xf32> to vector<192x192xf32>
    %cst_49 = arith.constant dense<0.000000e+00> : vector<16x192xf32>
    %48 = tpu.matmul %45, %47, %cst_49 {dimension_numbers = #tpu.dot_dimension_numbers<[1], [0], [0], [1], [0, 0, 1, 1], [], []>} : vector<16x192xf32>, vector<192x192xf32>, vector<16x192xf32> -> vector<16x192xf32>
    %49 = arith.addf %42, %48 : vector<16x192xf32>
    %c2_50 = arith.constant 2 : index
    %c0_51 = arith.constant 0 : index
    %c0_52 = arith.constant 0 : index
    %50 = vector.load %arg4[%c2_50, %c0_51, %c0_52] : memref<4x16x32xf32, #tpu.memory_space<vmem>>, vector<1x16x32xf32>
    %51 = vector.shape_cast %50 : vector<1x16x32xf32> to vector<16x32xf32>
    %cst_53 = arith.constant dense<0.000000e+00> : vector<16x192xf32>
    %52 = tpu.matmul %51, %34, %cst_53 {dimension_numbers = #tpu.dot_dimension_numbers<[1], [0], [0], [1], [0, 0, 1, 1], [], []>} : vector<16x32xf32>, vector<32x192xf32>, vector<16x192xf32> -> vector<16x192xf32>
    %c2_54 = arith.constant 2 : index
    %c0_55 = arith.constant 0 : index
    %c0_56 = arith.constant 0 : index
    %53 = vector.load %arg5[%c2_54, %c0_55, %c0_56] : memref<4x192x192xf32, #tpu.memory_space<vmem>>, vector<1x192x192xf32>
    %54 = vector.shape_cast %53 : vector<1x192x192xf32> to vector<192x192xf32>
    %cst_57 = arith.constant dense<0.000000e+00> : vector<16x192xf32>
    %55 = tpu.matmul %52, %54, %cst_57 {dimension_numbers = #tpu.dot_dimension_numbers<[1], [0], [0], [1], [0, 0, 1, 1], [], []>} : vector<16x192xf32>, vector<192x192xf32>, vector<16x192xf32> -> vector<16x192xf32>
    %56 = arith.addf %49, %55 : vector<16x192xf32>
    %c3_58 = arith.constant 3 : index
    %c0_59 = arith.constant 0 : index
    %c0_60 = arith.constant 0 : index
    %57 = vector.load %arg4[%c3_58, %c0_59, %c0_60] : memref<4x16x32xf32, #tpu.memory_space<vmem>>, vector<1x16x32xf32>
    %58 = vector.shape_cast %57 : vector<1x16x32xf32> to vector<16x32xf32>
    %cst_61 = arith.constant dense<0.000000e+00> : vector<16x192xf32>
    %59 = tpu.matmul %58, %34, %cst_61 {dimension_numbers = #tpu.dot_dimension_numbers<[1], [0], [0], [1], [0, 0, 1, 1], [], []>} : vector<16x32xf32>, vector<32x192xf32>, vector<16x192xf32> -> vector<16x192xf32>
    %c3_62 = arith.constant 3 : index
    %c0_63 = arith.constant 0 : index
    %c0_64 = arith.constant 0 : index
    %60 = vector.load %arg5[%c3_62, %c0_63, %c0_64] : memref<4x192x192xf32, #tpu.memory_space<vmem>>, vector<1x192x192xf32>
    %61 = vector.shape_cast %60 : vector<1x192x192xf32> to vector<192x192xf32>
    %cst_65 = arith.constant dense<0.000000e+00> : vector<16x192xf32>
    %62 = tpu.matmul %59, %61, %cst_65 {dimension_numbers = #tpu.dot_dimension_numbers<[1], [0], [0], [1], [0, 0, 1, 1], [], []>} : vector<16x192xf32>, vector<192x192xf32>, vector<16x192xf32> -> vector<16x192xf32>
    %63 = arith.addf %56, %62 : vector<16x192xf32>
    %c0_66 = arith.constant 0 : index
    %c0_67 = arith.constant 0 : index
    %64 = vector.load %arg6[%c0_66, %c0_67] : memref<1x192xf32, #tpu.memory_space<vmem>>, vector<1x192xf32>
    %65 = vector.broadcast %64 : vector<1x192xf32> to vector<16x192xf32>
    %66 = arith.addf %63, %65 : vector<16x192xf32>
    %cst_68 = arith.constant 0.000000e+00 : f32
    %67 = vector.broadcast %cst_68 : f32 to vector<16x192xf32>
    %68 = arith.maximumf %66, %67 : vector<16x192xf32>
    %cst_69 = arith.constant 0.000000e+00 : f32
    %69 = vector.broadcast %cst_69 : f32 to vector<8x192xf32>
    %c0_70 = arith.constant 0 : index
    %c0_71 = arith.constant 0 : index
    %c0_72 = arith.constant 0 : index
    %70 = vector.load %arg7[%c0_70, %c0_71, %c0_72] : memref<4x8x16xf32, #tpu.memory_space<vmem>>, vector<1x8x16xf32>
    %71 = vector.shape_cast %70 : vector<1x8x16xf32> to vector<8x16xf32>
    %cst_73 = arith.constant dense<0.000000e+00> : vector<8x192xf32>
    %72 = tpu.matmul %71, %68, %cst_73 {dimension_numbers = #tpu.dot_dimension_numbers<[1], [0], [0], [1], [0, 0, 1, 1], [], []>} : vector<8x16xf32>, vector<16x192xf32>, vector<8x192xf32> -> vector<8x192xf32>
    %c0_74 = arith.constant 0 : index
    %c0_75 = arith.constant 0 : index
    %c0_76 = arith.constant 0 : index
    %73 = vector.load %arg8[%c0_74, %c0_75, %c0_76] : memref<4x192x192xf32, #tpu.memory_space<vmem>>, vector<1x192x192xf32>
    %74 = vector.shape_cast %73 : vector<1x192x192xf32> to vector<192x192xf32>
    %cst_77 = arith.constant dense<0.000000e+00> : vector<8x192xf32>
    %75 = tpu.matmul %72, %74, %cst_77 {dimension_numbers = #tpu.dot_dimension_numbers<[1], [0], [0], [1], [0, 0, 1, 1], [], []>} : vector<8x192xf32>, vector<192x192xf32>, vector<8x192xf32> -> vector<8x192xf32>
    %76 = arith.addf %69, %75 : vector<8x192xf32>
    %c1_78 = arith.constant 1 : index
    %c0_79 = arith.constant 0 : index
    %c0_80 = arith.constant 0 : index
    %77 = vector.load %arg7[%c1_78, %c0_79, %c0_80] : memref<4x8x16xf32, #tpu.memory_space<vmem>>, vector<1x8x16xf32>
    %78 = vector.shape_cast %77 : vector<1x8x16xf32> to vector<8x16xf32>
    %cst_81 = arith.constant dense<0.000000e+00> : vector<8x192xf32>
    %79 = tpu.matmul %78, %68, %cst_81 {dimension_numbers = #tpu.dot_dimension_numbers<[1], [0], [0], [1], [0, 0, 1, 1], [], []>} : vector<8x16xf32>, vector<16x192xf32>, vector<8x192xf32> -> vector<8x192xf32>
    %c1_82 = arith.constant 1 : index
    %c0_83 = arith.constant 0 : index
    %c0_84 = arith.constant 0 : index
    %80 = vector.load %arg8[%c1_82, %c0_83, %c0_84] : memref<4x192x192xf32, #tpu.memory_space<vmem>>, vector<1x192x192xf32>
    %81 = vector.shape_cast %80 : vector<1x192x192xf32> to vector<192x192xf32>
    %cst_85 = arith.constant dense<0.000000e+00> : vector<8x192xf32>
    %82 = tpu.matmul %79, %81, %cst_85 {dimension_numbers = #tpu.dot_dimension_numbers<[1], [0], [0], [1], [0, 0, 1, 1], [], []>} : vector<8x192xf32>, vector<192x192xf32>, vector<8x192xf32> -> vector<8x192xf32>
    %83 = arith.addf %76, %82 : vector<8x192xf32>
    %c2_86 = arith.constant 2 : index
    %c0_87 = arith.constant 0 : index
    %c0_88 = arith.constant 0 : index
    %84 = vector.load %arg7[%c2_86, %c0_87, %c0_88] : memref<4x8x16xf32, #tpu.memory_space<vmem>>, vector<1x8x16xf32>
    %85 = vector.shape_cast %84 : vector<1x8x16xf32> to vector<8x16xf32>
    %cst_89 = arith.constant dense<0.000000e+00> : vector<8x192xf32>
    %86 = tpu.matmul %85, %68, %cst_89 {dimension_numbers = #tpu.dot_dimension_numbers<[1], [0], [0], [1], [0, 0, 1, 1], [], []>} : vector<8x16xf32>, vector<16x192xf32>, vector<8x192xf32> -> vector<8x192xf32>
    %c2_90 = arith.constant 2 : index
    %c0_91 = arith.constant 0 : index
    %c0_92 = arith.constant 0 : index
    %87 = vector.load %arg8[%c2_90, %c0_91, %c0_92] : memref<4x192x192xf32, #tpu.memory_space<vmem>>, vector<1x192x192xf32>
    %88 = vector.shape_cast %87 : vector<1x192x192xf32> to vector<192x192xf32>
    %cst_93 = arith.constant dense<0.000000e+00> : vector<8x192xf32>
    %89 = tpu.matmul %86, %88, %cst_93 {dimension_numbers = #tpu.dot_dimension_numbers<[1], [0], [0], [1], [0, 0, 1, 1], [], []>} : vector<8x192xf32>, vector<192x192xf32>, vector<8x192xf32> -> vector<8x192xf32>
    %90 = arith.addf %83, %89 : vector<8x192xf32>
    %c3_94 = arith.constant 3 : index
    %c0_95 = arith.constant 0 : index
    %c0_96 = arith.constant 0 : index
    %91 = vector.load %arg7[%c3_94, %c0_95, %c0_96] : memref<4x8x16xf32, #tpu.memory_space<vmem>>, vector<1x8x16xf32>
    %92 = vector.shape_cast %91 : vector<1x8x16xf32> to vector<8x16xf32>
    %cst_97 = arith.constant dense<0.000000e+00> : vector<8x192xf32>
    %93 = tpu.matmul %92, %68, %cst_97 {dimension_numbers = #tpu.dot_dimension_numbers<[1], [0], [0], [1], [0, 0, 1, 1], [], []>} : vector<8x16xf32>, vector<16x192xf32>, vector<8x192xf32> -> vector<8x192xf32>
    %c3_98 = arith.constant 3 : index
    %c0_99 = arith.constant 0 : index
    %c0_100 = arith.constant 0 : index
    %94 = vector.load %arg8[%c3_98, %c0_99, %c0_100] : memref<4x192x192xf32, #tpu.memory_space<vmem>>, vector<1x192x192xf32>
    %95 = vector.shape_cast %94 : vector<1x192x192xf32> to vector<192x192xf32>
    %cst_101 = arith.constant dense<0.000000e+00> : vector<8x192xf32>
    %96 = tpu.matmul %93, %95, %cst_101 {dimension_numbers = #tpu.dot_dimension_numbers<[1], [0], [0], [1], [0, 0, 1, 1], [], []>} : vector<8x192xf32>, vector<192x192xf32>, vector<8x192xf32> -> vector<8x192xf32>
    %97 = arith.addf %90, %96 : vector<8x192xf32>
    %c0_102 = arith.constant 0 : index
    %c0_103 = arith.constant 0 : index
    %98 = vector.load %arg9[%c0_102, %c0_103] : memref<1x192xf32, #tpu.memory_space<vmem>>, vector<1x192xf32>
    %99 = vector.broadcast %98 : vector<1x192xf32> to vector<8x192xf32>
    %100 = arith.addf %97, %99 : vector<8x192xf32>
    %cst_104 = arith.constant 0.000000e+00 : f32
    %101 = vector.broadcast %cst_104 : f32 to vector<8x192xf32>
    %102 = arith.maximumf %100, %101 : vector<8x192xf32>
    %cst_105 = arith.constant 0.000000e+00 : f32
    %103 = vector.broadcast %cst_105 : f32 to vector<16x192xf32>
    %c0_106 = arith.constant 0 : index
    %c0_107 = arith.constant 0 : index
    %c0_108 = arith.constant 0 : index
    %104 = vector.load %arg11[%c0_106, %c0_107, %c0_108] : memref<4x192x192xf32, #tpu.memory_space<vmem>>, vector<1x192x192xf32>
    %105 = vector.shape_cast %104 : vector<1x192x192xf32> to vector<192x192xf32>
    %cst_109 = arith.constant dense<0.000000e+00> : vector<8x192xf32>
    %106 = tpu.matmul %102, %105, %cst_109 {dimension_numbers = #tpu.dot_dimension_numbers<[1], [0], [0], [1], [0, 0, 1, 1], [], []>} : vector<8x192xf32>, vector<192x192xf32>, vector<8x192xf32> -> vector<8x192xf32>
    %c0_110 = arith.constant 0 : index
    %c0_111 = arith.constant 0 : index
    %c0_112 = arith.constant 0 : index
    %107 = vector.load %arg10[%c0_110, %c0_111, %c0_112] : memref<4x16x8xf32, #tpu.memory_space<vmem>>, vector<1x16x8xf32>
    %108 = vector.shape_cast %107 : vector<1x16x8xf32> to vector<16x8xf32>
    %cst_113 = arith.constant dense<0.000000e+00> : vector<16x192xf32>
    %109 = tpu.matmul %108, %106, %cst_113 {dimension_numbers = #tpu.dot_dimension_numbers<[1], [0], [0], [1], [0, 0, 1, 1], [], []>} : vector<16x8xf32>, vector<8x192xf32>, vector<16x192xf32> -> vector<16x192xf32>
    %110 = arith.addf %103, %109 : vector<16x192xf32>
    %c1_114 = arith.constant 1 : index
    %c0_115 = arith.constant 0 : index
    %c0_116 = arith.constant 0 : index
    %111 = vector.load %arg11[%c1_114, %c0_115, %c0_116] : memref<4x192x192xf32, #tpu.memory_space<vmem>>, vector<1x192x192xf32>
    %112 = vector.shape_cast %111 : vector<1x192x192xf32> to vector<192x192xf32>
    %cst_117 = arith.constant dense<0.000000e+00> : vector<8x192xf32>
    %113 = tpu.matmul %102, %112, %cst_117 {dimension_numbers = #tpu.dot_dimension_numbers<[1], [0], [0], [1], [0, 0, 1, 1], [], []>} : vector<8x192xf32>, vector<192x192xf32>, vector<8x192xf32> -> vector<8x192xf32>
    %c1_118 = arith.constant 1 : index
    %c0_119 = arith.constant 0 : index
    %c0_120 = arith.constant 0 : index
    %114 = vector.load %arg10[%c1_118, %c0_119, %c0_120] : memref<4x16x8xf32, #tpu.memory_space<vmem>>, vector<1x16x8xf32>
    %115 = vector.shape_cast %114 : vector<1x16x8xf32> to vector<16x8xf32>
    %cst_121 = arith.constant dense<0.000000e+00> : vector<16x192xf32>
    %116 = tpu.matmul %115, %113, %cst_121 {dimension_numbers = #tpu.dot_dimension_numbers<[1], [0], [0], [1], [0, 0, 1, 1], [], []>} : vector<16x8xf32>, vector<8x192xf32>, vector<16x192xf32> -> vector<16x192xf32>
    %117 = arith.addf %110, %116 : vector<16x192xf32>
    %c2_122 = arith.constant 2 : index
    %c0_123 = arith.constant 0 : index
    %c0_124 = arith.constant 0 : index
    %118 = vector.load %arg11[%c2_122, %c0_123, %c0_124] : memref<4x192x192xf32, #tpu.memory_space<vmem>>, vector<1x192x192xf32>
    %119 = vector.shape_cast %118 : vector<1x192x192xf32> to vector<192x192xf32>
    %cst_125 = arith.constant dense<0.000000e+00> : vector<8x192xf32>
    %120 = tpu.matmul %102, %119, %cst_125 {dimension_numbers = #tpu.dot_dimension_numbers<[1], [0], [0], [1], [0, 0, 1, 1], [], []>} : vector<8x192xf32>, vector<192x192xf32>, vector<8x192xf32> -> vector<8x192xf32>
    %c2_126 = arith.constant 2 : index
    %c0_127 = arith.constant 0 : index
    %c0_128 = arith.constant 0 : index
    %121 = vector.load %arg10[%c2_126, %c0_127, %c0_128] : memref<4x16x8xf32, #tpu.memory_space<vmem>>, vector<1x16x8xf32>
    %122 = vector.shape_cast %121 : vector<1x16x8xf32> to vector<16x8xf32>
    %cst_129 = arith.constant dense<0.000000e+00> : vector<16x192xf32>
    %123 = tpu.matmul %122, %120, %cst_129 {dimension_numbers = #tpu.dot_dimension_numbers<[1], [0], [0], [1], [0, 0, 1, 1], [], []>} : vector<16x8xf32>, vector<8x192xf32>, vector<16x192xf32> -> vector<16x192xf32>
    %124 = arith.addf %117, %123 : vector<16x192xf32>
    %c3_130 = arith.constant 3 : index
    %c0_131 = arith.constant 0 : index
    %c0_132 = arith.constant 0 : index
    %125 = vector.load %arg11[%c3_130, %c0_131, %c0_132] : memref<4x192x192xf32, #tpu.memory_space<vmem>>, vector<1x192x192xf32>
    %126 = vector.shape_cast %125 : vector<1x192x192xf32> to vector<192x192xf32>
    %cst_133 = arith.constant dense<0.000000e+00> : vector<8x192xf32>
    %127 = tpu.matmul %102, %126, %cst_133 {dimension_numbers = #tpu.dot_dimension_numbers<[1], [0], [0], [1], [0, 0, 1, 1], [], []>} : vector<8x192xf32>, vector<192x192xf32>, vector<8x192xf32> -> vector<8x192xf32>
    %c3_134 = arith.constant 3 : index
    %c0_135 = arith.constant 0 : index
    %c0_136 = arith.constant 0 : index
    %128 = vector.load %arg10[%c3_134, %c0_135, %c0_136] : memref<4x16x8xf32, #tpu.memory_space<vmem>>, vector<1x16x8xf32>
    %129 = vector.shape_cast %128 : vector<1x16x8xf32> to vector<16x8xf32>
    %cst_137 = arith.constant dense<0.000000e+00> : vector<16x192xf32>
    %130 = tpu.matmul %129, %127, %cst_137 {dimension_numbers = #tpu.dot_dimension_numbers<[1], [0], [0], [1], [0, 0, 1, 1], [], []>} : vector<16x8xf32>, vector<8x192xf32>, vector<16x192xf32> -> vector<16x192xf32>
    %131 = arith.addf %124, %130 : vector<16x192xf32>
    %c0_138 = arith.constant 0 : index
    %c0_139 = arith.constant 0 : index
    %132 = vector.load %arg12[%c0_138, %c0_139] : memref<1x192xf32, #tpu.memory_space<vmem>>, vector<1x192xf32>
    %133 = vector.broadcast %132 : vector<1x192xf32> to vector<16x192xf32>
    %134 = arith.addf %131, %133 : vector<16x192xf32>
    %cst_140 = arith.constant 0.000000e+00 : f32
    %135 = vector.broadcast %cst_140 : f32 to vector<16x192xf32>
    %136 = arith.maximumf %134, %135 : vector<16x192xf32>
    %cst_141 = arith.constant 0.000000e+00 : f32
    %137 = vector.broadcast %cst_141 : f32 to vector<32x192xf32>
    %c0_142 = arith.constant 0 : index
    %c0_143 = arith.constant 0 : index
    %c0_144 = arith.constant 0 : index
    %138 = vector.load %arg14[%c0_142, %c0_143, %c0_144] : memref<4x192x192xf32, #tpu.memory_space<vmem>>, vector<1x192x192xf32>
    %139 = vector.shape_cast %138 : vector<1x192x192xf32> to vector<192x192xf32>
    %cst_145 = arith.constant dense<0.000000e+00> : vector<16x192xf32>
    %140 = tpu.matmul %136, %139, %cst_145 {dimension_numbers = #tpu.dot_dimension_numbers<[1], [0], [0], [1], [0, 0, 1, 1], [], []>} : vector<16x192xf32>, vector<192x192xf32>, vector<16x192xf32> -> vector<16x192xf32>
    %c0_146 = arith.constant 0 : index
    %c0_147 = arith.constant 0 : index
    %c0_148 = arith.constant 0 : index
    %141 = vector.load %arg13[%c0_146, %c0_147, %c0_148] : memref<4x32x16xf32, #tpu.memory_space<vmem>>, vector<1x32x16xf32>
    %142 = vector.shape_cast %141 : vector<1x32x16xf32> to vector<32x16xf32>
    %cst_149 = arith.constant dense<0.000000e+00> : vector<32x192xf32>
    %143 = tpu.matmul %142, %140, %cst_149 {dimension_numbers = #tpu.dot_dimension_numbers<[1], [0], [0], [1], [0, 0, 1, 1], [], []>} : vector<32x16xf32>, vector<16x192xf32>, vector<32x192xf32> -> vector<32x192xf32>
    %144 = arith.addf %137, %143 : vector<32x192xf32>
    %c1_150 = arith.constant 1 : index
    %c0_151 = arith.constant 0 : index
    %c0_152 = arith.constant 0 : index
    %145 = vector.load %arg14[%c1_150, %c0_151, %c0_152] : memref<4x192x192xf32, #tpu.memory_space<vmem>>, vector<1x192x192xf32>
    %146 = vector.shape_cast %145 : vector<1x192x192xf32> to vector<192x192xf32>
    %cst_153 = arith.constant dense<0.000000e+00> : vector<16x192xf32>
    %147 = tpu.matmul %136, %146, %cst_153 {dimension_numbers = #tpu.dot_dimension_numbers<[1], [0], [0], [1], [0, 0, 1, 1], [], []>} : vector<16x192xf32>, vector<192x192xf32>, vector<16x192xf32> -> vector<16x192xf32>
    %c1_154 = arith.constant 1 : index
    %c0_155 = arith.constant 0 : index
    %c0_156 = arith.constant 0 : index
    %148 = vector.load %arg13[%c1_154, %c0_155, %c0_156] : memref<4x32x16xf32, #tpu.memory_space<vmem>>, vector<1x32x16xf32>
    %149 = vector.shape_cast %148 : vector<1x32x16xf32> to vector<32x16xf32>
    %cst_157 = arith.constant dense<0.000000e+00> : vector<32x192xf32>
    %150 = tpu.matmul %149, %147, %cst_157 {dimension_numbers = #tpu.dot_dimension_numbers<[1], [0], [0], [1], [0, 0, 1, 1], [], []>} : vector<32x16xf32>, vector<16x192xf32>, vector<32x192xf32> -> vector<32x192xf32>
    %151 = arith.addf %144, %150 : vector<32x192xf32>
    %c2_158 = arith.constant 2 : index
    %c0_159 = arith.constant 0 : index
    %c0_160 = arith.constant 0 : index
    %152 = vector.load %arg14[%c2_158, %c0_159, %c0_160] : memref<4x192x192xf32, #tpu.memory_space<vmem>>, vector<1x192x192xf32>
    %153 = vector.shape_cast %152 : vector<1x192x192xf32> to vector<192x192xf32>
    %cst_161 = arith.constant dense<0.000000e+00> : vector<16x192xf32>
    %154 = tpu.matmul %136, %153, %cst_161 {dimension_numbers = #tpu.dot_dimension_numbers<[1], [0], [0], [1], [0, 0, 1, 1], [], []>} : vector<16x192xf32>, vector<192x192xf32>, vector<16x192xf32> -> vector<16x192xf32>
    %c2_162 = arith.constant 2 : index
    %c0_163 = arith.constant 0 : index
    %c0_164 = arith.constant 0 : index
    %155 = vector.load %arg13[%c2_162, %c0_163, %c0_164] : memref<4x32x16xf32, #tpu.memory_space<vmem>>, vector<1x32x16xf32>
    %156 = vector.shape_cast %155 : vector<1x32x16xf32> to vector<32x16xf32>
    %cst_165 = arith.constant dense<0.000000e+00> : vector<32x192xf32>
    %157 = tpu.matmul %156, %154, %cst_165 {dimension_numbers = #tpu.dot_dimension_numbers<[1], [0], [0], [1], [0, 0, 1, 1], [], []>} : vector<32x16xf32>, vector<16x192xf32>, vector<32x192xf32> -> vector<32x192xf32>
    %158 = arith.addf %151, %157 : vector<32x192xf32>
    %c3_166 = arith.constant 3 : index
    %c0_167 = arith.constant 0 : index
    %c0_168 = arith.constant 0 : index
    %159 = vector.load %arg14[%c3_166, %c0_167, %c0_168] : memref<4x192x192xf32, #tpu.memory_space<vmem>>, vector<1x192x192xf32>
    %160 = vector.shape_cast %159 : vector<1x192x192xf32> to vector<192x192xf32>
    %cst_169 = arith.constant dense<0.000000e+00> : vector<16x192xf32>
    %161 = tpu.matmul %136, %160, %cst_169 {dimension_numbers = #tpu.dot_dimension_numbers<[1], [0], [0], [1], [0, 0, 1, 1], [], []>} : vector<16x192xf32>, vector<192x192xf32>, vector<16x192xf32> -> vector<16x192xf32>
    %c3_170 = arith.constant 3 : index
    %c0_171 = arith.constant 0 : index
    %c0_172 = arith.constant 0 : index
    %162 = vector.load %arg13[%c3_170, %c0_171, %c0_172] : memref<4x32x16xf32, #tpu.memory_space<vmem>>, vector<1x32x16xf32>
    %163 = vector.shape_cast %162 : vector<1x32x16xf32> to vector<32x16xf32>
    %cst_173 = arith.constant dense<0.000000e+00> : vector<32x192xf32>
    %164 = tpu.matmul %163, %161, %cst_173 {dimension_numbers = #tpu.dot_dimension_numbers<[1], [0], [0], [1], [0, 0, 1, 1], [], []>} : vector<32x16xf32>, vector<16x192xf32>, vector<32x192xf32> -> vector<32x192xf32>
    %165 = arith.addf %158, %164 : vector<32x192xf32>
    %c0_174 = arith.constant 0 : index
    %c0_175 = arith.constant 0 : index
    %166 = vector.load %arg15[%c0_174, %c0_175] : memref<1x192xf32, #tpu.memory_space<vmem>>, vector<1x192xf32>
    %167 = vector.broadcast %166 : vector<1x192xf32> to vector<32x192xf32>
    %168 = arith.addf %165, %167 : vector<32x192xf32>
    %cst_176 = arith.constant 0.000000e+00 : f32
    %169 = vector.broadcast %cst_176 : f32 to vector<32x192xf32>
    %170 = arith.maximumf %168, %169 : vector<32x192xf32>
    %cst_177 = arith.constant 0.000000e+00 : f32
    %171 = vector.broadcast %cst_177 : f32 to vector<64x96xf32>
    %c0_178 = arith.constant 0 : index
    %c0_179 = arith.constant 0 : index
    %c0_180 = arith.constant 0 : index
    %172 = vector.load %arg17[%c0_178, %c0_179, %c0_180] : memref<4x192x96xf32, #tpu.memory_space<vmem>>, vector<1x192x96xf32>
    %173 = vector.shape_cast %172 : vector<1x192x96xf32> to vector<192x96xf32>
    %cst_181 = arith.constant dense<0.000000e+00> : vector<32x96xf32>
    %174 = tpu.matmul %170, %173, %cst_181 {dimension_numbers = #tpu.dot_dimension_numbers<[1], [0], [0], [1], [0, 0, 1, 1], [], []>} : vector<32x192xf32>, vector<192x96xf32>, vector<32x96xf32> -> vector<32x96xf32>
    %c0_182 = arith.constant 0 : index
    %c0_183 = arith.constant 0 : index
    %c0_184 = arith.constant 0 : index
    %175 = vector.load %arg16[%c0_182, %c0_183, %c0_184] : memref<4x64x32xf32, #tpu.memory_space<vmem>>, vector<1x64x32xf32>
    %176 = vector.shape_cast %175 : vector<1x64x32xf32> to vector<64x32xf32>
    %cst_185 = arith.constant dense<0.000000e+00> : vector<64x96xf32>
    %177 = tpu.matmul %176, %174, %cst_185 {dimension_numbers = #tpu.dot_dimension_numbers<[1], [0], [0], [1], [0, 0, 1, 1], [], []>} : vector<64x32xf32>, vector<32x96xf32>, vector<64x96xf32> -> vector<64x96xf32>
    %178 = arith.addf %171, %177 : vector<64x96xf32>
    %c1_186 = arith.constant 1 : index
    %c0_187 = arith.constant 0 : index
    %c0_188 = arith.constant 0 : index
    %179 = vector.load %arg17[%c1_186, %c0_187, %c0_188] : memref<4x192x96xf32, #tpu.memory_space<vmem>>, vector<1x192x96xf32>
    %180 = vector.shape_cast %179 : vector<1x192x96xf32> to vector<192x96xf32>
    %cst_189 = arith.constant dense<0.000000e+00> : vector<32x96xf32>
    %181 = tpu.matmul %170, %180, %cst_189 {dimension_numbers = #tpu.dot_dimension_numbers<[1], [0], [0], [1], [0, 0, 1, 1], [], []>} : vector<32x192xf32>, vector<192x96xf32>, vector<32x96xf32> -> vector<32x96xf32>
    %c1_190 = arith.constant 1 : index
    %c0_191 = arith.constant 0 : index
    %c0_192 = arith.constant 0 : index
    %182 = vector.load %arg16[%c1_190, %c0_191, %c0_192] : memref<4x64x32xf32, #tpu.memory_space<vmem>>, vector<1x64x32xf32>
    %183 = vector.shape_cast %182 : vector<1x64x32xf32> to vector<64x32xf32>
    %cst_193 = arith.constant dense<0.000000e+00> : vector<64x96xf32>
    %184 = tpu.matmul %183, %181, %cst_193 {dimension_numbers = #tpu.dot_dimension_numbers<[1], [0], [0], [1], [0, 0, 1, 1], [], []>} : vector<64x32xf32>, vector<32x96xf32>, vector<64x96xf32> -> vector<64x96xf32>
    %185 = arith.addf %178, %184 : vector<64x96xf32>
    %c2_194 = arith.constant 2 : index
    %c0_195 = arith.constant 0 : index
    %c0_196 = arith.constant 0 : index
    %186 = vector.load %arg17[%c2_194, %c0_195, %c0_196] : memref<4x192x96xf32, #tpu.memory_space<vmem>>, vector<1x192x96xf32>
    %187 = vector.shape_cast %186 : vector<1x192x96xf32> to vector<192x96xf32>
    %cst_197 = arith.constant dense<0.000000e+00> : vector<32x96xf32>
    %188 = tpu.matmul %170, %187, %cst_197 {dimension_numbers = #tpu.dot_dimension_numbers<[1], [0], [0], [1], [0, 0, 1, 1], [], []>} : vector<32x192xf32>, vector<192x96xf32>, vector<32x96xf32> -> vector<32x96xf32>
    %c2_198 = arith.constant 2 : index
    %c0_199 = arith.constant 0 : index
    %c0_200 = arith.constant 0 : index
    %189 = vector.load %arg16[%c2_198, %c0_199, %c0_200] : memref<4x64x32xf32, #tpu.memory_space<vmem>>, vector<1x64x32xf32>
    %190 = vector.shape_cast %189 : vector<1x64x32xf32> to vector<64x32xf32>
    %cst_201 = arith.constant dense<0.000000e+00> : vector<64x96xf32>
    %191 = tpu.matmul %190, %188, %cst_201 {dimension_numbers = #tpu.dot_dimension_numbers<[1], [0], [0], [1], [0, 0, 1, 1], [], []>} : vector<64x32xf32>, vector<32x96xf32>, vector<64x96xf32> -> vector<64x96xf32>
    %192 = arith.addf %185, %191 : vector<64x96xf32>
    %c3_202 = arith.constant 3 : index
    %c0_203 = arith.constant 0 : index
    %c0_204 = arith.constant 0 : index
    %193 = vector.load %arg17[%c3_202, %c0_203, %c0_204] : memref<4x192x96xf32, #tpu.memory_space<vmem>>, vector<1x192x96xf32>
    %194 = vector.shape_cast %193 : vector<1x192x96xf32> to vector<192x96xf32>
    %cst_205 = arith.constant dense<0.000000e+00> : vector<32x96xf32>
    %195 = tpu.matmul %170, %194, %cst_205 {dimension_numbers = #tpu.dot_dimension_numbers<[1], [0], [0], [1], [0, 0, 1, 1], [], []>} : vector<32x192xf32>, vector<192x96xf32>, vector<32x96xf32> -> vector<32x96xf32>
    %c3_206 = arith.constant 3 : index
    %c0_207 = arith.constant 0 : index
    %c0_208 = arith.constant 0 : index
    %196 = vector.load %arg16[%c3_206, %c0_207, %c0_208] : memref<4x64x32xf32, #tpu.memory_space<vmem>>, vector<1x64x32xf32>
    %197 = vector.shape_cast %196 : vector<1x64x32xf32> to vector<64x32xf32>
    %cst_209 = arith.constant dense<0.000000e+00> : vector<64x96xf32>
    %198 = tpu.matmul %197, %195, %cst_209 {dimension_numbers = #tpu.dot_dimension_numbers<[1], [0], [0], [1], [0, 0, 1, 1], [], []>} : vector<64x32xf32>, vector<32x96xf32>, vector<64x96xf32> -> vector<64x96xf32>
    %199 = arith.addf %192, %198 : vector<64x96xf32>
    %c0_210 = arith.constant 0 : index
    %c0_211 = arith.constant 0 : index
    %200 = vector.load %arg18[%c0_210, %c0_211] : memref<1x96xf32, #tpu.memory_space<vmem>>, vector<1x96xf32>
    %201 = vector.broadcast %200 : vector<1x96xf32> to vector<64x96xf32>
    %202 = arith.addf %199, %201 : vector<64x96xf32>
    %203 = math.tanh %202 : vector<64x96xf32>
    %c0_212 = arith.constant 0 : index
    %c0_213 = arith.constant 0 : index
    %204 = vector.load %arg19[%c0_212, %c0_213] : memref<64x96xf32, #tpu.memory_space<vmem>>, vector<64x96xf32>
    tpu.vector_store %arg19[%c0_212, %c0_213], %203 {strides = array<i32>} : memref<64x96xf32, #tpu.memory_space<vmem>>, vector<64x96xf32>,
    return
  }
}

</mosaic_0001>

<bundles_post_ra>
// kernel: conv_autoencoder_forward.1
= control target key start
LH: loop header
LB: loop body
LE: loop exit
PB: predicated region body
PF: predicated region fallthrough
CT: control target
= control target key end

     0   :  { %s6314_s0 = inlined_call_operand.vmem [shape: f32[64,96], index: 0, kind: input, shape index: {}]   ;;  %s6315_s1 = inlined_call_operand.vmem [shape: f32[4,32,64], index: 1, kind: input, shape index: {}]   ;;  %s6316_s2 = inlined_call_operand.hbm [shape: f32[4,96,192], index: 2, kind: input, shape index: {}]   ;;  %s6317_s3 = inlined_call_operand.vmem [shape: f32[1,192], index: 3, kind: input, shape index: {}]   ;;  %s6318_s4 = inlined_call_operand.vmem [shape: f32[4,16,32], index: 4, kind: input, shape index: {}]   ;;  %s6319_s5 = inlined_call_operand.hbm [shape: f32[4,192,192], index: 5, kind: input, shape index: {}]   ;;  %s6320_s6 = inlined_call_operand.vmem [shape: f32[1,192], index: 6, kind: input, shape index: {}]   ;;  %s6321_s7 = inlined_call_operand.vmem [shape: f32[4,8,16], index: 7, kind: input, shape index: {}]   ;;  %s6322_s8 = inlined_call_operand.hbm [shape: f32[4,192,192], index: 8, kind: input, shape index: {}]   ;;  %s6323_s9 = inlined_call_operand.vmem [shape: f32[1,192], index: 9, kind: input, shape index: {}]   ;;  %s6324_s10 = inlined_call_operand.vmem [shape: f32[4,16,8], index: 10, kind: input, shape index: {}]   ;;  %s6325_s11 = inlined_call_operand.hbm [shape: f32[4,192,192], index: 11, kind: input, shape index: {}]   ;;  %s6326_s12 = inlined_call_operand.vmem [shape: f32[1,192], index: 12, kind: input, shape index: {}]   ;;  %s6327_s13 = inlined_call_operand.vmem [shape: f32[4,32,16], index: 13, kind: input, shape index: {}]   ;;  %s6328_s14 = inlined_call_operand.hbm [shape: f32[4,192,192], index: 14, kind: input, shape index: {}]   ;;  %s6329_s15 = inlined_call_operand.vmem [shape: f32[1,192], index: 15, kind: input, shape index: {}]   ;;  %s6330_s16 = inlined_call_operand.vmem [shape: f32[4,64,32], index: 16, kind: input, shape index: {}]   ;;  %s6331_s17 = inlined_call_operand.hbm [shape: f32[4,192,96], index: 17, kind: input, shape index: {}]   ;;  %s6332_s18 = inlined_call_operand.vmem [shape: f32[1,96], index: 18, kind: input, shape index: {}]   ;;  %s6333_s19 = inlined_call_operand.vmem [shape: f32[64,96], index: 19, kind: output, shape index: {}]  }
   0x1   :  { %6336 = sst [smem:[#allocation16_spill]] %s6314_s0 }
   0x2   :  { %6337 = sst [smem:[#allocation17_spill]] %s6315_s1 }
   0x3   :  { %6338 = sst [smem:[#allocation18_spill]] %s6316_s2 }
   0x4   :  { %6339 = sst [smem:[#allocation19_spill]] %s6317_s3 }
   0x5   :  { %24 = vsyncpa [#allocation3], 0 }
   0x6   :  { %25 = vsyncpa [#allocation5], 0 }
   0x7   :  { %26 = vsyncpa [#allocation8], 0 }
   0x8   :  { %27 = vsyncpa [#allocation11], 0  ;;  %s53_s20 = sshll.u32 %s6319_s5, 4  ;;  %s5130_s21 = smov [#allocation4]   ;;  %s54_s20 = int_to_ptr.hbm [resolvable:$true] %s53_s20 }
   0x9   :  { %s55_s1 = sshll.u32 %s5130_s21, 4  ;;  %s87_s23 = sshll.u32 %s6325_s11, 4  ;;  %s56_s1 = int_to_ptr.vmem [resolvable:$true] %s55_s1  ;;  %s88_s23 = int_to_ptr.hbm [resolvable:$true] %s87_s23 }
   0xa   :  { %s5131_s24 = smov 256   ;;  %s5132_s25 = smov 16  }
   0xb   :  { %61 = dma.hbm_to_vmem [thread:$0]  %s54_s20, 24576, %s56_s1, [#allocation5], %s5131_s24, %s5131_s24, %s5132_s25  }
   0xc   :  { %s5133_s3 = smov [#allocation7]   ;;  %s6340_s5 = sld [smem:[#allocation18_spill]] }
   0xd   :  { %s89_s26 = sshll.u32 %s5133_s3, 4  ;;  %s70_s30 = sshll.u32 %s6322_s8, 4  ;;  %s90_s26 = int_to_ptr.vmem [resolvable:$true] %s89_s26  ;;  %s71_s30 = int_to_ptr.hbm [resolvable:$true] %s70_s30 }
   0xe   :  { %95 = dma.hbm_to_vmem [thread:$0]  %s88_s23, 24576, %s90_s26, [#allocation8], %s5131_s24, %s5131_s24, %s5132_s25  }
   0xf   :  { %s5134_s21 = smov [#allocation2]   ;;  %s5135_s20 = smov [#allocation6]  }
  0x10   :  { %s38_s22 = sshll.u32 %s5134_s21, 4  ;;  %s72_s1 = sshll.u32 %s5135_s20, 4  ;;  %s39_s22 = int_to_ptr.vmem [resolvable:$true] %s38_s22  ;;  %s73_s1 = int_to_ptr.vmem [resolvable:$true] %s72_s1 }
  0x11   :  { %s104_s27 = sshll.u32 %s6328_s14, 4  ;;  %s121_s26 = sshll.u32 %s6331_s17, 4  ;;  %s105_s27 = int_to_ptr.hbm [resolvable:$true] %s104_s27  ;;  %s122_s26 = int_to_ptr.hbm [resolvable:$true] %s121_s26 }
  0x12   :  { %s36_s29 = sshll.u32 %s6340_s5, 4  ;;  %s5136_s28 = smov [#allocation9]   ;;  %s37_s29 = int_to_ptr.hbm [resolvable:$true] %s36_s29 }
  0x13   :  { %44 = dma.hbm_to_vmem [thread:$0]  %s37_s29, 12288, %s39_s22, [#allocation3], %s5131_s24, %s5131_s24, %s5132_s25  }
  0x14   :  { %78 = dma.hbm_to_vmem [thread:$0]  %s71_s30, 24576, %s73_s1, [#allocation5], %s5131_s24, %s5131_s24, %s5132_s25  }
  0x15   :  { %s106_s5 = sshll.u32 %s5136_s28, 4  ;;  %s5137_s29 = smov [#allocation10]   ;;  %s107_s5 = int_to_ptr.vmem [resolvable:$true] %s106_s5 }
  0x16   :  { %112 = dma.hbm_to_vmem [thread:$0]  %s105_s27, 24576, %s107_s5, [#allocation8], %s5131_s24, %s5131_s24, %s5132_s25  }
  0x17   :  { %s123_s14 = sshll.u32 %s5137_s29, 4  ;;  %s5138_s11 = smov 128   ;;  %s124_s14 = int_to_ptr.vmem [resolvable:$true] %s123_s14 }
  0x18   :  { %s5139_s0 = smov 8  }
  0x19   :  { %129 = dma.hbm_to_vmem [thread:$0]  %s122_s26, 12288, %s124_s14, [#allocation11], %s5138_s11, %s5138_s11, %s5139_s0  }
  0x1a   :  { %5122 = dma.done.wait [#allocation3], 12288  }
  0x1b   :  { %5123 = vsyncadd [#allocation3], 4294955008 }
  0x1c   :  { %5124 = dma.done.wait [#allocation5], 49152  }
  0x1d   :  { %5125 = vsyncadd [#allocation5], 4294918144 }
  0x1e   :  { %5126 = dma.done.wait [#allocation8], 49152  }
  0x1f   :  { %5127 = vsyncadd [#allocation8], 4294918144 }
  0x20   :  { %5128 = dma.done.wait [#allocation11], 12288  }
  0x21   :  { %5129 = vsyncadd [#allocation11], 4294955008  ;;  %s6341_s21 = sld [smem:[#allocation16_spill]]  ;;  %v303_v6 = vld [vmem:[#allocation2 + $0x170] sm:$0xff]  ;;  %v301_v7 = vld [vmem:[#allocation2 + $0x160] sm:$0xff]  ;;  %vm168_vm0 = vcmask 523264  }
  0x22   :  { %322 = vmatpush.msra.mxu2 %v303_v6  ;;  %v299_v9 = vld [vmem:[#allocation2 + $0x150] sm:$0xff]  ;;  %v233_v10 = vld [vmem:[#allocation2 + $0xb8] sm:$0xff]  ;;  %s6342_s0 = sld [smem:[#allocation17_spill]]  ;;  %v231_v14 = vld [vmem:[#allocation2 + $0xa8] sm:$0xff]  ;;  %vm305_vm1 = vcmask 785408   ;;  %vm768_vm2 = vcmask 261120  }
  0x23   :  { %421 = vmatpush.msra.mxu1 %v233_v10  ;;  %v304_v15 = vld [vmem:[#allocation2 + $0x178] sm:$0xff]  ;;  %v297_v16 = vld [vmem:[#allocation2 + $0x140] sm:$0xff]  ;;  %v232_v17 = vld [vmem:[#allocation2 + $0xb0] sm:$0xff]  ;;  %s6343_s23 = sld [smem:[#allocation19_spill]]  ;;  %vm1596_vm3 = vcmask 130048   ;;  %vm2581_vm4 = vcmask 64512  }
  0x24   :  { %323 = vmatpush.msra.mxu2 %v301_v7  ;;  %v229_v18 = vld [vmem:[#allocation2 + $0x98] sm:$0xff]  ;;  %v302_v19 = vld [vmem:[#allocation2 + $0x168] sm:$0xff]  ;;  %v295_v20 = vld [vmem:[#allocation2 + $0x130] sm:$0xff] }
  0x25   :  { %422 = vmatpush.msra.mxu1 %v231_v14  ;;  %v230_v21 = vld [vmem:[#allocation2 + $0xa0] sm:$0xff]  ;;  %v227_v22 = vld [vmem:[#allocation2 + $0x88] sm:$0xff]  ;;  %v300_v23 = vld [vmem:[#allocation2 + $0x158] sm:$0xff] }
  0x26   :  { %324 = vmatpush.msra.mxu2 %v299_v9  ;;  %v293_v24 = vld [vmem:[#allocation2 + $0x120] sm:$0xff]  ;;  %v228_v25 = vld [vmem:[#allocation2 + $0x90] sm:$0xff]  ;;  %v225_v26 = vld [vmem:[#allocation2 + $0x78] sm:$0xff] }
  0x27   :  { %v5276_v0 = vld [vmem:[%s6341_s21 + $0x38] sm:$0xff]  ;;  %v5281_v1 = vld [vmem:[%s6341_s21 + $0x30] sm:$0xff]  ;;  %v5288_v2 = vld [vmem:[%s6341_s21 + $0x28] sm:$0xff]  ;;  %423 = vmatpush.msra.mxu1 %v229_v18 }
  0x28   :  { %259 = vmatpush.msra.mxu3 %v5276_v0  ;;  %189 = vmatpush.msra.mxu0 %v5276_v0  ;;  %v5295_v3 = vld [vmem:[%s6341_s21 + $0x20] sm:$0xff]  ;;  %v5302_v4 = vld [vmem:[%s6341_s21 + $0x18] sm:$0xff]  ;;  %v5309_v5 = vld [vmem:[%s6341_s21 + $0x10] sm:$0xff] }
  0x29   :  { %v5316_v8 = vld [vmem:[%s6341_s21 + $0x8] sm:$0xff]  ;;  %v5323_v11 = vld [vmem:[%s6341_s21] sm:$0xff]  ;;  %325 = vmatpush.msra.mxu2 %v297_v16  ;;  %v291_v28 = vld [vmem:[#allocation2 + $0x110] sm:$0xff]  ;;  %424 = vmatpush.msra.mxu1 %v227_v22 }
  0x2a   :  { %260 = vmatpush.msra.mxu3 %v5281_v1  ;;  %190 = vmatpush.msra.mxu0 %v5281_v1  ;;  %v4676_v12 = vld [vmem:[%s6342_s0 + $0x20] sm:$0xff]  ;;  %v298_v27 = vld [vmem:[#allocation2 + $0x148] sm:$0xff]  ;;  %v296_v31 = vld [vmem:[#allocation2 + $0x138] sm:$0xff] }
  0x2b   :  { %v164_v13 = vld [vmem:[%s6342_s0] sm:$0xff]  ;;  %326 = vmatpush.msra.mxu2 %v295_v20  ;;  %v4677_v29 = vld [vmem:[%s6342_s0 + $0x28] sm:$0xff]  ;;  %425 = vmatpush.msra.mxu1 %v225_v26  ;;  %v224_v36 = vld [vmem:[#allocation2 + $0x70] sm:$0xff] }
  0x2c   :  { %261 = vmatpush.msra.mxu3 %v5288_v2  ;;  %191 = vmatpush.msra.mxu0 %v5288_v2  ;;  %v165_v30 = vld [vmem:[%s6342_s0 + $0x8] sm:$0xff]  ;;  %v226_v32 = vld [vmem:[#allocation2 + $0x80] sm:$0xff]  ;;  %v287_v37 = vld [vmem:[#allocation2 + $0xf0] sm:$0xff] }
  0x2d   :  { %327 = vmatpush.msra.mxu2 %v293_v24  ;;  %v289_v33 = vld [vmem:[#allocation2 + $0x100] sm:$0xff]  ;;  %v223_v34 = vld [vmem:[#allocation2 + $0x68] sm:$0xff]  ;;  %v221_v38 = vld [vmem:[#allocation2 + $0x58] sm:$0xff] }
  0x2e   :  { %262 = vmatpush.msra.mxu3 %v5295_v3  ;;  %192 = vmatpush.msra.mxu0 %v5295_v3  ;;  %v294_v35 = vld [vmem:[#allocation2 + $0x128] sm:$0xff]  ;;  %v292_v39 = vld [vmem:[#allocation2 + $0x118] sm:$0xff]  ;;  %v222_v40 = vld [vmem:[#allocation2 + $0x60] sm:$0xff] }
  0x2f   :  { %328 = vmatpush.msra.mxu2 %v291_v28  ;;  %426 = vmatpush.msra.mxu1 %v223_v34  ;;  %v285_v41 = vld [vmem:[#allocation2 + $0xe0] sm:$0xff]  ;;  %v219_v42 = vld [vmem:[#allocation2 + $0x48] sm:$0xff]  ;;  %v220_v44 = vld [vmem:[#allocation2 + $0x50] sm:$0xff] }
  0x30   :  { %263 = vmatpush.msra.mxu3 %v5302_v4  ;;  %193 = vmatpush.msra.mxu0 %v5302_v4  ;;  %v290_v43 = vld [vmem:[#allocation2 + $0x108] sm:$0xff]  ;;  %v4678_v45 = vld [vmem:[%s6342_s0 + $0x30] sm:$0xff]  ;;  %v288_v47 = vld [vmem:[#allocation2 + $0xf8] sm:$0xff] }
  0x31   :  { %329 = vmatpush.msra.mxu2 %v289_v33  ;;  %427 = vmatpush.msra.mxu1 %v221_v38  ;;  %v166_v46 = vld [vmem:[%s6342_s0 + $0x10] sm:$0xff]  ;;  %v218_v49 = vld [vmem:[#allocation2 + $0x40] sm:$0xff]  ;;  %v286_v50 = vld [vmem:[#allocation2 + $0xe8] sm:$0xff] }
  0x32   :  { %264 = vmatpush.msra.mxu3 %v5309_v5  ;;  %194 = vmatpush.msra.mxu0 %v5309_v5  ;;  %v283_v48 = vld [vmem:[#allocation2 + $0xd0] sm:$0xff]  ;;  %v284_v51 = vld [vmem:[#allocation2 + $0xd8] sm:$0xff]  ;;  %v281_v54 = vld [vmem:[#allocation2 + $0xc0] sm:$0xff] }
  0x33   :  { %330 = vmatpush.msra.mxu2 %v287_v37  ;;  %428 = vmatpush.msra.mxu1 %v219_v42  ;;  %v4679_v52 = vld [vmem:[%s6342_s0 + $0x38] sm:$0xff]  ;;  %v282_v55 = vld [vmem:[#allocation2 + $0xc8] sm:$0xff]  ;;  %v216_v56 = vld [vmem:[#allocation2 + $0x30] sm:$0xff] }
  0x34   :  { %265 = vmatpush.msra.mxu3 %v5316_v8  ;;  %195 = vmatpush.msra.mxu0 %v5316_v8  ;;  %v167_v53 = vld [vmem:[%s6342_s0 + $0x18] sm:$0xff]  ;;  %v214_v58 = vld [vmem:[#allocation2 + $0x20] sm:$0xff]  ;;  %v215_v59 = vld [vmem:[#allocation2 + $0x28] sm:$0xff] }
  0x35   :  { %331 = vmatpush.msra.mxu2 %v285_v41  ;;  %v217_v57 = vld [vmem:[#allocation2 + $0x38] sm:$0xff]  ;;  %v212_v60 = vld [vmem:[#allocation2 + $0x10] sm:$0xff]  ;;  %v210_v62 = vld [vmem:[#allocation2] sm:$0xff] }
  0x36   :  { %266 = vmatpush.msra.mxu3 %v5323_v11  ;;  %196 = vmatpush.msra.mxu0 %v5323_v11  ;;  %v213_v61 = vld [vmem:[#allocation2 + $0x18] sm:$0xff]  ;;  %v211_v63 = vld [vmem:[#allocation2 + $0x8] sm:$0xff]  ;;  %v4700_v9 = vld [vmem:[%s6342_s0 + $0x40] sm:$0xff] }
  0x37   :  { %4680 = vmatmul.msk.f32.vlgmr.msra.gmra.mxu3 %vm168_vm0, %v4676_v12  ;;  %4672 = vmatmul.msk.f32.vlgmr.msra.gmra.mxu0 %vm168_vm0, %v164_v13  ;;  %v4717_v10 = vld [vmem:[%s6342_s0 + $0x68] sm:$0xff]  ;;  %v4718_v12 = vld [vmem:[%s6342_s0 + $0x70] sm:$0xff]  ;;  %v4719_v14 = vld [vmem:[%s6342_s0 + $0x78] sm:$0xff] }
  0x38   :  { %351 = vmatpush.msrb.mxu3 %v304_v15  ;;  %392 = vmatpush.msrb.mxu0 %v232_v17  ;;  %v4702_v13 = vld [vmem:[%s6342_s0 + $0x50] sm:$0xff]  ;;  %v4703_v15 = vld [vmem:[%s6342_s0 + $0x58] sm:$0xff]  ;;  %v513_v18 = vld [vmem:[#allocation2 + $0x220] sm:$0xff] }
  0x39   :  { %332 = vmatpush.msra.mxu2 %v283_v48  ;;  %429 = vmatpush.msra.mxu1 %v217_v57  ;;  %v515_v16 = vld [vmem:[#allocation2 + $0x230] sm:$0xff]  ;;  %v516_v17 = vld [vmem:[#allocation2 + $0x238] sm:$0xff]  ;;  %v509_v24 = vld [vmem:[#allocation2 + $0x200] sm:$0xff] }
  0x3a   :  { %352 = vmatpush.msrb.mxu3 %v302_v19  ;;  %393 = vmatpush.msrb.mxu0 %v230_v21  ;;  %v514_v19 = vld [vmem:[#allocation2 + $0x228] sm:$0xff]  ;;  %v664_v20 = vld [vmem:[#allocation2 + $0x2f0] sm:$0xff]  ;;  %v512_v22 = vld [vmem:[#allocation2 + $0x218] sm:$0xff] }
  0x3b   :  { %333 = vmatpush.msra.mxu2 %v281_v54  ;;  %430 = vmatpush.msra.mxu1 %v215_v59  ;;  %v511_v21 = vld [vmem:[#allocation2 + $0x210] sm:$0xff]  ;;  %v508_v28 = vld [vmem:[#allocation2 + $0x1f8] sm:$0xff]  ;;  %v501_v37 = vld [vmem:[#allocation2 + $0x1c0] sm:$0xff] }
  0x3c   :  { %353 = vmatpush.msrb.mxu3 %v300_v23  ;;  %394 = vmatpush.msrb.mxu0 %v228_v25  ;;  %v662_v23 = vld [vmem:[#allocation2 + $0x2e0] sm:$0xff]  ;;  %v510_v25 = vld [vmem:[#allocation2 + $0x208] sm:$0xff]  ;;  %v660_v26 = vld [vmem:[#allocation2 + $0x2d0] sm:$0xff] }
  0x3d   :  { %471 = vmatpush.msrb.mxu2 %v5276_v0  ;;  %431 = vmatpush.msra.mxu1 %v213_v61  ;;  %v503_v33 = vld [vmem:[#allocation2 + $0x1d0] sm:$0xff]  ;;  %v504_v34 = vld [vmem:[#allocation2 + $0x1d8] sm:$0xff]  ;;  %v502_v38 = vld [vmem:[#allocation2 + $0x1c8] sm:$0xff] }
  0x3e   :  { %354 = vmatpush.msrb.mxu3 %v298_v27  ;;  %395 = vmatpush.msrb.mxu0 %v226_v32  ;;  %v507_v27 = vld [vmem:[#allocation2 + $0x1f0] sm:$0xff]  ;;  %v500_v41 = vld [vmem:[#allocation2 + $0x1b8] sm:$0xff]  ;;  %v650_v42 = vld [vmem:[#allocation2 + $0x280] sm:$0xff] }
  0x3f   :  { %4681 = vmatmul.msk.f32.gmra.mxu3 %vm168_vm0, %v4677_v29  ;;  %4673 = vmatmul.msk.f32.gmra.mxu0 %vm168_vm0, %v165_v30  ;;  %v658_v29 = vld [vmem:[#allocation2 + $0x2c0] sm:$0xff]  ;;  %v656_v32 = vld [vmem:[#allocation2 + $0x2b0] sm:$0xff]  ;;  %v665_v57 = vld [vmem:[#allocation2 + $0x2f8] sm:$0xff] }
  0x40   :  { %355 = vmatpush.msrb.mxu3 %v296_v31  ;;  %396 = vmatpush.msrb.mxu0 %v224_v36  ;;  %v505_v30 = vld [vmem:[#allocation2 + $0x1e0] sm:$0xff]  ;;  %v506_v31 = vld [vmem:[#allocation2 + $0x1e8] sm:$0xff]  ;;  %v661_v59 = vld [vmem:[#allocation2 + $0x2d8] sm:$0xff] }
  0x41   :  { %472 = vmatpush.msrb.mxu2 %v5281_v1  ;;  %432 = vmatpush.msra.mxu1 %v211_v63  ;;  %v654_v36 = vld [vmem:[#allocation2 + $0x2a0] sm:$0xff]  ;;  %v659_v61 = vld [vmem:[#allocation2 + $0x2c8] sm:$0xff]  ;;  %v657_v63 = vld [vmem:[#allocation2 + $0x2b8] sm:$0xff] }
  0x42   :  { %356 = vmatpush.msrb.mxu3 %v294_v35  ;;  %397 = vmatpush.msrb.mxu0 %v222_v40  ;;  %v499_v40 = vld [vmem:[#allocation2 + $0x1b0] sm:$0xff]  ;;  %v642_v54 = vld [vmem:[#allocation2 + $0x240] sm:$0xff] }
  0x43   :  { %473 = vmatpush.msrb.mxu2 %v5288_v2  ;;  %620 = vmatpush.msrb.mxu1 %v5276_v0 }
  0x44   :  { %357 = vmatpush.msrb.mxu3 %v292_v39  ;;  %398 = vmatpush.msrb.mxu0 %v220_v44  ;;  %v652_v39 = vld [vmem:[#allocation2 + $0x290] sm:$0xff]  ;;  %v498_v44 = vld [vmem:[#allocation2 + $0x1a8] sm:$0xff] }
  0x45   :  { %474 = vmatpush.msrb.mxu2 %v5295_v3  ;;  %621 = vmatpush.msrb.mxu1 %v5281_v1 }
  0x46   :  { %358 = vmatpush.msrb.mxu3 %v290_v43  ;;  %399 = vmatpush.msrb.mxu0 %v218_v49  ;;  %v497_v43 = vld [vmem:[#allocation2 + $0x1a0] sm:$0xff] }
  0x47   :  { %4682 = vmatmul.msk.f32.gmra.mxu3 %vm168_vm0, %v4678_v45  ;;  %4674 = vmatmul.msk.f32.gmra.mxu0 %vm168_vm0, %v166_v46  ;;  %v648_v45 = vld [vmem:[#allocation2 + $0x270] sm:$0xff]  ;;  %v646_v49 = vld [vmem:[#allocation2 + $0x260] sm:$0xff] }
  0x48   :  { %359 = vmatpush.msrb.mxu3 %v288_v47  ;;  %400 = vmatpush.msrb.mxu0 %v216_v56  ;;  %v495_v46 = vld [vmem:[#allocation2 + $0x190] sm:$0xff]  ;;  %v496_v47 = vld [vmem:[#allocation2 + $0x198] sm:$0xff] }
  0x49   :  { %475 = vmatpush.msrb.mxu2 %v5302_v4  ;;  %622 = vmatpush.msrb.mxu1 %v5288_v2 }
  0x4a   :  { %360 = vmatpush.msrb.mxu3 %v286_v50  ;;  %401 = vmatpush.msrb.mxu0 %v214_v58  ;;  %v493_v50 = vld [vmem:[#allocation2 + $0x180] sm:$0xff]  ;;  %v663_v58 = vld [vmem:[#allocation2 + $0x2e8] sm:$0xff] }
  0x4b   :  { %476 = vmatpush.msrb.mxu2 %v5309_v5  ;;  %623 = vmatpush.msrb.mxu1 %v5295_v3 }
  0x4c   :  { %361 = vmatpush.msrb.mxu3 %v284_v51  ;;  %402 = vmatpush.msrb.mxu0 %v212_v60  ;;  %v494_v51 = vld [vmem:[#allocation2 + $0x188] sm:$0xff] }
  0x4d   :  { %477 = vmatpush.msrb.mxu2 %v5316_v8  ;;  %624 = vmatpush.msrb.mxu1 %v5302_v4 }
  0x4e   :  { %362 = vmatpush.msrb.mxu3 %v282_v55  ;;  %403 = vmatpush.msrb.mxu0 %v210_v62 }
  0x4f   :  { %4683 = vmatmul.msk.f32.gmra.mxu3 %vm168_vm0, %v4679_v52  ;;  %4675 = vmatmul.msk.f32.gmra.mxu0 %vm168_vm0, %v167_v53  ;;  %v644_v52 = vld [vmem:[#allocation2 + $0x250] sm:$0xff] }
  0x50   :  { %478 = vmatpush.msrb.mxu2 %v5323_v11  ;;  %625 = vmatpush.msrb.mxu1 %v5309_v5 }
  0x51   :  { %533 = vmatpush.msra.mxu3 %v515_v16  ;;  %562 = vmatpush.msra.mxu0 %v516_v17 }
  0x52   :  { %626 = vmatpush.msrb.mxu1 %v5316_v8  ;;  %v4716_v8 = vld [vmem:[%s6342_s0 + $0x60] sm:$0xff] }
  0x53   :  { %534 = vmatpush.msra.mxu3 %v513_v18  ;;  %563 = vmatpush.msra.mxu0 %v514_v19 }
  0x54   :  { %627 = vmatpush.msrb.mxu1 %v5323_v11  ;;  %v4701_v11 = vld [vmem:[%s6342_s0 + $0x48] sm:$0xff] }
  0x55   :  { %535 = vmatpush.msra.mxu3 %v511_v21  ;;  %564 = vmatpush.msra.mxu0 %v512_v22 }
  0x57   :  { %536 = vmatpush.msra.mxu3 %v509_v24  ;;  %565 = vmatpush.msra.mxu0 %v510_v25 }
  0x59   :  { %537 = vmatpush.msra.mxu3 %v507_v27  ;;  %566 = vmatpush.msra.mxu0 %v508_v28 }
  0x5b   :  { %538 = vmatpush.msra.mxu3 %v505_v30  ;;  %567 = vmatpush.msra.mxu0 %v506_v31 }
  0x5d   :  { %539 = vmatpush.msra.mxu3 %v503_v33  ;;  %568 = vmatpush.msra.mxu0 %v504_v34 }
  0x5f   :  { %540 = vmatpush.msra.mxu3 %v501_v37  ;;  %569 = vmatpush.msra.mxu0 %v502_v38  ;;  %v5468_v38 = vld [vmem:[%s6343_s23] sm:$0x3] }
  0x61   :  { %541 = vmatpush.msra.mxu3 %v499_v40  ;;  %570 = vmatpush.msra.mxu0 %v500_v41 }
  0x63   :  { %542 = vmatpush.msra.mxu3 %v497_v43  ;;  %571 = vmatpush.msra.mxu0 %v498_v44  ;;  %v746_v44 = vperm.slane %v5468_v38, 0 }
  0x65   :  { %543 = vmatpush.msra.mxu3 %v495_v46  ;;  %572 = vmatpush.msra.mxu0 %v496_v47 }
  0x67   :  { %544 = vmatpush.msra.mxu3 %v493_v50  ;;  %573 = vmatpush.msra.mxu0 %v494_v51 }
  0xb4   :  { %v198_v0 = vpop.f32.mrf.mxu0 }
  0xb5   :  { %4692 = vmatmul.msk.f32.vlgmr.msrb.gmra.mxu0 %vm305_vm1, %v198_v0  ;;  %4696 = vmatmul.msk.f32.vlgmr.msra.gmra.mxu1 %vm305_vm1, %v198_v0  ;;  %v655_v0 = vld [vmem:[#allocation2 + $0x2a8] sm:$0xff] }
  0xba   :  { %v268_v1 = vpop.f32.mrf.mxu3 }
  0xbb   :  { %4684 = vmatmul.msk.f32.vlgmr.msra.gmra.mxu2 %vm305_vm1, %v268_v1  ;;  %4688 = vmatmul.msk.f32.vlgmr.msrb.gmra.mxu3 %vm305_vm1, %v268_v1  ;;  %v653_v1 = vld [vmem:[#allocation2 + $0x298] sm:$0xff] }
  0xbc   :  { %v201_v2 = vpop.f32.mrf.mxu0  ;;  %682 = vmatpush.msra.mxu2 %v664_v20  ;;  %711 = vmatpush.msrb.mxu3 %v665_v57 }
  0xbd   :  { %4693 = vmatmul.msk.f32.gmra.mxu0 %vm305_vm1, %v201_v2  ;;  %4697 = vmatmul.msk.f32.gmra.mxu1 %vm305_vm1, %v201_v2 }
  0xbe   :  { %683 = vmatpush.msra.mxu2 %v662_v23  ;;  %712 = vmatpush.msrb.mxu3 %v663_v58 }
  0xc0   :  { %684 = vmatpush.msra.mxu2 %v660_v26  ;;  %713 = vmatpush.msrb.mxu3 %v661_v59 }
  0xc2   :  { %v271_v3 = vpop.f32.mrf.mxu3  ;;  %685 = vmatpush.msra.mxu2 %v658_v29  ;;  %714 = vmatpush.msrb.mxu3 %v659_v61  ;;  %v5490_v61 = vld [vmem:[%s6318_s4 + $0x10] sm:$0xff] }
  0xc3   :  { %4685 = vmatmul.msk.f32.gmra.mxu2 %vm305_vm1, %v271_v3  ;;  %4689 = vmatmul.msk.f32.gmra.mxu3 %vm305_vm1, %v271_v3  ;;  %v651_v3 = vld [vmem:[#allocation2 + $0x288] sm:$0xff] }
  0xc4   :  { %v204_v4 = vpop.f32.mrf.mxu0  ;;  %686 = vmatpush.msra.mxu2 %v656_v32  ;;  %715 = vmatpush.msrb.mxu3 %v657_v63 }
  0xc5   :  { %4694 = vmatmul.msk.f32.gmra.mxu0 %vm305_vm1, %v204_v4  ;;  %4698 = vmatmul.msk.f32.gmra.mxu1 %vm305_vm1, %v204_v4 }
  0xc6   :  { %687 = vmatpush.msra.mxu2 %v654_v36  ;;  %716 = vmatpush.msrb.mxu3 %v655_v0  ;;  %v5499_v0 = vld [vmem:[%s6318_s4 + $0x18] sm:$0xff] }
  0xc8   :  { %688 = vmatpush.msra.mxu2 %v652_v39  ;;  %717 = vmatpush.msrb.mxu3 %v653_v1  ;;  %v5504_v1 = vld [vmem:[%s6318_s4] sm:$0xff] }
  0xca   :  { %v274_v5 = vpop.f32.mrf.mxu3  ;;  %689 = vmatpush.msra.mxu2 %v650_v42  ;;  %718 = vmatpush.msrb.mxu3 %v651_v3  ;;  %v953_v3 = vld [vmem:[#allocation4 + $0x260] sm:$0xff] }
  0xcb   :  { %4686 = vmatmul.msk.f32.gmra.mxu2 %vm305_vm1, %v274_v5  ;;  %4690 = vmatmul.msk.f32.gmra.mxu3 %vm305_vm1, %v274_v5  ;;  %v649_v5 = vld [vmem:[#allocation2 + $0x278] sm:$0xff] }
  0xcc   :  { %v207_v6 = vpop.f32.mrf.mxu0  ;;  %690 = vmatpush.msra.mxu2 %v648_v45  ;;  %719 = vmatpush.msrb.mxu3 %v649_v5  ;;  %v951_v5 = vld [vmem:[#allocation4 + $0x250] sm:$0xff] }
  0xcd   :  { %4695 = vmatmul.msk.f32.gmra.mxu0 %vm305_vm1, %v207_v6  ;;  %4699 = vmatmul.msk.f32.gmra.mxu1 %vm305_vm1, %v207_v6  ;;  %v647_v6 = vld [vmem:[#allocation2 + $0x268] sm:$0xff] }
  0xce   :  { %691 = vmatpush.msra.mxu2 %v646_v49  ;;  %720 = vmatpush.msrb.mxu3 %v647_v6  ;;  %v956_v6 = vld [vmem:[#allocation4 + $0x278] sm:$0xff] }
  0xd0   :  { %692 = vmatpush.msra.mxu2 %v644_v52 }
  0xd2   :  { %v277_v7 = vpop.f32.mrf.mxu3  ;;  %693 = vmatpush.msra.mxu2 %v642_v54 }
  0xd3   :  { %4687 = vmatmul.msk.f32.gmra.mxu2 %vm305_vm1, %v277_v7  ;;  %4691 = vmatmul.msk.f32.gmra.mxu3 %vm305_vm1, %v277_v7  ;;  %v645_v7 = vld [vmem:[#allocation2 + $0x258] sm:$0xff] }
  0xd4   :  { %721 = vmatpush.msrb.mxu3 %v645_v7  ;;  %v954_v7 = vld [vmem:[#allocation4 + $0x268] sm:$0xff] }
  0xd5   :  { %4720 = vmatmul.msk.f32.vlgmr.msrb.gmra.mxu1 %vm168_vm0, %v4716_v8 }
  0xdb   :  { %4704 = vmatmul.msk.f32.vlgmr.msrb.gmra.mxu2 %vm168_vm0, %v4700_v9  ;;  %v643_v9 = vld [vmem:[#allocation2 + $0x248] sm:$0xff] }
  0xdc   :  { %722 = vmatpush.msrb.mxu3 %v643_v9  ;;  %v949_v9 = vld [vmem:[#allocation4 + $0x240] sm:$0xff] }
  0xdd   :  { %4721 = vmatmul.msk.f32.gmra.mxu1 %vm168_vm0, %v4717_v10 }
  0xe3   :  { %4705 = vmatmul.msk.f32.gmra.mxu2 %vm168_vm0, %v4701_v11 }
  0xe5   :  { %4722 = vmatmul.msk.f32.gmra.mxu1 %vm168_vm0, %v4718_v12 }
  0xeb   :  { %4706 = vmatmul.msk.f32.gmra.mxu2 %vm168_vm0, %v4702_v13 }
  0xed   :  { %4723 = vmatmul.msk.f32.gmra.mxu1 %vm168_vm0, %v4719_v14 }
  0xf3   :  { %4707 = vmatmul.msk.f32.gmra.mxu2 %vm168_vm0, %v4703_v15 }
 0x132   :  { %v5425_v35 = vpop.f32.mrf.mxu1  ;;  %v405_v19 = vpop.f32.mrf.mxu0 }
 0x13a   :  { %v5427_v48 = vpop.f32.mrf.mxu1  ;;  %v408_v21 = vpop.f32.mrf.mxu0 }
 0x13e   :  { %v5429_v53 = vpop.f32.mrf.mxu2  ;;  %v5453_v16 = vpop.f32.mrf.mxu3 }
 0x13f   :  { %v406_v34 = vadd.f32 %v405_v19, %v5429_v53  ;;  %v950_v19 = vld [vmem:[#allocation4 + $0x248] sm:$0xff] }
 0x142   :  { %v5431_v55 = vpop.f32.mrf.mxu1  ;;  %v411_v24 = vpop.f32.mrf.mxu0 }
 0x146   :  { %v5433_v56 = vpop.f32.mrf.mxu2  ;;  %v5455_v17 = vpop.f32.mrf.mxu3 }
 0x147   :  { %v409_v31 = vadd.f32 %v408_v21, %v5433_v56  ;;  %v5519_v21 = vld [vmem:[%s6318_s4 + $0x8] sm:$0xff] }
 0x14a   :  { %v5435_v60 = vpop.f32.mrf.mxu1  ;;  %v414_v27 = vpop.f32.mrf.mxu0 }
 0x14e   :  { %v341_v62 = vpop.f32.mrf.mxu2  ;;  %v5457_v18 = vpop.f32.mrf.mxu3 }
 0x14f   :  { %v412_v30 = vadd.f32 %v411_v24, %v341_v62  ;;  %v747_v24 = vperm.slane %v5468_v38, 1 }
 0x152   :  { %v629_v2 = vpop.f32.mrf.mxu1 }
 0x153   :  { %4724 = vmatmul.msk.f32.vlgmr.msra.gmra.mxu2 %vm305_vm1, %v629_v2 }
 0x156   :  { %v344_v4 = vpop.f32.mrf.mxu2  ;;  %v5459_v20 = vpop.f32.mrf.mxu3 }
 0x157   :  { %v415_v36 = vadd.f32 %v414_v27, %v344_v4  ;;  %v943_v27 = vld [vmem:[#allocation4 + $0x210] sm:$0xff] }
 0x15a   :  { %v632_v8 = vpop.f32.mrf.mxu1 }
 0x15b   :  { %4725 = vmatmul.msk.f32.gmra.mxu2 %vm305_vm1, %v632_v8 }
 0x15e   :  { %v480_v10 = vpop.f32.mrf.mxu2 }
 0x15f   :  { %4708 = vmatmul.msk.f32.vlgmr.msra.gmra.mxu3 %vm305_vm1, %v480_v10  ;;  %4712 = vmatmul.msk.f32.vlgmr.msra.gmra.mxu0 %vm305_vm1, %v480_v10  ;;  %v952_v10 = vld [vmem:[#allocation4 + $0x258] sm:$0xff] }
 0x162   :  { %v635_v11 = vpop.f32.mrf.mxu1 }
 0x163   :  { %4726 = vmatmul.msk.f32.gmra.mxu2 %vm305_vm1, %v635_v11 }
 0x166   :  { %v483_v12 = vpop.f32.mrf.mxu2 }
 0x167   :  { %4709 = vmatmul.msk.f32.gmra.mxu3 %vm305_vm1, %v483_v12  ;;  %4713 = vmatmul.msk.f32.gmra.mxu0 %vm305_vm1, %v483_v12  ;;  %v438_v12 = vadd.f32 %v5427_v48, %v5455_v17  ;;  %v945_v48 = vld [vmem:[#allocation4 + $0x220] sm:$0xff] }
 0x16a   :  { %v638_v13 = vpop.f32.mrf.mxu1 }
 0x16b   :  { %4727 = vmatmul.msk.f32.gmra.mxu2 %vm305_vm1, %v638_v13 }
 0x16e   :  { %v486_v14 = vpop.f32.mrf.mxu2 }
 0x16f   :  { %4710 = vmatmul.msk.f32.gmra.mxu3 %vm305_vm1, %v486_v14  ;;  %4714 = vmatmul.msk.f32.gmra.mxu0 %vm305_vm1, %v486_v14 }
 0x176   :  { %v489_v15 = vpop.f32.mrf.mxu2 }
 0x177   :  { %4711 = vmatmul.msk.f32.gmra.mxu3 %vm305_vm1, %v489_v15  ;;  %4715 = vmatmul.msk.f32.gmra.mxu0 %vm305_vm1, %v489_v15  ;;  %v947_v15 = vld [vmem:[#allocation4 + $0x230] sm:$0xff] }
 0x17f   :  { %4728 = vmatmul.msk.f32.vlgmr.msrb.gmra.mxu3 %vm305_vm1, %v629_v2  ;;  %v955_v2 = vld [vmem:[#allocation4 + $0x270] sm:$0xff] }
 0x187   :  { %4729 = vmatmul.msk.f32.gmra.mxu3 %vm305_vm1, %v632_v8  ;;  %v441_v8 = vadd.f32 %v5431_v55, %v5457_v18  ;;  %v435_v55 = vadd.f32 %v5425_v35, %v5453_v16 }
 0x18f   :  { %4730 = vmatmul.msk.f32.gmra.mxu3 %vm305_vm1, %v635_v11 }
 0x197   :  { %4731 = vmatmul.msk.f32.gmra.mxu3 %vm305_vm1, %v638_v13  ;;  %v444_v13 = vadd.f32 %v5435_v60, %v5459_v20  ;;  %v948_v60 = vld [vmem:[#allocation4 + $0x238] sm:$0xff] }
 0x1d6   :  { %v695_v22 = vpop.f32.mrf.mxu2 }
 0x1dc   :  { %v5462_v33 = vpop.f32.mrf.mxu0 }
 0x1dd   :  { %v588_v20 = vadd.f32 %v5462_v33, %v435_v55  ;;  %v939_v33 = vld [vmem:[#allocation4 + $0x1f0] sm:$0xff]  ;;  %v849_v55 = vld [vmem:[#allocation4 + $0xe0] sm:$0xff] }
 0x1de   :  { %v698_v25 = vpop.f32.mrf.mxu2 }
 0x1e2   :  { %v546_v23 = vpop.f32.mrf.mxu3 }
 0x1e3   :  { %v587_v41 = vadd.f32 %v546_v23, %v406_v34 }
 0x1e4   :  { %v578_v53 = vpop.f32.mrf.mxu0 }
 0x1e5   :  { %v736_v47 = vadd.f32 %v695_v22, %v587_v41  ;;  %v590_v18 = vadd.f32 %v578_v53, %v438_v12  ;;  %v970_v53 = vld [vmem:[#allocation4 + $0x2e8] sm:$0xff]  ;;  %v928_v12 = vld [vmem:[#allocation4 + $0x198] sm:$0xff] }
 0x1e6   :  { %v701_v28 = vpop.f32.mrf.mxu2 }
 0x1e7   :  { %v750_v56 = vadd.f32 %v746_v44, %v736_v47  ;;  %v972_v47 = vld [vmem:[#allocation4 + $0x2f8] sm:$0xff] }
 0x1e9   :  { %v5483_v59 = vmax.f32 %v750_v56, 0.0  ;;  %v967_v56 = vld [vmem:[#allocation4 + $0x2d0] sm:$0xff] }
 0x1ea   :  { %v549_v26 = vpop.f32.mrf.mxu3 }
 0x1eb   :  { %v589_v37 = vadd.f32 %v549_v26, %v409_v31  ;;  %v944_v31 = vld [vmem:[#allocation4 + $0x218] sm:$0xff] }
 0x1ec   :  { %v581_v63 = vpop.f32.mrf.mxu0 }
 0x1ed   :  { %v738_v45 = vadd.f32 %v698_v25, %v589_v37  ;;  %v592_v14 = vadd.f32 %v581_v63, %v441_v8  ;;  %v968_v63 = vld [vmem:[#allocation4 + $0x2d8] sm:$0xff]  ;;  %v930_v8 = vld [vmem:[#allocation4 + $0x1a8] sm:$0xff] }
 0x1ee   :  { %v704_v40 = vpop.f32.mrf.mxu2 }
 0x1ef   :  { %v752_v51 = vadd.f32 %v746_v44, %v738_v45  ;;  %v971_v45 = vld [vmem:[#allocation4 + $0x2f0] sm:$0xff] }
 0x1f1   :  { %v5479_v58 = vmax.f32 %v752_v51, 0.0  ;;  %v931_v51 = vld [vmem:[#allocation4 + $0x1b0] sm:$0xff] }
 0x1f2   :  { %v552_v29 = vpop.f32.mrf.mxu3 }
 0x1f3   :  { %v591_v32 = vadd.f32 %v552_v29, %v412_v30  ;;  %v941_v30 = vld [vmem:[#allocation4 + $0x200] sm:$0xff] }
 0x1f4   :  { %v584_v11 = vpop.f32.mrf.mxu0 }
 0x1f5   :  { %v740_v42 = vadd.f32 %v701_v28, %v591_v32  ;;  %v594_v22 = vadd.f32 %v584_v11, %v444_v13  ;;  %v946_v28 = vld [vmem:[#allocation4 + $0x228] sm:$0xff]  ;;  %v959_v11 = vld [vmem:[#allocation4 + $0x290] sm:$0xff] }
 0x1f6   :  { %v962_v13 = vld [vmem:[#allocation4 + $0x2a8] sm:$0xff] }
 0x1f7   :  { %v754_v49 = vadd.f32 %v746_v44, %v740_v42  ;;  %v935_v42 = vld [vmem:[#allocation4 + $0x1d0] sm:$0xff] }
 0x1f9   :  { %v5475_v57 = vmax.f32 %v754_v49, 0.0  ;;  %v936_v49 = vld [vmem:[#allocation4 + $0x1d8] sm:$0xff] }
 0x1fa   :  { %v555_v39 = vpop.f32.mrf.mxu3 }
 0x1fb   :  { %v593_v43 = vadd.f32 %v555_v39, %v415_v36  ;;  %v942_v36 = vld [vmem:[#allocation4 + $0x208] sm:$0xff]  ;;  %v937_v39 = vld [vmem:[#allocation4 + $0x1e0] sm:$0xff] }
 0x1fd   :  { %v742_v46 = vadd.f32 %v704_v40, %v593_v43  ;;  %v940_v40 = vld [vmem:[#allocation4 + $0x1f8] sm:$0xff]  ;;  %v938_v43 = vld [vmem:[#allocation4 + $0x1e8] sm:$0xff] }
 0x1ff   :  { %v756_v50 = vadd.f32 %v746_v44, %v742_v46  ;;  %v933_v46 = vld [vmem:[#allocation4 + $0x1c0] sm:$0xff] }
 0x201   :  { %v5471_v52 = vmax.f32 %v756_v50, 0.0  ;;  %v969_v50 = vld [vmem:[#allocation4 + $0x2e0] sm:$0xff] }
 0x202   :  { %v5473_v54 = vpop.f32.mrf.mxu3 }
 0x203   :  { %787 = vmatpush.msrb.mxu0 %v5471_v52  ;;  %890 = vmatpush.msrb.mxu2 %v5471_v52  ;;  %v737_v35 = vadd.f32 %v5473_v54, %v588_v20  ;;  %v934_v54 = vld [vmem:[#allocation4 + $0x1c8] sm:$0xff]  ;;  %v841_v20 = vld [vmem:[#allocation4 + $0xa0] sm:$0xff] }
 0x205   :  { %788 = vmatpush.msrb.mxu0 %v5475_v57  ;;  %891 = vmatpush.msrb.mxu2 %v5475_v57  ;;  %v751_v37 = vadd.f32 %v747_v24, %v737_v35  ;;  %v865_v35 = vld [vmem:[#allocation4 + $0x160] sm:$0xff] }
 0x207   :  { %789 = vmatpush.msrb.mxu0 %v5479_v58  ;;  %892 = vmatpush.msrb.mxu2 %v5479_v58  ;;  %v5538_v44 = vmax.f32 %v751_v37, 0.0  ;;  %v838_v37 = vld [vmem:[#allocation4 + $0x88] sm:$0xff] }
 0x209   :  { %790 = vmatpush.msrb.mxu0 %v5483_v59  ;;  %893 = vmatpush.msrb.mxu2 %v5483_v59 }
 0x20a   :  { %v727_v62 = vpop.f32.mrf.mxu3  ;;  %4738 = vmatmul.msk.f32.vlgmr.msrb.gmra.mxu2 %vm768_vm2, %v5490_v61  ;;  %4732 = vmatmul.msk.f32.vlgmr.msrb.gmra.mxu0 %vm768_vm2, %v5504_v1 }
 0x20b   :  { %979 = vmatpush.msra.mxu0 %v955_v2  ;;  %1025 = vmatpush.msra.mxu2 %v956_v6  ;;  %v739_v25 = vadd.f32 %v727_v62, %v590_v18  ;;  %v929_v62 = vld [vmem:[#allocation4 + $0x1a0] sm:$0xff]  ;;  %v932_v2 = vld [vmem:[#allocation4 + $0x1b8] sm:$0xff]  ;;  %v958_v18 = vld [vmem:[#allocation4 + $0x288] sm:$0xff] }
 0x20c   :  { %v852_v6 = vld [vmem:[#allocation4 + $0xf8] sm:$0xff] }
 0x20d   :  { %980 = vmatpush.msra.mxu0 %v953_v3  ;;  %1026 = vmatpush.msra.mxu2 %v954_v7  ;;  %v753_v32 = vadd.f32 %v747_v24, %v739_v25  ;;  %v965_v3 = vld [vmem:[#allocation4 + $0x2c0] sm:$0xff] }
 0x20e   :  { %v961_v7 = vld [vmem:[#allocation4 + $0x2a0] sm:$0xff] }
 0x20f   :  { %981 = vmatpush.msra.mxu0 %v951_v5  ;;  %1027 = vmatpush.msra.mxu2 %v952_v10  ;;  %v5534_v41 = vmax.f32 %v753_v32, 0.0  ;;  %v966_v5 = vld [vmem:[#allocation4 + $0x2c8] sm:$0xff]  ;;  %v837_v25 = vld [vmem:[#allocation4 + $0x80] sm:$0xff]  ;;  %v868_v32 = vld [vmem:[#allocation4 + $0x178] sm:$0xff] }
 0x210   :  { %v850_v10 = vld [vmem:[#allocation4 + $0xe8] sm:$0xff] }
 0x211   :  { %982 = vmatpush.msra.mxu0 %v949_v9  ;;  %1028 = vmatpush.msra.mxu2 %v950_v19  ;;  %v964_v9 = vld [vmem:[#allocation4 + $0x2b8] sm:$0xff] }
 0x212   :  { %v730_v4 = vpop.f32.mrf.mxu3  ;;  %4739 = vmatmul.msk.f32.gmra.mxu2 %vm768_vm2, %v5499_v0  ;;  %4733 = vmatmul.msk.f32.gmra.mxu0 %vm768_vm2, %v5519_v21  ;;  %v960_v19 = vld [vmem:[#allocation4 + $0x298] sm:$0xff] }
 0x213   :  { %v741_v23 = vadd.f32 %v730_v4, %v592_v14  ;;  %983 = vmatpush.msra.mxu0 %v947_v15  ;;  %1029 = vmatpush.msra.mxu2 %v948_v60  ;;  %v925_v4 = vld [vmem:[#allocation4 + $0x180] sm:$0xff]  ;;  %v848_v14 = vld [vmem:[#allocation4 + $0xd8] sm:$0xff] }
 0x214   :  { %v957_v15 = vld [vmem:[#allocation4 + $0x280] sm:$0xff] }
 0x215   :  { %984 = vmatpush.msra.mxu0 %v945_v48  ;;  %v755_v16 = vadd.f32 %v747_v24, %v741_v23  ;;  %1030 = vmatpush.msra.mxu2 %v946_v28  ;;  %v844_v23 = vld [vmem:[#allocation4 + $0xb8] sm:$0xff]  ;;  %v847_v48 = vld [vmem:[#allocation4 + $0xd0] sm:$0xff]  ;;  %v845_v60 = vld [vmem:[#allocation4 + $0xc0] sm:$0xff] }
 0x216   :  { %v833_v28 = vld [vmem:[#allocation4 + $0x60] sm:$0xff] }
 0x217   :  { %985 = vmatpush.msra.mxu0 %v943_v27  ;;  %1031 = vmatpush.msra.mxu2 %v944_v31  ;;  %v5530_v38 = vmax.f32 %v755_v16, 0.0  ;;  %v926_v27 = vld [vmem:[#allocation4 + $0x188] sm:$0xff]  ;;  %v840_v31 = vld [vmem:[#allocation4 + $0x98] sm:$0xff] }
 0x218   :  { %v842_v16 = vld [vmem:[#allocation4 + $0xa8] sm:$0xff] }
 0x219   :  { %986 = vmatpush.msra.mxu0 %v941_v30  ;;  %1032 = vmatpush.msra.mxu2 %v942_v36  ;;  %v863_v30 = vld [vmem:[#allocation4 + $0x150] sm:$0xff]  ;;  %v861_v36 = vld [vmem:[#allocation4 + $0x140] sm:$0xff] }
 0x21a   :  { %v733_v17 = vpop.f32.mrf.mxu3 }
 0x21b   :  { %v743_v26 = vadd.f32 %v733_v17, %v594_v22  ;;  %987 = vmatpush.msra.mxu0 %v939_v33  ;;  %1033 = vmatpush.msra.mxu2 %v940_v40  ;;  %v867_v22 = vld [vmem:[#allocation4 + $0x170] sm:$0xff]  ;;  %v829_v33 = vld [vmem:[#allocation4 + $0x40] sm:$0xff] }
 0x21c   :  { %v843_v17 = vld [vmem:[#allocation4 + $0xb0] sm:$0xff] }
 0x21d   :  { %v757_v29 = vadd.f32 %v747_v24, %v743_v26  ;;  %988 = vmatpush.msra.mxu0 %v937_v39  ;;  %1034 = vmatpush.msra.mxu2 %v938_v43  ;;  %v839_v24 = vld [vmem:[#allocation4 + $0x90] sm:$0xff]  ;;  %v866_v39 = vld [vmem:[#allocation4 + $0x168] sm:$0xff]  ;;  %v836_v43 = vld [vmem:[#allocation4 + $0x78] sm:$0xff] }
 0x21e   :  { %v835_v26 = vld [vmem:[#allocation4 + $0x70] sm:$0xff] }
 0x21f   :  { %v5528_v34 = vmax.f32 %v757_v29, 0.0  ;;  %989 = vmatpush.msra.mxu0 %v935_v42  ;;  %1035 = vmatpush.msra.mxu2 %v936_v49  ;;  %v831_v29 = vld [vmem:[#allocation4 + $0x50] sm:$0xff]  ;;  %v834_v49 = vld [vmem:[#allocation4 + $0x68] sm:$0xff] }
 0x220   :  { %v827_v40 = vld [vmem:[#allocation4 + $0x30] sm:$0xff] }
 0x221   :  { %810 = vmatpush.msra.mxu1 %v5528_v34  ;;  %913 = vmatpush.msra.mxu3 %v5528_v34  ;;  %v859_v42 = vld [vmem:[#allocation4 + $0x130] sm:$0xff] }
 0x222   :  { %990 = vmatpush.msra.mxu0 %v933_v46  ;;  %1036 = vmatpush.msra.mxu2 %v934_v54  ;;  %v825_v46 = vld [vmem:[#allocation4 + $0x20] sm:$0xff]  ;;  %v832_v54 = vld [vmem:[#allocation4 + $0x58] sm:$0xff] }
 0x223   :  { %811 = vmatpush.msra.mxu1 %v5530_v38  ;;  %914 = vmatpush.msra.mxu3 %v5530_v38 }
 0x224   :  { %991 = vmatpush.msra.mxu0 %v931_v51  ;;  %1037 = vmatpush.msra.mxu2 %v932_v2  ;;  %v823_v51 = vld [vmem:[#allocation4 + $0x10] sm:$0xff]  ;;  %v830_v2 = vld [vmem:[#allocation4 + $0x48] sm:$0xff] }
 0x225   :  { %812 = vmatpush.msra.mxu1 %v5534_v41  ;;  %915 = vmatpush.msra.mxu3 %v5534_v41 }
 0x226   :  { %992 = vmatpush.msra.mxu0 %v929_v62  ;;  %1038 = vmatpush.msra.mxu2 %v930_v8  ;;  %v821_v62 = vld [vmem:[#allocation4] sm:$0xff]  ;;  %v822_v8 = vld [vmem:[#allocation4 + $0x8] sm:$0xff] }
 0x227   :  { %813 = vmatpush.msra.mxu1 %v5538_v44  ;;  %916 = vmatpush.msra.mxu3 %v5538_v44 }
 0x228   :  { %4740 = vmatmul.msk.f32.vlgmr.msra.gmra.mxu3 %vm768_vm2, %v5490_v61  ;;  %4734 = vmatmul.msk.f32.vlgmr.msra.gmra.mxu1 %vm768_vm2, %v5504_v1  ;;  %v927_v61 = vld [vmem:[#allocation4 + $0x190] sm:$0xff] }
 0x229   :  { %1010 = vmatpush.msrb.mxu1 %v971_v45  ;;  %1056 = vmatpush.msrb.mxu3 %v972_v47  ;;  %v963_v1 = vld [vmem:[#allocation4 + $0x2b0] sm:$0xff]  ;;  %v864_v45 = vld [vmem:[#allocation4 + $0x158] sm:$0xff]  ;;  %v857_v47 = vld [vmem:[#allocation4 + $0x120] sm:$0xff] }
 0x22a   :  { %993 = vmatpush.msra.mxu0 %v927_v61  ;;  %1039 = vmatpush.msra.mxu2 %v928_v12 }
 0x22b   :  { %1011 = vmatpush.msrb.mxu1 %v969_v50  ;;  %1057 = vmatpush.msrb.mxu3 %v970_v53  ;;  %v862_v50 = vld [vmem:[#allocation4 + $0x148] sm:$0xff]  ;;  %v855_v53 = vld [vmem:[#allocation4 + $0x110] sm:$0xff] }
 0x22c   :  { %994 = vmatpush.msra.mxu0 %v925_v4  ;;  %1040 = vmatpush.msra.mxu2 %v926_v27  ;;  %v856_v4 = vld [vmem:[#allocation4 + $0x118] sm:$0xff]  ;;  %v1257_v27 = vld [vmem:[#allocation4 + $0x400] sm:$0xff] }
 0x22d   :  { %1012 = vmatpush.msrb.mxu1 %v967_v56  ;;  %1058 = vmatpush.msrb.mxu3 %v968_v63  ;;  %v860_v56 = vld [vmem:[#allocation4 + $0x138] sm:$0xff]  ;;  %v853_v63 = vld [vmem:[#allocation4 + $0x100] sm:$0xff] }
 0x22e   :  { %1123 = vmatpush.msrb.mxu0 %v852_v6  ;;  %1154 = vmatpush.msrb.mxu2 %v868_v32  ;;  %v854_v6 = vld [vmem:[#allocation4 + $0x108] sm:$0xff] }
 0x22f   :  { %1013 = vmatpush.msrb.mxu1 %v965_v3  ;;  %1059 = vmatpush.msrb.mxu3 %v966_v5  ;;  %v858_v3 = vld [vmem:[#allocation4 + $0x128] sm:$0xff] }
 0x230   :  { %4741 = vmatmul.msk.f32.gmra.mxu3 %vm768_vm2, %v5499_v0  ;;  %4735 = vmatmul.msk.f32.gmra.mxu1 %vm768_vm2, %v5519_v21  ;;  %v851_v0 = vld [vmem:[#allocation4 + $0xf0] sm:$0xff]  ;;  %v846_v21 = vld [vmem:[#allocation4 + $0xc8] sm:$0xff] }
 0x231   :  { %1014 = vmatpush.msrb.mxu1 %v963_v1  ;;  %1060 = vmatpush.msrb.mxu3 %v964_v9  ;;  %v828_v1 = vld [vmem:[#allocation4 + $0x38] sm:$0xff]  ;;  %v826_v5 = vld [vmem:[#allocation4 + $0x28] sm:$0xff] }
 0x232   :  { %1124 = vmatpush.msrb.mxu0 %v850_v10  ;;  %1155 = vmatpush.msrb.mxu2 %v866_v39  ;;  %v1246_v32 = vld [vmem:[#allocation4 + $0x3a8] sm:$0xff] }
 0x233   :  { %1015 = vmatpush.msrb.mxu1 %v961_v7  ;;  %1061 = vmatpush.msrb.mxu3 %v962_v13  ;;  %v824_v7 = vld [vmem:[#allocation4 + $0x18] sm:$0xff]  ;;  %v1242_v39 = vld [vmem:[#allocation4 + $0x388] sm:$0xff] }
 0x234   :  { %1125 = vmatpush.msrb.mxu0 %v848_v14  ;;  %1156 = vmatpush.msrb.mxu2 %v864_v45  ;;  %v1238_v45 = vld [vmem:[#allocation4 + $0x368] sm:$0xff] }
 0x235   :  { %1016 = vmatpush.msrb.mxu1 %v959_v11  ;;  %1062 = vmatpush.msrb.mxu3 %v960_v19  ;;  %v1272_v19 = vld [vmem:[#allocation4 + $0x478] sm:$0xff] }
 0x236   :  { %1126 = vmatpush.msrb.mxu0 %v846_v21  ;;  %1157 = vmatpush.msrb.mxu2 %v862_v50  ;;  %v1269_v21 = vld [vmem:[#allocation4 + $0x460] sm:$0xff]  ;;  %v1234_v50 = vld [vmem:[#allocation4 + $0x348] sm:$0xff] }
 0x237   :  { %1017 = vmatpush.msrb.mxu1 %v957_v15  ;;  %1063 = vmatpush.msrb.mxu3 %v958_v18  ;;  %v1267_v18 = vld [vmem:[#allocation4 + $0x450] sm:$0xff] }
 0x238   :  { %1127 = vmatpush.msrb.mxu0 %v844_v23  ;;  %1158 = vmatpush.msrb.mxu2 %v860_v56  ;;  %v1265_v23 = vld [vmem:[#allocation4 + $0x440] sm:$0xff] }
 0x239   :  { %1077 = vmatpush.msra.mxu1 %v851_v0  ;;  %1108 = vmatpush.msra.mxu3 %v867_v22  ;;  %v1271_v0 = vld [vmem:[#allocation4 + $0x470] sm:$0xff]  ;;  %v1268_v22 = vld [vmem:[#allocation4 + $0x458] sm:$0xff]  ;;  %v1229_v56 = vld [vmem:[#allocation4 + $0x320] sm:$0xff] }
 0x23a   :  { %1128 = vmatpush.msrb.mxu0 %v842_v16  ;;  %1159 = vmatpush.msrb.mxu2 %v858_v3  ;;  %v4751_v16 = vld [vmem:[%s6318_s4 + $0x28] sm:$0xff] }
 0x23b   :  { %1078 = vmatpush.msra.mxu1 %v849_v55  ;;  %1109 = vmatpush.msra.mxu3 %v865_v35  ;;  %v1270_v55 = vld [vmem:[#allocation4 + $0x468] sm:$0xff]  ;;  %v4750_v35 = vld [vmem:[%s6318_s4 + $0x20] sm:$0xff] }
 0x23c   :  { %1129 = vmatpush.msrb.mxu0 %v840_v31  ;;  %1160 = vmatpush.msrb.mxu2 %v856_v4  ;;  %v1245_v31 = vld [vmem:[#allocation4 + $0x3a0] sm:$0xff] }
 0x23d   :  { %1079 = vmatpush.msra.mxu1 %v847_v48  ;;  %1110 = vmatpush.msra.mxu3 %v863_v30  ;;  %v1266_v48 = vld [vmem:[#allocation4 + $0x448] sm:$0xff]  ;;  %v1248_v30 = vld [vmem:[#allocation4 + $0x3b8] sm:$0xff] }
 0x23e   :  { %1130 = vmatpush.msrb.mxu0 %v838_v37  ;;  %1161 = vmatpush.msrb.mxu2 %v854_v6  ;;  %v1241_v37 = vld [vmem:[#allocation4 + $0x380] sm:$0xff] }
 0x23f   :  { %1080 = vmatpush.msra.mxu1 %v845_v60  ;;  %1111 = vmatpush.msra.mxu3 %v861_v36  ;;  %v1263_v60 = vld [vmem:[#allocation4 + $0x430] sm:$0xff]  ;;  %v1244_v36 = vld [vmem:[#allocation4 + $0x398] sm:$0xff] }
 0x240   :  { %1131 = vmatpush.msrb.mxu0 %v836_v43  ;;  %v1237_v43 = vld [vmem:[#allocation4 + $0x360] sm:$0xff] }
 0x241   :  { %1081 = vmatpush.msra.mxu1 %v843_v17  ;;  %1112 = vmatpush.msra.mxu3 %v859_v42  ;;  %v1264_v17 = vld [vmem:[#allocation4 + $0x438] sm:$0xff] }
 0x242   :  { %1132 = vmatpush.msrb.mxu0 %v834_v49  ;;  %v1240_v42 = vld [vmem:[#allocation4 + $0x378] sm:$0xff]  ;;  %v1233_v49 = vld [vmem:[#allocation4 + $0x340] sm:$0xff] }
 0x243   :  { %1082 = vmatpush.msra.mxu1 %v841_v20  ;;  %1113 = vmatpush.msra.mxu3 %v857_v47  ;;  %v1261_v20 = vld [vmem:[#allocation4 + $0x420] sm:$0xff]  ;;  %v1236_v47 = vld [vmem:[#allocation4 + $0x358] sm:$0xff] }
 0x244   :  { %1133 = vmatpush.msrb.mxu0 %v832_v54  ;;  %v1232_v54 = vld [vmem:[#allocation4 + $0x338] sm:$0xff] }
 0x245   :  { %1083 = vmatpush.msra.mxu1 %v839_v24  ;;  %1114 = vmatpush.msra.mxu3 %v855_v53  ;;  %v1262_v24 = vld [vmem:[#allocation4 + $0x428] sm:$0xff]  ;;  %v1231_v53 = vld [vmem:[#allocation4 + $0x330] sm:$0xff] }
 0x246   :  { %1134 = vmatpush.msrb.mxu0 %v830_v2  ;;  %v1228_v2 = vld [vmem:[#allocation4 + $0x318] sm:$0xff] }
 0x247   :  { %1084 = vmatpush.msra.mxu1 %v837_v25  ;;  %1115 = vmatpush.msra.mxu3 %v853_v63  ;;  %v1259_v25 = vld [vmem:[#allocation4 + $0x410] sm:$0xff] }
 0x248   :  { %1135 = vmatpush.msrb.mxu0 %v828_v1  ;;  %v1227_v63 = vld [vmem:[#allocation4 + $0x310] sm:$0xff]  ;;  %v1226_v1 = vld [vmem:[#allocation4 + $0x308] sm:$0xff] }
 0x249   :  { %1085 = vmatpush.msra.mxu1 %v835_v26  ;;  %v1260_v26 = vld [vmem:[#allocation4 + $0x418] sm:$0xff] }
 0x24a   :  { %1136 = vmatpush.msrb.mxu0 %v826_v5 }
 0x24b   :  { %1086 = vmatpush.msra.mxu1 %v833_v28  ;;  %v1258_v28 = vld [vmem:[#allocation4 + $0x408] sm:$0xff] }
 0x24c   :  { %1137 = vmatpush.msrb.mxu0 %v824_v7 }
 0x24d   :  { %1087 = vmatpush.msra.mxu1 %v831_v29  ;;  %v1249_v29 = vld [vmem:[#allocation4 + $0x3c0] sm:$0xff] }
 0x24e   :  { %1138 = vmatpush.msrb.mxu0 %v822_v8 }
 0x24f   :  { %1088 = vmatpush.msra.mxu1 %v829_v33  ;;  %v1243_v33 = vld [vmem:[#allocation4 + $0x390] sm:$0xff] }
 0x251   :  { %1089 = vmatpush.msra.mxu1 %v827_v40  ;;  %v1239_v40 = vld [vmem:[#allocation4 + $0x370] sm:$0xff] }
 0x253   :  { %1090 = vmatpush.msra.mxu1 %v825_v46  ;;  %v1235_v46 = vld [vmem:[#allocation4 + $0x350] sm:$0xff] }
 0x255   :  { %1091 = vmatpush.msra.mxu1 %v823_v51 }
 0x257   :  { %1092 = vmatpush.msra.mxu1 %v821_v62  ;;  %v1230_v62 = vld [vmem:[#allocation4 + $0x328] sm:$0xff] }
 0x287   :  { %v792_v10 = vpop.f32.mrf.mxu0 }
 0x28d   :  { %v895_v61 = vpop.f32.mrf.mxu2 }
 0x28e   :  { %1041 = vmatmul.f32.vlgmr.msra.gmra.mxu2 %v895_v61  ;;  %995 = vmatmul.f32.vlgmr.msra.gmra.mxu0 %v895_v61  ;;  %v1225_v61 = vld [vmem:[#allocation4 + $0x300] sm:$0xff] }
 0x28f   :  { %v795_v11 = vpop.f32.mrf.mxu0 }
 0x295   :  { %v898_v9 = vpop.f32.mrf.mxu2 }
 0x296   :  { %1044 = vmatmul.f32.gmra.mxu2 %v898_v9  ;;  %998 = vmatmul.f32.gmra.mxu0 %v898_v9  ;;  %v1461_v9 = vld [vmem:[#allocation4 + $0x570] sm:$0xff] }
 0x29e   :  { %1139 = vmatmul.f32.vlgmr.msrb.gmra.mxu0 %v792_v10 }
 0x2a5   :  { %v815_v12 = vpop.f32.mrf.mxu1 }
 0x2a6   :  { %4748 = vmatmul.msk.f32.vlgmr.msrb.gmra.mxu2 %vm168_vm0, %v815_v12  ;;  %1142 = vmatmul.f32.gmra.mxu0 %v795_v11 }
 0x2ab   :  { %v918_v13 = vpop.f32.mrf.mxu3 }
 0x2ac   :  { %4742 = vmatmul.msk.f32.vlgmr.msrb.gmra.mxu1 %vm168_vm0, %v918_v13  ;;  %4744 = vmatmul.msk.f32.vlgmr.msrb.gmra.mxu3 %vm168_vm0, %v918_v13  ;;  %v1457_v13 = vld [vmem:[#allocation4 + $0x550] sm:$0xff] }
 0x2ad   :  { %1190 = vmatpush.msrb.mxu3 %v5471_v52  ;;  %1213 = vmatpush.msrb.mxu1 %v5528_v34  ;;  %v818_v14 = vpop.f32.mrf.mxu1 }
 0x2ae   :  { %4749 = vmatmul.msk.f32.gmra.mxu2 %vm168_vm0, %v818_v14 }
 0x2af   :  { %1191 = vmatpush.msrb.mxu3 %v5475_v57  ;;  %1214 = vmatpush.msrb.mxu1 %v5530_v38 }
 0x2b1   :  { %1192 = vmatpush.msrb.mxu3 %v5479_v58  ;;  %1215 = vmatpush.msrb.mxu1 %v5534_v41 }
 0x2b3   :  { %1193 = vmatpush.msrb.mxu3 %v5483_v59  ;;  %1216 = vmatpush.msrb.mxu1 %v5538_v44  ;;  %v921_v15 = vpop.f32.mrf.mxu3 }
 0x2b4   :  { %4743 = vmatmul.msk.f32.gmra.mxu1 %vm168_vm0, %v921_v15  ;;  %4745 = vmatmul.msk.f32.gmra.mxu3 %vm168_vm0, %v921_v15  ;;  %v1455_v15 = vld [vmem:[#allocation4 + $0x540] sm:$0xff] }
 0x2bc   :  { %1093 = vmatmul.f32.vlgmr.msra.gmra.mxu1 %v792_v10  ;;  %4746 = vmatmul.msk.f32.vlgmr.msra.gmra.mxu3 %vm168_vm0, %v815_v12  ;;  %v1462_v10 = vld [vmem:[#allocation4 + $0x578] sm:$0xff]  ;;  %v1460_v12 = vld [vmem:[#allocation4 + $0x568] sm:$0xff] }
 0x2bd   :  { %1310 = vmatpush.msra.mxu3 %v1271_v0  ;;  %1356 = vmatpush.msra.mxu1 %v1272_v19  ;;  %v1456_v0 = vld [vmem:[#allocation4 + $0x548] sm:$0xff] }
 0x2bf   :  { %1311 = vmatpush.msra.mxu3 %v1269_v21  ;;  %1357 = vmatpush.msra.mxu1 %v1270_v55 }
 0x2c1   :  { %1312 = vmatpush.msra.mxu3 %v1267_v18  ;;  %1358 = vmatpush.msra.mxu1 %v1268_v22 }
 0x2c3   :  { %1313 = vmatpush.msra.mxu3 %v1265_v23  ;;  %1359 = vmatpush.msra.mxu1 %v1266_v48  ;;  %v4760_v23 = vld [vmem:[%s6318_s4 + $0x30] sm:$0xff]  ;;  %v4761_v48 = vld [vmem:[%s6318_s4 + $0x38] sm:$0xff] }
 0x2c4   :  { %1096 = vmatmul.f32.gmra.mxu1 %v795_v11  ;;  %4747 = vmatmul.msk.f32.gmra.mxu3 %vm168_vm0, %v818_v14  ;;  %v1459_v11 = vld [vmem:[#allocation4 + $0x560] sm:$0xff]  ;;  %v1458_v14 = vld [vmem:[#allocation4 + $0x558] sm:$0xff] }
 0x2c5   :  { %1314 = vmatpush.msra.mxu3 %v1263_v60  ;;  %1360 = vmatpush.msra.mxu1 %v1264_v17  ;;  %v1453_v60 = vld [vmem:[#allocation4 + $0x530] sm:$0xff]  ;;  %v1454_v17 = vld [vmem:[#allocation4 + $0x538] sm:$0xff] }
 0x2c7   :  { %1315 = vmatpush.msra.mxu3 %v1261_v20  ;;  %1361 = vmatpush.msra.mxu1 %v1262_v24  ;;  %v1451_v20 = vld [vmem:[#allocation4 + $0x520] sm:$0xff]  ;;  %v1452_v24 = vld [vmem:[#allocation4 + $0x528] sm:$0xff] }
 0x2c9   :  { %1316 = vmatpush.msra.mxu3 %v1259_v25  ;;  %1362 = vmatpush.msra.mxu1 %v1260_v26  ;;  %v1449_v25 = vld [vmem:[#allocation4 + $0x510] sm:$0xff]  ;;  %v1450_v26 = vld [vmem:[#allocation4 + $0x518] sm:$0xff] }
 0x2cb   :  { %1317 = vmatpush.msra.mxu3 %v1257_v27  ;;  %1363 = vmatpush.msra.mxu1 %v1258_v28  ;;  %v1447_v27 = vld [vmem:[#allocation4 + $0x500] sm:$0xff]  ;;  %v1448_v28 = vld [vmem:[#allocation4 + $0x508] sm:$0xff] }
 0x2cc   :  { %4752 = vmatmul.msk.f32.vlgmr.msrb.gmra.mxu3 %vm768_vm2, %v4750_v35  ;;  %4754 = vmatmul.msk.f32.vlgmr.msrb.gmra.mxu1 %vm768_vm2, %v4750_v35  ;;  %v1445_v35 = vld [vmem:[#allocation4 + $0x4f0] sm:$0xff] }
 0x2cd   :  { %1396 = vmatpush.msrb.mxu3 %v5471_v52  ;;  %1419 = vmatpush.msrb.mxu1 %v5528_v34  ;;  %v1255_v52 = vld [vmem:[#allocation4 + $0x3f0] sm:$0xff]  ;;  %v1253_v34 = vld [vmem:[#allocation4 + $0x3e0] sm:$0xff] }
 0x2ce   :  { %1279 = vmatpush.msra.mxu2 %v1255_v52  ;;  %v1446_v52 = vld [vmem:[#allocation4 + $0x4f8] sm:$0xff] }
 0x2cf   :  { %1397 = vmatpush.msrb.mxu3 %v5475_v57  ;;  %1420 = vmatpush.msrb.mxu1 %v5530_v38  ;;  %v1256_v57 = vld [vmem:[#allocation4 + $0x3f8] sm:$0xff]  ;;  %v1251_v38 = vld [vmem:[#allocation4 + $0x3d0] sm:$0xff] }
 0x2d0   :  { %1325 = vmatpush.msra.mxu0 %v1256_v57  ;;  %1280 = vmatpush.msra.mxu2 %v1253_v34  ;;  %v1478_v57 = vld [vmem:[#allocation4 + $0x5f8] sm:$0xff]  ;;  %v1443_v34 = vld [vmem:[#allocation4 + $0x4e0] sm:$0xff] }
 0x2d1   :  { %1398 = vmatpush.msrb.mxu3 %v5479_v58  ;;  %1421 = vmatpush.msrb.mxu1 %v5534_v41  ;;  %v1254_v58 = vld [vmem:[#allocation4 + $0x3e8] sm:$0xff]  ;;  %v1252_v41 = vld [vmem:[#allocation4 + $0x3d8] sm:$0xff] }
 0x2d2   :  { %1326 = vmatpush.msra.mxu0 %v1254_v58  ;;  %1281 = vmatpush.msra.mxu2 %v1251_v38  ;;  %v1475_v58 = vld [vmem:[#allocation4 + $0x5e0] sm:$0xff]  ;;  %v1444_v38 = vld [vmem:[#allocation4 + $0x4e8] sm:$0xff] }
 0x2d3   :  { %1399 = vmatpush.msrb.mxu3 %v5483_v59  ;;  %1422 = vmatpush.msrb.mxu1 %v5538_v44  ;;  %v1250_v59 = vld [vmem:[#allocation4 + $0x3c8] sm:$0xff]  ;;  %v1247_v44 = vld [vmem:[#allocation4 + $0x3b0] sm:$0xff] }
 0x2d4   :  { %4753 = vmatmul.msk.f32.gmra.mxu3 %vm768_vm2, %v4751_v16  ;;  %4755 = vmatmul.msk.f32.gmra.mxu1 %vm768_vm2, %v4751_v16  ;;  %v1477_v16 = vld [vmem:[#allocation4 + $0x5f0] sm:$0xff] }
 0x2d5   :  { %1327 = vmatpush.msra.mxu0 %v1252_v41  ;;  %1282 = vmatpush.msra.mxu2 %v1249_v29  ;;  %v1476_v41 = vld [vmem:[#allocation4 + $0x5e8] sm:$0xff]  ;;  %v1441_v29 = vld [vmem:[#allocation4 + $0x4d0] sm:$0xff] }
 0x2d7   :  { %1328 = vmatpush.msra.mxu0 %v1250_v59  ;;  %1283 = vmatpush.msra.mxu2 %v1247_v44  ;;  %v1473_v59 = vld [vmem:[#allocation4 + $0x5d0] sm:$0xff]  ;;  %v1442_v44 = vld [vmem:[#allocation4 + $0x4d8] sm:$0xff] }
 0x2d9   :  { %1329 = vmatpush.msra.mxu0 %v1248_v30  ;;  %1284 = vmatpush.msra.mxu2 %v1245_v31  ;;  %v1474_v30 = vld [vmem:[#allocation4 + $0x5d8] sm:$0xff]  ;;  %v1439_v31 = vld [vmem:[#allocation4 + $0x4c0] sm:$0xff] }
 0x2db   :  { %1330 = vmatpush.msra.mxu0 %v1246_v32  ;;  %1285 = vmatpush.msra.mxu2 %v1243_v33  ;;  %v1471_v32 = vld [vmem:[#allocation4 + $0x5c0] sm:$0xff]  ;;  %v1440_v33 = vld [vmem:[#allocation4 + $0x4c8] sm:$0xff] }
 0x2dd   :  { %1331 = vmatpush.msra.mxu0 %v1244_v36  ;;  %1286 = vmatpush.msra.mxu2 %v1241_v37  ;;  %v1472_v36 = vld [vmem:[#allocation4 + $0x5c8] sm:$0xff]  ;;  %v1437_v37 = vld [vmem:[#allocation4 + $0x4b0] sm:$0xff] }
 0x2df   :  { %1332 = vmatpush.msra.mxu0 %v1242_v39  ;;  %1287 = vmatpush.msra.mxu2 %v1239_v40  ;;  %v1469_v39 = vld [vmem:[#allocation4 + $0x5b0] sm:$0xff]  ;;  %v1438_v40 = vld [vmem:[#allocation4 + $0x4b8] sm:$0xff] }
 0x2e1   :  { %1333 = vmatpush.msra.mxu0 %v1240_v42  ;;  %1288 = vmatpush.msra.mxu2 %v1237_v43  ;;  %v1470_v42 = vld [vmem:[#allocation4 + $0x5b8] sm:$0xff]  ;;  %v1435_v43 = vld [vmem:[#allocation4 + $0x4a0] sm:$0xff] }
 0x2e3   :  { %1334 = vmatpush.msra.mxu0 %v1238_v45  ;;  %1289 = vmatpush.msra.mxu2 %v1235_v46  ;;  %v1467_v45 = vld [vmem:[#allocation4 + $0x5a0] sm:$0xff]  ;;  %v1436_v46 = vld [vmem:[#allocation4 + $0x4a8] sm:$0xff] }
 0x2e5   :  { %1335 = vmatpush.msra.mxu0 %v1236_v47  ;;  %1290 = vmatpush.msra.mxu2 %v1233_v49  ;;  %v1468_v47 = vld [vmem:[#allocation4 + $0x5a8] sm:$0xff]  ;;  %v1433_v49 = vld [vmem:[#allocation4 + $0x490] sm:$0xff] }
 0x2e7   :  { %1336 = vmatpush.msra.mxu0 %v1234_v50  ;;  %1291 = vmatpush.msra.mxu2 %v1231_v53  ;;  %v1465_v50 = vld [vmem:[#allocation4 + $0x590] sm:$0xff]  ;;  %v1434_v53 = vld [vmem:[#allocation4 + $0x498] sm:$0xff] }
 0x2e9   :  { %1337 = vmatpush.msra.mxu0 %v1232_v54  ;;  %1292 = vmatpush.msra.mxu2 %v1229_v56  ;;  %v1466_v54 = vld [vmem:[#allocation4 + $0x598] sm:$0xff]  ;;  %v1431_v56 = vld [vmem:[#allocation4 + $0x480] sm:$0xff] }
 0x2eb   :  { %1338 = vmatpush.msra.mxu0 %v1230_v62  ;;  %1293 = vmatpush.msra.mxu2 %v1227_v63  ;;  %v1463_v62 = vld [vmem:[#allocation4 + $0x580] sm:$0xff]  ;;  %v1432_v63 = vld [vmem:[#allocation4 + $0x488] sm:$0xff] }
 0x2ed   :  { %1339 = vmatpush.msra.mxu0 %v1228_v2  ;;  %1294 = vmatpush.msra.mxu2 %v1225_v61  ;;  %v1464_v2 = vld [vmem:[#allocation4 + $0x588] sm:$0xff] }
 0x2ef   :  { %1340 = vmatpush.msra.mxu0 %v1226_v1  ;;  %1485 = vmatpush.msrb.mxu2 %v1461_v9 }
 0x2f1   :  { %1531 = vmatpush.msrb.mxu0 %v1462_v10  ;;  %1486 = vmatpush.msrb.mxu2 %v1459_v11 }
 0x2f3   :  { %1532 = vmatpush.msrb.mxu0 %v1460_v12  ;;  %1487 = vmatpush.msrb.mxu2 %v1457_v13 }
 0x2f5   :  { %1533 = vmatpush.msrb.mxu0 %v1458_v14  ;;  %1488 = vmatpush.msrb.mxu2 %v1455_v15 }
 0x2f7   :  { %1534 = vmatpush.msrb.mxu0 %v1456_v0  ;;  %1489 = vmatpush.msrb.mxu2 %v1453_v60 }
 0x2f9   :  { %1535 = vmatpush.msrb.mxu0 %v1454_v17  ;;  %1490 = vmatpush.msrb.mxu2 %v1451_v20 }
 0x2fb   :  { %1536 = vmatpush.msrb.mxu0 %v1452_v24  ;;  %1491 = vmatpush.msrb.mxu2 %v1449_v25 }
 0x2fd   :  { %1537 = vmatpush.msrb.mxu0 %v1450_v26  ;;  %1492 = vmatpush.msrb.mxu2 %v1447_v27 }
 0x2ff   :  { %1538 = vmatpush.msrb.mxu0 %v1448_v28  ;;  %1493 = vmatpush.msrb.mxu2 %v1445_v35 }
 0x301   :  { %1539 = vmatpush.msrb.mxu0 %v1446_v52  ;;  %1494 = vmatpush.msrb.mxu2 %v1443_v34  ;;  %v1764_v52 = vld [vmem:[#allocation6 + $0x270] sm:$0xff] }
 0x303   :  { %1540 = vmatpush.msrb.mxu0 %v1444_v38  ;;  %1495 = vmatpush.msrb.mxu2 %v1441_v29  ;;  %v1780_v38 = vld [vmem:[#allocation6 + $0x2f0] sm:$0xff] }
 0x304   :  { %v1760_v29 = vld [vmem:[#allocation6 + $0x250] sm:$0xff] }
 0x305   :  { %1541 = vmatpush.msrb.mxu0 %v1442_v44  ;;  %1496 = vmatpush.msrb.mxu2 %v1439_v31 }
 0x307   :  { %1542 = vmatpush.msrb.mxu0 %v1440_v33  ;;  %1497 = vmatpush.msrb.mxu2 %v1437_v37 }
 0x309   :  { %1543 = vmatpush.msrb.mxu0 %v1438_v40  ;;  %1498 = vmatpush.msrb.mxu2 %v1435_v43  ;;  %v1774_v40 = vld [vmem:[#allocation6 + $0x2c0] sm:$0xff] }
 0x30b   :  { %1544 = vmatpush.msrb.mxu0 %v1436_v46  ;;  %1499 = vmatpush.msrb.mxu2 %v1433_v49  ;;  %v996_v15 = vpop.f32.mrf.mxu0 }
 0x30d   :  { %1545 = vmatpush.msrb.mxu0 %v1434_v53  ;;  %1500 = vmatpush.msrb.mxu2 %v1431_v56 }
 0x30f   :  { %1546 = vmatpush.msrb.mxu0 %v1432_v63  ;;  %v1754_v63 = vld [vmem:[#allocation6 + $0x220] sm:$0xff] }
 0x311   :  { %v1042_v0 = vpop.f32.mrf.mxu2 }
 0x329   :  { %v5586_v51 = vpop.f32.mrf.mxu1 }
 0x32a   :  { %v1020_v31 = vadd.f32 %v5586_v51, %v996_v15 }
 0x32f   :  { %v5588_v3 = vpop.f32.mrf.mxu3 }
 0x330   :  { %v1066_v25 = vadd.f32 %v5588_v3, %v1042_v0  ;;  %v1776_v3 = vld [vmem:[#allocation6 + $0x2d0] sm:$0xff]  ;;  %v1750_v0 = vld [vmem:[#allocation6 + $0x200] sm:$0xff] }
 0x331   :  { %v5590_v4 = vpop.f32.mrf.mxu1 }
 0x337   :  { %v5592_v5 = vpop.f32.mrf.mxu3 }
 0x339   :  { %v5594_v6 = vpop.f32.mrf.mxu1 }
 0x33a   :  { %v1095_v43 = vadd.f32 %v5594_v6, %v1020_v31  ;;  %v1736_v31 = vld [vmem:[#allocation6 + $0x190] sm:$0xff] }
 0x33f   :  { %v5596_v7 = vpop.f32.mrf.mxu3 }
 0x341   :  { %v5598_v8 = vpop.f32.mrf.mxu1 }
 0x347   :  { %v5600_v19 = vpop.f32.mrf.mxu3 }
 0x349   :  { %v1218_v21 = vpop.f32.mrf.mxu1 }
 0x34a   :  { %4756 = vmatmul.msk.f32.vlgmr.msra.gmra.mxu3 %vm168_vm0, %v1218_v21  ;;  %4758 = vmatmul.msk.f32.vlgmr.msra.gmra.mxu1 %vm168_vm0, %v1218_v21  ;;  %v999_v21 = vpop.f32.mrf.mxu0 }
 0x34b   :  { %1516 = vmatpush.msra.mxu3 %v1477_v16  ;;  %1562 = vmatpush.msra.mxu1 %v1478_v57  ;;  %v1762_v57 = vld [vmem:[#allocation6 + $0x260] sm:$0xff] }
 0x34d   :  { %1517 = vmatpush.msra.mxu3 %v1475_v58  ;;  %1563 = vmatpush.msra.mxu1 %v1476_v41  ;;  %v1778_v41 = vld [vmem:[#allocation6 + $0x2e0] sm:$0xff] }
 0x34f   :  { %v1195_v55 = vpop.f32.mrf.mxu3  ;;  %1518 = vmatpush.msra.mxu3 %v1473_v59  ;;  %1564 = vmatpush.msra.mxu1 %v1474_v30 }
 0x350   :  { %1295 = vmatmul.f32.vlgmr.msra.gmra.mxu2 %v1195_v55  ;;  %1341 = vmatmul.f32.vlgmr.msra.gmra.mxu0 %v1195_v55  ;;  %v1045_v55 = vpop.f32.mrf.mxu2 }
 0x351   :  { %v1221_v18 = vpop.f32.mrf.mxu1  ;;  %1519 = vmatpush.msra.mxu3 %v1471_v32  ;;  %1565 = vmatpush.msra.mxu1 %v1472_v36  ;;  %v1069_v27 = vadd.f32 %v5592_v5, %v1045_v55  ;;  %v1581_v5 = vld [vmem:[%s6320_s6] sm:$0x3] }
 0x352   :  { %4757 = vmatmul.msk.f32.gmra.mxu3 %vm168_vm0, %v1221_v18  ;;  %4759 = vmatmul.msk.f32.gmra.mxu1 %vm168_vm0, %v1221_v18  ;;  %v1140_v18 = vpop.f32.mrf.mxu0  ;;  %v1758_v36 = vld [vmem:[#allocation6 + $0x240] sm:$0xff] }
 0x353   :  { %1520 = vmatpush.msra.mxu3 %v1469_v39  ;;  %1566 = vmatpush.msra.mxu1 %v1470_v42  ;;  %v1141_v35 = vadd.f32 %v1140_v18, %v1066_v25  ;;  %v1023_v42 = vadd.f32 %v5590_v4, %v999_v21  ;;  %v1118_v4 = vadd.f32 %v5596_v7, %v1095_v43  ;;  %v1583_v7 = vperm.slane %v1581_v5, 0  ;;  %v1669_v43 = vld [vmem:[#allocation6 + $0xe8] sm:$0xff] }
 0x354   :  { %1785 = vmatpush.msra.mxu2 %v1764_v52  ;;  %1813 = vmatpush.msra.mxu0 %v1780_v38  ;;  %v1740_v38 = vld [vmem:[#allocation6 + $0x1b0] sm:$0xff] }
 0x355   :  { %1521 = vmatpush.msra.mxu3 %v1467_v45  ;;  %1567 = vmatpush.msra.mxu1 %v1468_v47  ;;  %v1756_v47 = vld [vmem:[#allocation6 + $0x230] sm:$0xff]  ;;  %v1098_v56 = vadd.f32 %v5598_v8, %v1023_v42  ;;  %v1759_v42 = vld [vmem:[#allocation6 + $0x248] sm:$0xff] }
 0x356   :  { %1786 = vmatpush.msra.mxu2 %v1762_v57  ;;  %1814 = vmatpush.msra.mxu0 %v1778_v41  ;;  %v1768_v8 = vld [vmem:[#allocation6 + $0x290] sm:$0xff]  ;;  %v1742_v57 = vld [vmem:[#allocation6 + $0x1c0] sm:$0xff] }
 0x357   :  { %v1198_v22 = vpop.f32.mrf.mxu3  ;;  %1522 = vmatpush.msra.mxu3 %v1465_v50  ;;  %1568 = vmatpush.msra.mxu1 %v1466_v54  ;;  %v1584_v50 = vperm.slane %v1581_v5, 1  ;;  %v1772_v54 = vld [vmem:[#allocation6 + $0x2b0] sm:$0xff] }
 0x358   :  { %1298 = vmatmul.f32.gmra.mxu2 %v1198_v22  ;;  %1344 = vmatmul.f32.gmra.mxu0 %v1198_v22  ;;  %v1163_v22 = vpop.f32.mrf.mxu2  ;;  %v1662_v41 = vld [vmem:[#allocation6 + $0xb0] sm:$0xff] }
 0x359   :  { %1523 = vmatpush.msra.mxu3 %v1463_v62  ;;  %1569 = vmatpush.msra.mxu1 %v1464_v2  ;;  %v1164_v59 = vadd.f32 %v1163_v22, %v1141_v35  ;;  %v1766_v22 = vld [vmem:[#allocation6 + $0x280] sm:$0xff]  ;;  %v1666_v35 = vld [vmem:[#allocation6 + $0xd0] sm:$0xff] }
 0x35a   :  { %4762 = vmatmul.msk.f32.vlgmr.msrb.gmra.mxu3 %vm768_vm2, %v4760_v23  ;;  %4764 = vmatmul.msk.f32.vlgmr.msrb.gmra.mxu1 %vm768_vm2, %v4760_v23  ;;  %v1143_v23 = vpop.f32.mrf.mxu0  ;;  %v1658_v5 = vld [vmem:[#allocation6 + $0x90] sm:$0xff] }
 0x35b   :  { %v1144_v34 = vadd.f32 %v1143_v23, %v1069_v27  ;;  %1787 = vmatpush.msra.mxu2 %v1760_v29  ;;  %1815 = vmatpush.msra.mxu0 %v1776_v3  ;;  %v1765_v29 = vld [vmem:[#allocation6 + $0x278] sm:$0xff]  ;;  %v1763_v3 = vld [vmem:[#allocation6 + $0x268] sm:$0xff] }
 0x35d   :  { %1788 = vmatpush.msra.mxu2 %v1758_v36  ;;  %1816 = vmatpush.msra.mxu0 %v1774_v40  ;;  %v1761_v36 = vld [vmem:[#allocation6 + $0x258] sm:$0xff]  ;;  %v1775_v40 = vld [vmem:[#allocation6 + $0x2c8] sm:$0xff] }
 0x35f   :  { %1789 = vmatpush.msra.mxu2 %v1756_v47  ;;  %1817 = vmatpush.msra.mxu0 %v1772_v54  ;;  %v1757_v47 = vld [vmem:[#allocation6 + $0x238] sm:$0xff]  ;;  %v1665_v54 = vld [vmem:[#allocation6 + $0xc8] sm:$0xff] }
 0x361   :  { %1790 = vmatpush.msra.mxu2 %v1754_v63  ;;  %v1753_v63 = vld [vmem:[#allocation6 + $0x218] sm:$0xff] }
 0x362   :  { %4763 = vmatmul.msk.f32.gmra.mxu3 %vm768_vm2, %v4761_v48  ;;  %4765 = vmatmul.msk.f32.gmra.mxu1 %vm768_vm2, %v4761_v48  ;;  %v1166_v48 = vpop.f32.mrf.mxu2 }
 0x363   :  { %v1167_v37 = vadd.f32 %v1166_v48, %v1144_v34  ;;  %v1664_v34 = vld [vmem:[#allocation6 + $0xc0] sm:$0xff] }
 0x3c7   :  { %v1365_v61 = vpop.f32.mrf.mxu1 }
 0x3cd   :  { %v1319_v1 = vpop.f32.mrf.mxu3  ;;  %v1342_v60 = vpop.f32.mrf.mxu0 }
 0x3ce   :  { %v1366_v58 = vadd.f32 %v1365_v61, %v1342_v60  ;;  %v1770_v61 = vld [vmem:[#allocation6 + $0x2a0] sm:$0xff] }
 0x3cf   :  { %v1368_v9 = vpop.f32.mrf.mxu1  ;;  %1818 = vmatpush.msra.mxu0 %v1770_v61  ;;  %v1595_v60 = vld [vmem:[%s6321_s7] sm:$0xff]  ;;  %v1747_v61 = vld [vmem:[#allocation6 + $0x1e8] sm:$0xff] }
 0x3d0   :  { %v1372_v39 = vadd.f32 %v1366_v58, %v1164_v59  ;;  %v4772_v58 = vld [vmem:[%s6321_s7 + $0x8] sm:$0xff]  ;;  %v1738_v59 = vld [vmem:[#allocation6 + $0x1a0] sm:$0xff] }
 0x3d1   :  { %1819 = vmatpush.msra.mxu0 %v1768_v8  ;;  %v1767_v8 = vld [vmem:[#allocation6 + $0x288] sm:$0xff] }
 0x3d3   :  { %v1296_v17 = vpop.f32.mrf.mxu2  ;;  %1820 = vmatpush.msra.mxu0 %v1766_v22  ;;  %v1657_v22 = vld [vmem:[#allocation6 + $0x88] sm:$0xff] }
 0x3d4   :  { %v1320_v45 = vadd.f32 %v1319_v1, %v1296_v17  ;;  %v1121_v1 = vadd.f32 %v5600_v19, %v1098_v56  ;;  %v1748_v19 = vld [vmem:[#allocation6 + $0x1f0] sm:$0xff] }
 0x3d5   :  { %v5616_v10 = vpop.f32.mrf.mxu3  ;;  %v1345_v20 = vpop.f32.mrf.mxu0  ;;  %v1670_v17 = vld [vmem:[#allocation6 + $0xf0] sm:$0xff] }
 0x3d6   :  { %v1369_v44 = vadd.f32 %v1368_v9, %v1345_v20  ;;  %v1746_v20 = vld [vmem:[#allocation6 + $0x1e0] sm:$0xff]  ;;  %v1650_v56 = vld [vmem:[#allocation6 + $0x50] sm:$0xff] }
 0x3d7   :  { %v1424_v11 = vpop.f32.mrf.mxu1 }
 0x3d8   :  { %4766 = vmatmul.msk.f32.vlgmr.msra.gmra.mxu3 %vm168_vm0, %v1424_v11  ;;  %4768 = vmatmul.msk.f32.vlgmr.msra.gmra.mxu1 %vm168_vm0, %v1424_v11  ;;  %v1374_v51 = vadd.f32 %v1369_v44, %v1167_v37  ;;  %v1752_v11 = vld [vmem:[#allocation6 + $0x210] sm:$0xff]  ;;  %v1660_v44 = vld [vmem:[#allocation6 + $0xa0] sm:$0xff]  ;;  %v1671_v37 = vld [vmem:[#allocation6 + $0xf8] sm:$0xff] }
 0x3d9   :  { %1791 = vmatpush.msra.mxu2 %v1752_v11  ;;  %v1741_v11 = vld [vmem:[#allocation6 + $0x1b8] sm:$0xff] }
 0x3db   :  { %v1299_v26 = vpop.f32.mrf.mxu2  ;;  %1792 = vmatpush.msra.mxu2 %v1750_v0  ;;  %v1659_v0 = vld [vmem:[#allocation6 + $0x98] sm:$0xff] }
 0x3dc   :  { %v1323_v62 = vadd.f32 %v5616_v10, %v1299_v26  ;;  %v1668_v26 = vld [vmem:[#allocation6 + $0xe0] sm:$0xff] }
 0x3dd   :  { %v1401_v12 = vpop.f32.mrf.mxu3  ;;  %1793 = vmatpush.msra.mxu2 %v1748_v19  ;;  %v1735_v19 = vld [vmem:[#allocation6 + $0x188] sm:$0xff] }
 0x3de   :  { %1501 = vmatmul.f32.vlgmr.msrb.gmra.mxu2 %v1401_v12  ;;  %1547 = vmatmul.f32.vlgmr.msrb.gmra.mxu0 %v1401_v12  ;;  %v1371_v12 = vadd.f32 %v1320_v45, %v1118_v4  ;;  %v1373_v15 = vadd.f32 %v1323_v62, %v1121_v1  ;;  %v1654_v45 = vld [vmem:[#allocation6 + $0x70] sm:$0xff]  ;;  %v1769_v62 = vld [vmem:[#allocation6 + $0x298] sm:$0xff] }
 0x3df   :  { %v1427_v13 = vpop.f32.mrf.mxu1  ;;  %1868 = vmatpush.msrb.mxu0 %v1670_v17  ;;  %1794 = vmatpush.msra.mxu2 %v1746_v20  ;;  %v1663_v4 = vld [vmem:[#allocation6 + $0xb8] sm:$0xff] }
 0x3e0   :  { %4767 = vmatmul.msk.f32.gmra.mxu3 %vm168_vm0, %v1427_v13  ;;  %4769 = vmatmul.msk.f32.gmra.mxu1 %vm168_vm0, %v1427_v13  ;;  %v1745_v1 = vld [vmem:[#allocation6 + $0x1d8] sm:$0xff] }
 0x3e1   :  { %1869 = vmatpush.msrb.mxu0 %v1668_v26  ;;  %v1655_v17 = vld [vmem:[#allocation6 + $0x78] sm:$0xff]  ;;  %v1653_v26 = vld [vmem:[#allocation6 + $0x68] sm:$0xff] }
 0x3e2   :  { %v1687_v20 = vld [vmem:[#allocation6 + $0x178] sm:$0xff] }
 0x3e3   :  { %1870 = vmatpush.msrb.mxu0 %v1666_v35  ;;  %v1678_v35 = vld [vmem:[#allocation6 + $0x130] sm:$0xff] }
 0x3e5   :  { %v1404_v14 = vpop.f32.mrf.mxu3  ;;  %1871 = vmatpush.msrb.mxu0 %v1664_v34  ;;  %v1676_v34 = vld [vmem:[#allocation6 + $0x120] sm:$0xff] }
 0x3e6   :  { %1504 = vmatmul.f32.gmra.mxu2 %v1404_v14  ;;  %1550 = vmatmul.f32.gmra.mxu0 %v1404_v14 }
 0x3e7   :  { %1872 = vmatpush.msrb.mxu0 %v1662_v41  ;;  %v1674_v41 = vld [vmem:[#allocation6 + $0x110] sm:$0xff] }
 0x3e9   :  { %1873 = vmatpush.msrb.mxu0 %v1660_v44  ;;  %v1672_v44 = vld [vmem:[#allocation6 + $0x100] sm:$0xff] }
 0x3eb   :  { %1874 = vmatpush.msrb.mxu0 %v1658_v5  ;;  %v1675_v5 = vld [vmem:[#allocation6 + $0x118] sm:$0xff] }
 0x455   :  { %v1571_v24 = vpop.f32.mrf.mxu1 }
 0x45b   :  { %v1548_v28 = vpop.f32.mrf.mxu0  ;;  %v1525_v16 = vpop.f32.mrf.mxu3 }
 0x45c   :  { %v1572_v30 = vadd.f32 %v1571_v24, %v1548_v28  ;;  %v1744_v28 = vld [vmem:[#allocation6 + $0x1d0] sm:$0xff] }
 0x45d   :  { %v1574_v33 = vpop.f32.mrf.mxu1  ;;  %1795 = vmatpush.msra.mxu2 %v1744_v28  ;;  %v1685_v28 = vld [vmem:[#allocation6 + $0x168] sm:$0xff] }
 0x45e   :  { %v1578_v49 = vadd.f32 %v1572_v30, %v1372_v39  ;;  %v1779_v30 = vld [vmem:[#allocation6 + $0x2e8] sm:$0xff]  ;;  %v1656_v39 = vld [vmem:[#allocation6 + $0x80] sm:$0xff] }
 0x45f   :  { %1796 = vmatpush.msra.mxu2 %v1742_v57  ;;  %1875 = vmatpush.msrb.mxu0 %v1656_v39  ;;  %v1683_v57 = vld [vmem:[#allocation6 + $0x158] sm:$0xff] }
 0x460   :  { %v1588_v13 = vadd.f32 %v1584_v50, %v1578_v49  ;;  %v1652_v49 = vld [vmem:[#allocation6 + $0x60] sm:$0xff] }
 0x461   :  { %v1502_v32 = vpop.f32.mrf.mxu2  ;;  %1797 = vmatpush.msra.mxu2 %v1740_v38  ;;  %1876 = vmatpush.msrb.mxu0 %v1654_v45  ;;  %v1681_v38 = vld [vmem:[#allocation6 + $0x148] sm:$0xff]  ;;  %v2018_v45 = vld [vmem:[#allocation6 + $0x3c0] sm:$0xff] }
 0x462   :  { %v1526_v2 = vadd.f32 %v1525_v16, %v1502_v32  ;;  %v5636_v23 = vmax.f32 %v1588_v13, 0.0  ;;  %v1781_v16 = vld [vmem:[#allocation6 + $0x2f8] sm:$0xff]  ;;  %v1661_v13 = vld [vmem:[#allocation6 + $0xa8] sm:$0xff] }
 0x463   :  { %v1551_v46 = vpop.f32.mrf.mxu0  ;;  %v1528_v9 = vpop.f32.mrf.mxu3  ;;  %1798 = vmatpush.msra.mxu2 %v1738_v59  ;;  %v1777_v32 = vld [vmem:[#allocation6 + $0x2d8] sm:$0xff]  ;;  %1877 = vmatpush.msrb.mxu0 %v1652_v49 }
 0x464   :  { %v1575_v53 = vadd.f32 %v1574_v33, %v1551_v46  ;;  %v1577_v21 = vadd.f32 %v1526_v2, %v1371_v12  ;;  %v1734_v33 = vld [vmem:[#allocation6 + $0x180] sm:$0xff]  ;;  %v1773_v46 = vld [vmem:[#allocation6 + $0x2b8] sm:$0xff]  ;;  %v1751_v2 = vld [vmem:[#allocation6 + $0x208] sm:$0xff] }
 0x465   :  { %1799 = vmatpush.msra.mxu2 %v1736_v31  ;;  %1878 = vmatpush.msrb.mxu0 %v1650_v56  ;;  %v1648_v12 = vld [vmem:[#allocation6 + $0x40] sm:$0xff]  ;;  %v1679_v59 = vld [vmem:[#allocation6 + $0x138] sm:$0xff]  ;;  %v2039_v56 = vld [vmem:[#allocation6 + $0x468] sm:$0xff] }
 0x466   :  { %v1580_v6 = vadd.f32 %v1575_v53, %v1374_v51  ;;  %v1587_v24 = vadd.f32 %v1583_v7, %v1577_v21  ;;  %v1667_v51 = vld [vmem:[#allocation6 + $0xd8] sm:$0xff]  ;;  %v1755_v53 = vld [vmem:[#allocation6 + $0x228] sm:$0xff] }
 0x467   :  { %1800 = vmatpush.msra.mxu2 %v1734_v33  ;;  %1879 = vmatpush.msrb.mxu0 %v1648_v12  ;;  %v1737_v21 = vld [vmem:[#allocation6 + $0x198] sm:$0xff]  ;;  %v1673_v33 = vld [vmem:[#allocation6 + $0x108] sm:$0xff]  ;;  %v2030_v12 = vld [vmem:[#allocation6 + $0x420] sm:$0xff] }
 0x468   :  { %v1590_v14 = vadd.f32 %v1584_v50, %v1580_v6  ;;  %v5647_v52 = vmax.f32 %v1587_v24, 0.0  ;;  %v1771_v50 = vld [vmem:[#allocation6 + $0x2a8] sm:$0xff]  ;;  %v1749_v6 = vld [vmem:[#allocation6 + $0x1f8] sm:$0xff]  ;;  %v1640_v24 = vld [vmem:[#allocation6] sm:$0xff] }
 0x469   :  { %v1505_v10 = vpop.f32.mrf.mxu2  ;;  %1908 = vmatpush.msrb.mxu2 %v1671_v37  ;;  %v1643_v31 = vld [vmem:[#allocation6 + $0x18] sm:$0xff]  ;;  %v2024_v37 = vld [vmem:[#allocation6 + $0x3f0] sm:$0xff] }
 0x46a   :  { %v5634_v55 = vmax.f32 %v1590_v14, 0.0  ;;  %v1529_v18 = vadd.f32 %v1528_v9, %v1505_v10  ;;  %v1743_v9 = vld [vmem:[#allocation6 + $0x1c8] sm:$0xff]  ;;  %v1686_v10 = vld [vmem:[#allocation6 + $0x170] sm:$0xff]  ;;  %v2041_v49 = vld [vmem:[#allocation6 + $0x478] sm:$0xff] }
 0x46b   :  { %1909 = vmatpush.msrb.mxu2 %v1669_v43  ;;  %v1739_v14 = vld [vmem:[#allocation6 + $0x1a8] sm:$0xff] }
 0x46c   :  { %v1579_v48 = vadd.f32 %v1529_v18, %v1373_v15  ;;  %1634 = vmatpush.msrb.mxu1 %v5634_v55  ;;  %v1646_v15 = vld [vmem:[#allocation6 + $0x30] sm:$0xff]  ;;  %v1684_v18 = vld [vmem:[#allocation6 + $0x160] sm:$0xff] }
 0x46d   :  { %1910 = vmatpush.msrb.mxu2 %v1667_v51  ;;  %1880 = vmatpush.msrb.mxu0 %v1646_v15  ;;  %v2040_v51 = vld [vmem:[#allocation6 + $0x470] sm:$0xff]  ;;  %v2021_v15 = vld [vmem:[#allocation6 + $0x3d8] sm:$0xff] }
 0x46e   :  { %v1589_v25 = vadd.f32 %v1583_v7, %v1579_v48  ;;  %1635 = vmatpush.msrb.mxu1 %v5636_v23  ;;  %v1644_v7 = vld [vmem:[#allocation6 + $0x20] sm:$0xff]  ;;  %v1642_v48 = vld [vmem:[#allocation6 + $0x10] sm:$0xff] }
 0x46f   :  { %4771 = vmatmul.msk.f32.vlgmr.msrb.gmra.mxu1 %vm1596_vm3, %v1595_v60  ;;  %1911 = vmatpush.msrb.mxu2 %v1665_v54  ;;  %v2038_v54 = vld [vmem:[#allocation6 + $0x460] sm:$0xff] }
 0x470   :  { %v5644_v27 = vmax.f32 %v1589_v25, 0.0  ;;  %1727 = vmatpush.msra.mxu1 %v5634_v55  ;;  %1881 = vmatpush.msrb.mxu0 %v1644_v7  ;;  %v1680_v25 = vld [vmem:[#allocation6 + $0x140] sm:$0xff]  ;;  %v2017_v7 = vld [vmem:[#allocation6 + $0x3b8] sm:$0xff] }
 0x471   :  { %1912 = vmatpush.msrb.mxu2 %v1663_v4  ;;  %v2037_v4 = vld [vmem:[#allocation6 + $0x458] sm:$0xff] }
 0x472   :  { %1728 = vmatpush.msra.mxu1 %v5636_v23  ;;  %1614 = vmatpush.msrb.mxu3 %v5644_v27 }
 0x473   :  { %1913 = vmatpush.msrb.mxu2 %v1661_v13  ;;  %1882 = vmatpush.msrb.mxu0 %v1642_v48  ;;  %v2031_v13 = vld [vmem:[#allocation6 + $0x428] sm:$0xff] }
 0x474   :  { %1615 = vmatpush.msrb.mxu3 %v5647_v52  ;;  %1853 = vmatpush.msrb.mxu1 %v1781_v16  ;;  %v1651_v16 = vld [vmem:[#allocation6 + $0x58] sm:$0xff]  ;;  %v2011_v48 = vld [vmem:[#allocation6 + $0x388] sm:$0xff] }
 0x475   :  { %4770 = vmatmul.msk.f32.vlgmr.msrb.gmra.mxu3 %vm1596_vm3, %v1595_v60  ;;  %1914 = vmatpush.msrb.mxu2 %v1659_v0  ;;  %v1682_v60 = vld [vmem:[#allocation6 + $0x150] sm:$0xff]  ;;  %v2027_v0 = vld [vmem:[#allocation6 + $0x408] sm:$0xff] }
 0x476   :  { %1707 = vmatpush.msra.mxu3 %v5644_v27  ;;  %1854 = vmatpush.msrb.mxu1 %v1779_v30  ;;  %v1645_v30 = vld [vmem:[#allocation6 + $0x28] sm:$0xff] }
 0x477   :  { %4774 = vmatmul.msk.f32.vlgmr.msra.gmra.mxu1 %vm1596_vm3, %v4772_v58  ;;  %1915 = vmatpush.msrb.mxu2 %v1657_v22  ;;  %v2013_v22 = vld [vmem:[#allocation6 + $0x398] sm:$0xff] }
 0x478   :  { %1708 = vmatpush.msra.mxu3 %v5647_v52  ;;  %1855 = vmatpush.msrb.mxu1 %v1777_v32  ;;  %v1641_v32 = vld [vmem:[#allocation6 + $0x8] sm:$0xff] }
 0x479   :  { %1916 = vmatpush.msrb.mxu2 %v1655_v17  ;;  %1883 = vmatpush.msrb.mxu0 %v1640_v24  ;;  %v2009_v17 = vld [vmem:[#allocation6 + $0x378] sm:$0xff] }
 0x47a   :  { %1825 = vmatpush.msrb.mxu3 %v1765_v29  ;;  %1856 = vmatpush.msrb.mxu1 %v1775_v40  ;;  %v1647_v29 = vld [vmem:[#allocation6 + $0x38] sm:$0xff]  ;;  %v2022_v40 = vld [vmem:[#allocation6 + $0x3e0] sm:$0xff] }
 0x47b   :  { %1917 = vmatpush.msrb.mxu2 %v1653_v26  ;;  %v2005_v24 = vld [vmem:[#allocation6 + $0x358] sm:$0xff] }
 0x47c   :  { %1826 = vmatpush.msrb.mxu3 %v1763_v3  ;;  %1857 = vmatpush.msrb.mxu1 %v1773_v46  ;;  %v1677_v3 = vld [vmem:[#allocation6 + $0x128] sm:$0xff]  ;;  %v2016_v46 = vld [vmem:[#allocation6 + $0x3b0] sm:$0xff]  ;;  %v2001_v26 = vld [vmem:[#allocation6 + $0x338] sm:$0xff] }
 0x47d   :  { %4773 = vmatmul.msk.f32.vlgmr.msra.gmra.mxu3 %vm1596_vm3, %v4772_v58  ;;  %1918 = vmatpush.msrb.mxu2 %v1651_v16  ;;  %v1649_v58 = vld [vmem:[#allocation6 + $0x48] sm:$0xff]  ;;  %v1996_v16 = vld [vmem:[#allocation6 + $0x310] sm:$0xff] }
 0x47e   :  { %1827 = vmatpush.msrb.mxu3 %v1761_v36  ;;  %1858 = vmatpush.msrb.mxu1 %v1771_v50 }
 0x47f   :  { %1919 = vmatpush.msrb.mxu2 %v1649_v58  ;;  %v1995_v58 = vld [vmem:[#allocation6 + $0x308] sm:$0xff] }
 0x480   :  { %1828 = vmatpush.msrb.mxu3 %v1759_v42  ;;  %1859 = vmatpush.msrb.mxu1 %v1769_v62  ;;  %v2020_v42 = vld [vmem:[#allocation6 + $0x3d0] sm:$0xff] }
 0x481   :  { %1920 = vmatpush.msrb.mxu2 %v1647_v29  ;;  %v4779_v62 = vld [vmem:[%s6321_s7 + $0x10] sm:$0xff] }
 0x482   :  { %1829 = vmatpush.msrb.mxu3 %v1757_v47  ;;  %1860 = vmatpush.msrb.mxu1 %v1767_v8  ;;  %v2014_v47 = vld [vmem:[#allocation6 + $0x3a0] sm:$0xff]  ;;  %v2029_v8 = vld [vmem:[#allocation6 + $0x418] sm:$0xff] }
 0x483   :  { %1921 = vmatpush.msrb.mxu2 %v1645_v30 }
 0x484   :  { %1830 = vmatpush.msrb.mxu3 %v1755_v53  ;;  %1896 = vmatpush.msra.mxu1 %v1686_v10  ;;  %v2012_v53 = vld [vmem:[#allocation6 + $0x390] sm:$0xff]  ;;  %v2026_v10 = vld [vmem:[#allocation6 + $0x400] sm:$0xff] }
 0x485   :  { %1922 = vmatpush.msrb.mxu2 %v1643_v31  ;;  %v2202_v31 = vld [vmem:[#allocation6 + $0x568] sm:$0xff] }
 0x486   :  { %1831 = vmatpush.msrb.mxu3 %v1753_v63  ;;  %1897 = vmatpush.msra.mxu1 %v1684_v18  ;;  %v2036_v63 = vld [vmem:[#allocation6 + $0x450] sm:$0xff]  ;;  %v2015_v18 = vld [vmem:[#allocation6 + $0x3a8] sm:$0xff] }
 0x487   :  { %1923 = vmatpush.msrb.mxu2 %v1641_v32  ;;  %v2200_v32 = vld [vmem:[#allocation6 + $0x558] sm:$0xff] }
 0x488   :  { %1832 = vmatpush.msrb.mxu3 %v1751_v2  ;;  %1898 = vmatpush.msra.mxu1 %v1682_v60  ;;  %v2025_v2 = vld [vmem:[#allocation6 + $0x3f8] sm:$0xff]  ;;  %v2008_v60 = vld [vmem:[#allocation6 + $0x370] sm:$0xff] }
 0x48a   :  { %1833 = vmatpush.msrb.mxu3 %v1749_v6  ;;  %1899 = vmatpush.msra.mxu1 %v1680_v25  ;;  %v2034_v6 = vld [vmem:[#allocation6 + $0x440] sm:$0xff]  ;;  %v2000_v25 = vld [vmem:[#allocation6 + $0x330] sm:$0xff] }
 0x48c   :  { %1834 = vmatpush.msrb.mxu3 %v1747_v61  ;;  %1900 = vmatpush.msra.mxu1 %v1678_v35  ;;  %v2035_v61 = vld [vmem:[#allocation6 + $0x448] sm:$0xff] }
 0x48d   :  { %v1999_v35 = vld [vmem:[#allocation6 + $0x328] sm:$0xff] }
 0x48e   :  { %1835 = vmatpush.msrb.mxu3 %v1745_v1  ;;  %1901 = vmatpush.msra.mxu1 %v1676_v34  ;;  %v2032_v1 = vld [vmem:[#allocation6 + $0x430] sm:$0xff]  ;;  %v1994_v34 = vld [vmem:[#allocation6 + $0x300] sm:$0xff] }
 0x490   :  { %1836 = vmatpush.msrb.mxu3 %v1743_v9  ;;  %1902 = vmatpush.msra.mxu1 %v1674_v41  ;;  %v2033_v9 = vld [vmem:[#allocation6 + $0x438] sm:$0xff] }
 0x492   :  { %1837 = vmatpush.msrb.mxu3 %v1741_v11  ;;  %1903 = vmatpush.msra.mxu1 %v1672_v44  ;;  %v2023_v11 = vld [vmem:[#allocation6 + $0x3e8] sm:$0xff]  ;;  %v2204_v44 = vld [vmem:[#allocation6 + $0x578] sm:$0xff] }
 0x494   :  { %1838 = vmatpush.msrb.mxu3 %v1739_v14  ;;  %v2028_v14 = vld [vmem:[#allocation6 + $0x410] sm:$0xff] }
 0x496   :  { %1839 = vmatpush.msrb.mxu3 %v1737_v21  ;;  %v2019_v21 = vld [vmem:[#allocation6 + $0x3c8] sm:$0xff] }
 0x498   :  { %1840 = vmatpush.msrb.mxu3 %v1735_v19  ;;  %v2010_v19 = vld [vmem:[#allocation6 + $0x380] sm:$0xff] }
 0x49a   :  { %1936 = vmatpush.msra.mxu3 %v1687_v20  ;;  %v2007_v20 = vld [vmem:[#allocation6 + $0x368] sm:$0xff] }
 0x49c   :  { %1937 = vmatpush.msra.mxu3 %v1685_v28  ;;  %v1998_v28 = vld [vmem:[#allocation6 + $0x320] sm:$0xff] }
 0x49e   :  { %1938 = vmatpush.msra.mxu3 %v1683_v57  ;;  %v1997_v57 = vld [vmem:[#allocation6 + $0x318] sm:$0xff] }
 0x4a0   :  { %1939 = vmatpush.msra.mxu3 %v1681_v38 }
 0x4a2   :  { %1940 = vmatpush.msra.mxu3 %v1679_v59  ;;  %v2203_v59 = vld [vmem:[#allocation6 + $0x570] sm:$0xff] }
 0x4a4   :  { %1941 = vmatpush.msra.mxu3 %v1677_v3  ;;  %v2201_v3 = vld [vmem:[#allocation6 + $0x560] sm:$0xff] }
 0x4a6   :  { %1942 = vmatpush.msra.mxu3 %v1675_v5  ;;  %v2199_v5 = vld [vmem:[#allocation6 + $0x550] sm:$0xff] }
 0x4a8   :  { %1943 = vmatpush.msra.mxu3 %v1673_v33  ;;  %v2197_v33 = vld [vmem:[#allocation6 + $0x540] sm:$0xff] }
 0x4ec   :  { %v1637_v36 = vpop.f32.mrf.mxu1 }
 0x4f4   :  { %v1730_v39 = vpop.f32.mrf.mxu1 }
 0x4f5   :  { %4775 = vmatmul.msk.f32.vlgmr.msra.gmra.mxu0 %vm168_vm0, %v1730_v39  ;;  %4776 = vmatmul.msk.f32.vlgmr.msrb.gmra.mxu1 %vm168_vm0, %v1730_v39  ;;  %v2195_v39 = vld [vmem:[#allocation6 + $0x530] sm:$0xff] }
 0x4f6   :  { %1967 = vmatpush.msra.mxu0 %v5644_v27  ;;  %2045 = vmatpush.msrb.mxu1 %v2024_v37  ;;  %v4784_v37 = vld [vmem:[%s6321_s7 + $0x18] sm:$0xff] }
 0x4f8   :  { %1968 = vmatpush.msra.mxu0 %v5647_v52  ;;  %v1617_v43 = vpop.f32.mrf.mxu3  ;;  %2046 = vmatpush.msrb.mxu1 %v2022_v40  ;;  %v2196_v40 = vld [vmem:[#allocation6 + $0x538] sm:$0xff] }
 0x4fa   :  { %2047 = vmatpush.msrb.mxu1 %v2020_v42  ;;  %v2193_v42 = vld [vmem:[#allocation6 + $0x520] sm:$0xff] }
 0x4fc   :  { %2048 = vmatpush.msrb.mxu1 %v2018_v45  ;;  %v2191_v45 = vld [vmem:[#allocation6 + $0x510] sm:$0xff] }
 0x4fd   :  { %1884 = vmatmul.f32.vlgmr.msrb.gmra.mxu0 %v1617_v43  ;;  %4777 = vmatmul.msk.f32.vlgmr.msra.gmra.mxu1 %vm168_vm0, %v1637_v36 }
 0x4fe   :  { %1987 = vmatpush.msrb.mxu0 %v5634_v55  ;;  %2049 = vmatpush.msrb.mxu1 %v2016_v46  ;;  %v2192_v46 = vld [vmem:[#allocation6 + $0x518] sm:$0xff] }
 0x500   :  { %1988 = vmatpush.msrb.mxu0 %v5636_v23  ;;  %v1710_v50 = vpop.f32.mrf.mxu3  ;;  %2050 = vmatpush.msrb.mxu1 %v2014_v47  ;;  %v2189_v47 = vld [vmem:[#allocation6 + $0x500] sm:$0xff] }
 0x501   :  { %1801 = vmatmul.f32.vlgmr.msra.gmra.mxu2 %v1710_v50  ;;  %1841 = vmatmul.f32.vlgmr.msrb.gmra.mxu3 %v1710_v50  ;;  %v2188_v50 = vld [vmem:[#allocation6 + $0x4f8] sm:$0xff] }
 0x502   :  { %2073 = vmatpush.msrb.mxu3 %v2040_v51  ;;  %2113 = vmatpush.msra.mxu2 %v2041_v49  ;;  %v2190_v51 = vld [vmem:[#allocation6 + $0x508] sm:$0xff]  ;;  %v2187_v49 = vld [vmem:[#allocation6 + $0x4f0] sm:$0xff] }
 0x503   :  { %2051 = vmatpush.msrb.mxu1 %v2012_v53  ;;  %v2185_v53 = vld [vmem:[#allocation6 + $0x4e0] sm:$0xff] }
 0x504   :  { %2074 = vmatpush.msrb.mxu3 %v2038_v54  ;;  %2114 = vmatpush.msra.mxu2 %v2039_v56  ;;  %v2186_v54 = vld [vmem:[#allocation6 + $0x4e8] sm:$0xff]  ;;  %v2183_v56 = vld [vmem:[#allocation6 + $0x4d0] sm:$0xff] }
 0x505   :  { %4780 = vmatmul.msk.f32.vlgmr.msra.gmra.mxu0 %vm1596_vm3, %v4779_v62  ;;  %2052 = vmatpush.msrb.mxu1 %v2010_v19  ;;  %v2212_v19 = vld [vmem:[#allocation6 + $0x5b8] sm:$0xff] }
 0x506   :  { %2075 = vmatpush.msrb.mxu3 %v2036_v63  ;;  %2115 = vmatpush.msra.mxu2 %v2037_v4  ;;  %v2181_v63 = vld [vmem:[#allocation6 + $0x4c0] sm:$0xff]  ;;  %v2219_v4 = vld [vmem:[#allocation6 + $0x5f0] sm:$0xff] }
 0x507   :  { %2085 = vmatpush.msra.mxu0 %v2025_v2  ;;  %2053 = vmatpush.msrb.mxu1 %v2008_v60  ;;  %v2182_v2 = vld [vmem:[#allocation6 + $0x4c8] sm:$0xff] }
 0x508   :  { %2076 = vmatpush.msrb.mxu3 %v2034_v6  ;;  %2116 = vmatpush.msra.mxu2 %v2035_v61  ;;  %v2220_v6 = vld [vmem:[#allocation6 + $0x5f8] sm:$0xff]  ;;  %v2179_v61 = vld [vmem:[#allocation6 + $0x4b0] sm:$0xff]  ;;  %v2210_v60 = vld [vmem:[#allocation6 + $0x5a8] sm:$0xff] }
 0x509   :  { %1924 = vmatmul.f32.vlgmr.msrb.gmra.mxu2 %v1617_v43  ;;  %4778 = vmatmul.msk.f32.vlgmr.msra.gmra.mxu3 %vm168_vm0, %v1637_v36  ;;  %v2198_v36 = vld [vmem:[#allocation6 + $0x548] sm:$0xff] }
 0x50a   :  { %2077 = vmatpush.msrb.mxu3 %v2032_v1  ;;  %2117 = vmatpush.msra.mxu2 %v2033_v9  ;;  %v2194_v43 = vld [vmem:[#allocation6 + $0x528] sm:$0xff]  ;;  %v2217_v1 = vld [vmem:[#allocation6 + $0x5e0] sm:$0xff]  ;;  %v2180_v9 = vld [vmem:[#allocation6 + $0x4b8] sm:$0xff] }
 0x50b   :  { %2086 = vmatpush.msra.mxu0 %v2023_v11  ;;  %v2218_v11 = vld [vmem:[#allocation6 + $0x5e8] sm:$0xff] }
 0x50c   :  { %2078 = vmatpush.msrb.mxu3 %v2030_v12  ;;  %2118 = vmatpush.msra.mxu2 %v2031_v13  ;;  %v2177_v12 = vld [vmem:[#allocation6 + $0x4a0] sm:$0xff]  ;;  %v2215_v13 = vld [vmem:[#allocation6 + $0x5d0] sm:$0xff] }
 0x50d   :  { %4781 = vmatmul.msk.f32.vlgmr.msrb.gmra.mxu0 %vm1596_vm3, %v4779_v62  ;;  %v2184_v62 = vld [vmem:[#allocation6 + $0x4d8] sm:$0xff] }
 0x50e   :  { %2079 = vmatpush.msrb.mxu3 %v2028_v14  ;;  %2119 = vmatpush.msra.mxu2 %v2029_v8  ;;  %v2178_v14 = vld [vmem:[#allocation6 + $0x4a8] sm:$0xff]  ;;  %v2216_v8 = vld [vmem:[#allocation6 + $0x5d8] sm:$0xff] }
 0x50f   :  { %2087 = vmatpush.msra.mxu0 %v2021_v15  ;;  %v2175_v15 = vld [vmem:[#allocation6 + $0x490] sm:$0xff] }
 0x510   :  { %2080 = vmatpush.msrb.mxu3 %v2026_v10  ;;  %2120 = vmatpush.msra.mxu2 %v2027_v0  ;;  %v2213_v10 = vld [vmem:[#allocation6 + $0x5c0] sm:$0xff]  ;;  %v2176_v0 = vld [vmem:[#allocation6 + $0x498] sm:$0xff] }
 0x511   :  { %2088 = vmatpush.msra.mxu0 %v2019_v21  ;;  %v2214_v21 = vld [vmem:[#allocation6 + $0x5c8] sm:$0xff] }
 0x512   :  { %2146 = vmatpush.msra.mxu3 %v5644_v27  ;;  %2166 = vmatpush.msrb.mxu2 %v5634_v55  ;;  %v2006_v27 = vld [vmem:[#allocation6 + $0x360] sm:$0xff]  ;;  %v2004_v55 = vld [vmem:[#allocation6 + $0x350] sm:$0xff] }
 0x513   :  { %2089 = vmatpush.msra.mxu0 %v2017_v7  ;;  %2054 = vmatpush.msrb.mxu1 %v2006_v27  ;;  %v2173_v7 = vld [vmem:[#allocation6 + $0x480] sm:$0xff]  ;;  %v2208_v27 = vld [vmem:[#allocation6 + $0x598] sm:$0xff] }
 0x514   :  { %2147 = vmatpush.msra.mxu3 %v5647_v52  ;;  %2167 = vmatpush.msrb.mxu2 %v5636_v23  ;;  %v2002_v23 = vld [vmem:[#allocation6 + $0x340] sm:$0xff]  ;;  %v2003_v52 = vld [vmem:[#allocation6 + $0x348] sm:$0xff] }
 0x515   :  { %2090 = vmatpush.msra.mxu0 %v2015_v18  ;;  %2055 = vmatpush.msrb.mxu1 %v2004_v55  ;;  %v2211_v18 = vld [vmem:[#allocation6 + $0x5b0] sm:$0xff]  ;;  %v2361_v55 = vld [vmem:[#allocation7 + $0x168] sm:$0xff] }
 0x517   :  { %2091 = vmatpush.msra.mxu0 %v2013_v22  ;;  %2056 = vmatpush.msrb.mxu1 %v2002_v23  ;;  %v2174_v22 = vld [vmem:[#allocation6 + $0x488] sm:$0xff] }
 0x518   :  { %v2206_v23 = vld [vmem:[#allocation6 + $0x588] sm:$0xff] }
 0x519   :  { %2092 = vmatpush.msra.mxu0 %v2011_v48  ;;  %2057 = vmatpush.msrb.mxu1 %v2000_v25  ;;  %v2209_v48 = vld [vmem:[#allocation6 + $0x5a0] sm:$0xff]  ;;  %v2347_v25 = vld [vmem:[#allocation7 + $0xf8] sm:$0xff] }
 0x51b   :  { %2093 = vmatpush.msra.mxu0 %v2009_v17  ;;  %2058 = vmatpush.msrb.mxu1 %v1998_v28  ;;  %v2207_v17 = vld [vmem:[#allocation6 + $0x590] sm:$0xff] }
 0x51d   :  { %2094 = vmatpush.msra.mxu0 %v2007_v20  ;;  %2059 = vmatpush.msrb.mxu1 %v1996_v16  ;;  %v2363_v20 = vld [vmem:[#allocation7 + $0x178] sm:$0xff]  ;;  %v2362_v16 = vld [vmem:[#allocation7 + $0x170] sm:$0xff] }
 0x51f   :  { %2095 = vmatpush.msra.mxu0 %v2005_v24  ;;  %2060 = vmatpush.msrb.mxu1 %v1994_v34  ;;  %v2205_v24 = vld [vmem:[#allocation6 + $0x580] sm:$0xff]  ;;  %v2345_v34 = vld [vmem:[#allocation7 + $0xe8] sm:$0xff] }
 0x521   :  { %2096 = vmatpush.msra.mxu0 %v2003_v52  ;;  %2252 = vmatpush.msra.mxu1 %v2219_v4  ;;  %v2359_v52 = vld [vmem:[#allocation7 + $0x158] sm:$0xff]  ;;  %v2330_v4 = vld [vmem:[#allocation7 + $0x70] sm:$0xff] }
 0x523   :  { %2097 = vmatpush.msra.mxu0 %v2001_v26  ;;  %2253 = vmatpush.msra.mxu1 %v2217_v1  ;;  %v2328_v1 = vld [vmem:[#allocation7 + $0x60] sm:$0xff] }
 0x525   :  { %2098 = vmatpush.msra.mxu0 %v1999_v35  ;;  %2254 = vmatpush.msra.mxu1 %v2215_v13  ;;  %v2346_v35 = vld [vmem:[#allocation7 + $0xf0] sm:$0xff]  ;;  %v2324_v13 = vld [vmem:[#allocation7 + $0x40] sm:$0xff] }
 0x527   :  { %2099 = vmatpush.msra.mxu0 %v1997_v57  ;;  %2255 = vmatpush.msra.mxu1 %v2213_v10  ;;  %v2357_v57 = vld [vmem:[#allocation7 + $0x148] sm:$0xff]  ;;  %v2481_v10 = vld [vmem:[#allocation7 + $0x278] sm:$0xff] }
 0x529   :  { %2100 = vmatpush.msra.mxu0 %v1995_v58  ;;  %2256 = vmatpush.msra.mxu1 %v2211_v18  ;;  %v2344_v58 = vld [vmem:[#allocation7 + $0xe0] sm:$0xff]  ;;  %v2479_v18 = vld [vmem:[#allocation7 + $0x268] sm:$0xff] }
 0x52b   :  { %2292 = vmatpush.msrb.mxu0 %v2220_v6  ;;  %2257 = vmatpush.msra.mxu1 %v2209_v48  ;;  %v2319_v48 = vld [vmem:[#allocation7 + $0x18] sm:$0xff] }
 0x52d   :  { %2293 = vmatpush.msrb.mxu0 %v2218_v11  ;;  %2258 = vmatpush.msra.mxu1 %v2207_v17  ;;  %v2326_v11 = vld [vmem:[#allocation7 + $0x50] sm:$0xff] }
 0x52e   :  { %v2476_v17 = vld [vmem:[#allocation7 + $0x250] sm:$0xff] }
 0x52f   :  { %2294 = vmatpush.msrb.mxu0 %v2216_v8  ;;  %2259 = vmatpush.msra.mxu1 %v2205_v24  ;;  %v2473_v24 = vld [vmem:[#allocation7 + $0x238] sm:$0xff] }
 0x531   :  { %2295 = vmatpush.msrb.mxu0 %v2214_v21  ;;  %v2322_v21 = vld [vmem:[#allocation7 + $0x30] sm:$0xff] }
 0x533   :  { %2296 = vmatpush.msrb.mxu0 %v2212_v19  ;;  %v2320_v19 = vld [vmem:[#allocation7 + $0x20] sm:$0xff] }
 0x535   :  { %2297 = vmatpush.msrb.mxu0 %v2210_v60  ;;  %v2477_v60 = vld [vmem:[#allocation7 + $0x258] sm:$0xff] }
 0x537   :  { %2298 = vmatpush.msrb.mxu0 %v2208_v27  ;;  %v2318_v27 = vld [vmem:[#allocation7 + $0x10] sm:$0xff] }
 0x539   :  { %2299 = vmatpush.msrb.mxu0 %v2206_v23  ;;  %v2472_v23 = vld [vmem:[#allocation7 + $0x230] sm:$0xff] }
 0x572   :  { %v5677_v38 = vpop.f32.mrf.mxu0 }
 0x57a   :  { %v5679_v41 = vpop.f32.mrf.mxu0 }
 0x582   :  { %v1970_v29 = vpop.f32.mrf.mxu0 }
 0x583   :  { %2061 = vmatmul.f32.vlgmr.msrb.gmra.mxu1 %v1970_v29  ;;  %2101 = vmatmul.f32.vlgmr.msra.gmra.mxu0 %v1970_v29  ;;  %v2360_v29 = vld [vmem:[#allocation7 + $0x160] sm:$0xff] }
 0x584   :  { %v5688_v26 = vpop.f32.mrf.mxu2  ;;  %v5690_v28 = vpop.f32.mrf.mxu3  ;;  %2367 = vmatpush.msrb.mxu1 %v2346_v35  ;;  %2395 = vmatpush.msra.mxu0 %v2362_v16  ;;  %v2469_v35 = vld [vmem:[#allocation7 + $0x218] sm:$0xff]  ;;  %v2468_v16 = vld [vmem:[#allocation7 + $0x210] sm:$0xff] }
 0x586   :  { %2368 = vmatpush.msrb.mxu1 %v2344_v58  ;;  %2396 = vmatpush.msra.mxu0 %v2360_v29  ;;  %v2463_v58 = vld [vmem:[#allocation7 + $0x1e8] sm:$0xff]  ;;  %v2461_v29 = vld [vmem:[#allocation7 + $0x1d8] sm:$0xff] }
 0x58a   :  { %v1990_v30 = vpop.f32.mrf.mxu0 }
 0x58b   :  { %4782 = vmatmul.msk.f32.vlgmr.msrb.gmra.mxu3 %vm168_vm0, %v1990_v30  ;;  %4783 = vmatmul.msk.f32.vlgmr.msra.gmra.mxu2 %vm168_vm0, %v1990_v30  ;;  %v2342_v30 = vld [vmem:[#allocation7 + $0xd0] sm:$0xff] }
 0x58c   :  { %2224 = vmatpush.msrb.mxu3 %v2203_v59  ;;  %2264 = vmatpush.msra.mxu2 %v2204_v44  ;;  %v2355_v59 = vld [vmem:[#allocation7 + $0x138] sm:$0xff] }
 0x58d   :  { %v2343_v44 = vld [vmem:[#allocation7 + $0xd8] sm:$0xff]  ;;  %2369 = vmatpush.msrb.mxu1 %v2342_v30  ;;  %v2317_v30 = vld [vmem:[#allocation7 + $0x8] sm:$0xff] }
 0x58e   :  { %2225 = vmatpush.msrb.mxu3 %v2201_v3  ;;  %2265 = vmatpush.msra.mxu2 %v2202_v31  ;;  %v2358_v3 = vld [vmem:[#allocation7 + $0x150] sm:$0xff]  ;;  %v2353_v31 = vld [vmem:[#allocation7 + $0x128] sm:$0xff] }
 0x58f   :  { %2397 = vmatpush.msra.mxu0 %v2358_v3  ;;  %v2459_v3 = vld [vmem:[#allocation7 + $0x1c8] sm:$0xff] }
 0x590   :  { %2226 = vmatpush.msrb.mxu3 %v2199_v5  ;;  %2266 = vmatpush.msra.mxu2 %v2200_v32  ;;  %v2341_v5 = vld [vmem:[#allocation7 + $0xc8] sm:$0xff]  ;;  %v2340_v32 = vld [vmem:[#allocation7 + $0xc0] sm:$0xff] }
 0x591   :  { %2370 = vmatpush.msrb.mxu1 %v2340_v32  ;;  %v2497_v32 = vld [vmem:[#allocation7 + $0x2f8] sm:$0xff] }
 0x592   :  { %2227 = vmatpush.msrb.mxu3 %v2197_v33  ;;  %2267 = vmatpush.msra.mxu2 %v2198_v36  ;;  %v2356_v33 = vld [vmem:[#allocation7 + $0x140] sm:$0xff]  ;;  %v2351_v36 = vld [vmem:[#allocation7 + $0x118] sm:$0xff] }
 0x593   :  { %4785 = vmatmul.msk.f32.vlgmr.msra.gmra.mxu3 %vm1596_vm3, %v4784_v37  ;;  %4786 = vmatmul.msk.f32.vlgmr.msrb.gmra.mxu2 %vm1596_vm3, %v4784_v37  ;;  %v2339_v37 = vld [vmem:[#allocation7 + $0xb8] sm:$0xff] }
 0x594   :  { %2228 = vmatpush.msrb.mxu3 %v2195_v39  ;;  %2268 = vmatpush.msra.mxu2 %v2196_v40  ;;  %v2338_v39 = vld [vmem:[#allocation7 + $0xb0] sm:$0xff] }
 0x595   :  { %v2354_v40 = vld [vmem:[#allocation7 + $0x130] sm:$0xff]  ;;  %2398 = vmatpush.msra.mxu0 %v2356_v33  ;;  %2371 = vmatpush.msrb.mxu1 %v2338_v39  ;;  %v2457_v33 = vld [vmem:[#allocation7 + $0x1b8] sm:$0xff]  ;;  %v2494_v39 = vld [vmem:[#allocation7 + $0x2e0] sm:$0xff] }
 0x596   :  { %2229 = vmatpush.msrb.mxu3 %v2193_v42  ;;  %2269 = vmatpush.msra.mxu2 %v2194_v43  ;;  %v2349_v42 = vld [vmem:[#allocation7 + $0x108] sm:$0xff] }
 0x597   :  { %v2337_v43 = vld [vmem:[#allocation7 + $0xa8] sm:$0xff]  ;;  %2399 = vmatpush.msra.mxu0 %v2354_v40 }
 0x598   :  { %2230 = vmatpush.msrb.mxu3 %v2191_v45  ;;  %2270 = vmatpush.msra.mxu2 %v2192_v46  ;;  %v5692_v45 = vpop.f32.mrf.mxu2  ;;  %v5694_v46 = vpop.f32.mrf.mxu3  ;;  %v2495_v40 = vld [vmem:[#allocation7 + $0x2e8] sm:$0xff] }
 0x59a   :  { %2231 = vmatpush.msrb.mxu3 %v2189_v47  ;;  %2271 = vmatpush.msra.mxu2 %v2190_v51  ;;  %v2336_v47 = vld [vmem:[#allocation7 + $0xa0] sm:$0xff] }
 0x59b   :  { %v2352_v51 = vld [vmem:[#allocation7 + $0x120] sm:$0xff]  ;;  %2372 = vmatpush.msrb.mxu1 %v2336_v47  ;;  %v2492_v47 = vld [vmem:[#allocation7 + $0x2d0] sm:$0xff] }
 0x59c   :  { %2232 = vmatpush.msrb.mxu3 %v2187_v49  ;;  %2272 = vmatpush.msra.mxu2 %v2188_v50  ;;  %v2335_v49 = vld [vmem:[#allocation7 + $0x98] sm:$0xff]  ;;  %v2334_v50 = vld [vmem:[#allocation7 + $0x90] sm:$0xff] }
 0x59d   :  { %2400 = vmatpush.msra.mxu0 %v2352_v51  ;;  %2373 = vmatpush.msrb.mxu1 %v2334_v50  ;;  %v2493_v51 = vld [vmem:[#allocation7 + $0x2d8] sm:$0xff]  ;;  %v2458_v50 = vld [vmem:[#allocation7 + $0x1c0] sm:$0xff] }
 0x59e   :  { %2233 = vmatpush.msrb.mxu3 %v2185_v53  ;;  %2273 = vmatpush.msra.mxu2 %v2186_v54  ;;  %v2350_v53 = vld [vmem:[#allocation7 + $0x110] sm:$0xff]  ;;  %v2333_v54 = vld [vmem:[#allocation7 + $0x88] sm:$0xff] }
 0x59f   :  { %2401 = vmatpush.msra.mxu0 %v2350_v53  ;;  %v2490_v53 = vld [vmem:[#allocation7 + $0x2c0] sm:$0xff] }
 0x5a0   :  { %2234 = vmatpush.msrb.mxu3 %v2183_v56  ;;  %2274 = vmatpush.msra.mxu2 %v2184_v62  ;;  %v2332_v56 = vld [vmem:[#allocation7 + $0x80] sm:$0xff] }
 0x5a1   :  { %v2348_v62 = vld [vmem:[#allocation7 + $0x100] sm:$0xff]  ;;  %2374 = vmatpush.msrb.mxu1 %v2332_v56  ;;  %v2451_v56 = vld [vmem:[#allocation7 + $0x188] sm:$0xff] }
 0x5a2   :  { %2235 = vmatpush.msrb.mxu3 %v2181_v63  ;;  %2275 = vmatpush.msra.mxu2 %v2182_v2  ;;  %v2331_v63 = vld [vmem:[#allocation7 + $0x78] sm:$0xff]  ;;  %v2329_v2 = vld [vmem:[#allocation7 + $0x68] sm:$0xff] }
 0x5a3   :  { %2402 = vmatpush.msra.mxu0 %v2348_v62  ;;  %2375 = vmatpush.msrb.mxu1 %v2330_v4  ;;  %v2456_v62 = vld [vmem:[#allocation7 + $0x1b0] sm:$0xff]  ;;  %v2489_v4 = vld [vmem:[#allocation7 + $0x2b8] sm:$0xff] }
 0x5a4   :  { %2236 = vmatpush.msrb.mxu3 %v2179_v61  ;;  %2276 = vmatpush.msra.mxu2 %v2180_v9  ;;  %v2327_v9 = vld [vmem:[#allocation7 + $0x58] sm:$0xff] }
 0x5a5   :  { %2376 = vmatpush.msrb.mxu1 %v2328_v1  ;;  %v2486_v1 = vld [vmem:[#allocation7 + $0x2a0] sm:$0xff] }
 0x5a6   :  { %2237 = vmatpush.msrb.mxu3 %v2177_v12  ;;  %2277 = vmatpush.msra.mxu2 %v2178_v14  ;;  %v2325_v12 = vld [vmem:[#allocation7 + $0x48] sm:$0xff]  ;;  %v2323_v14 = vld [vmem:[#allocation7 + $0x38] sm:$0xff] }
 0x5a7   :  { %2377 = vmatpush.msrb.mxu1 %v2326_v11  ;;  %v2452_v11 = vld [vmem:[#allocation7 + $0x190] sm:$0xff] }
 0x5a8   :  { %2238 = vmatpush.msrb.mxu3 %v2175_v15  ;;  %2278 = vmatpush.msra.mxu2 %v2176_v0  ;;  %v2480_v0 = vld [vmem:[#allocation7 + $0x270] sm:$0xff] }
 0x5a9   :  { %2378 = vmatpush.msrb.mxu1 %v2324_v13  ;;  %v2485_v13 = vld [vmem:[#allocation7 + $0x298] sm:$0xff] }
 0x5aa   :  { %2239 = vmatpush.msrb.mxu3 %v2173_v7  ;;  %2279 = vmatpush.msra.mxu2 %v2174_v22  ;;  %v2321_v7 = vld [vmem:[#allocation7 + $0x28] sm:$0xff]  ;;  %v2478_v22 = vld [vmem:[#allocation7 + $0x260] sm:$0xff] }
 0x5ab   :  { %2379 = vmatpush.msrb.mxu1 %v2322_v21 }
 0x5ac   :  { %2435 = vmatpush.msrb.mxu2 %v2363_v20  ;;  %2407 = vmatpush.msra.mxu3 %v2347_v25  ;;  %v2475_v20 = vld [vmem:[#allocation7 + $0x248] sm:$0xff]  ;;  %v2470_v25 = vld [vmem:[#allocation7 + $0x220] sm:$0xff] }
 0x5ad   :  { %2380 = vmatpush.msrb.mxu1 %v2320_v19 }
 0x5ae   :  { %2436 = vmatpush.msrb.mxu2 %v2361_v55  ;;  %2408 = vmatpush.msra.mxu3 %v2345_v34  ;;  %v2474_v55 = vld [vmem:[#allocation7 + $0x240] sm:$0xff]  ;;  %v2465_v34 = vld [vmem:[#allocation7 + $0x1f8] sm:$0xff] }
 0x5af   :  { %2381 = vmatpush.msrb.mxu1 %v2318_v27 }
 0x5b0   :  { %2437 = vmatpush.msrb.mxu2 %v2359_v52  ;;  %2409 = vmatpush.msra.mxu3 %v2343_v44  ;;  %v2471_v52 = vld [vmem:[#allocation7 + $0x228] sm:$0xff]  ;;  %v2316_v44 = vld [vmem:[#allocation7] sm:$0xff] }
 0x5b1   :  { %2382 = vmatpush.msrb.mxu1 %v2316_v44  ;;  %v2725_v44 = vld [vmem:[#allocation7 + $0x430] sm:$0xff] }
 0x5b2   :  { %2438 = vmatpush.msrb.mxu2 %v2357_v57  ;;  %2410 = vmatpush.msra.mxu3 %v2341_v5  ;;  %v2467_v57 = vld [vmem:[#allocation7 + $0x208] sm:$0xff]  ;;  %v2496_v5 = vld [vmem:[#allocation7 + $0x2f0] sm:$0xff] }
 0x5b4   :  { %2439 = vmatpush.msrb.mxu2 %v2355_v59  ;;  %2411 = vmatpush.msra.mxu3 %v2339_v37  ;;  %v2466_v59 = vld [vmem:[#allocation7 + $0x200] sm:$0xff] }
 0x5b5   :  { %v2462_v37 = vld [vmem:[#allocation7 + $0x1e0] sm:$0xff] }
 0x5b6   :  { %2440 = vmatpush.msrb.mxu2 %v2353_v31  ;;  %2412 = vmatpush.msra.mxu3 %v2337_v43  ;;  %v2464_v31 = vld [vmem:[#allocation7 + $0x1f0] sm:$0xff] }
 0x5b7   :  { %v2460_v43 = vld [vmem:[#allocation7 + $0x1d0] sm:$0xff] }
 0x5b8   :  { %2441 = vmatpush.msrb.mxu2 %v2351_v36  ;;  %2413 = vmatpush.msra.mxu3 %v2335_v49  ;;  %v1862_v36 = vpop.f32.mrf.mxu1  ;;  %v2453_v49 = vld [vmem:[#allocation7 + $0x198] sm:$0xff] }
 0x5ba   :  { %2442 = vmatpush.msrb.mxu2 %v2349_v42  ;;  %2414 = vmatpush.msra.mxu3 %v2333_v54  ;;  %v2455_v42 = vld [vmem:[#allocation7 + $0x1a8] sm:$0xff] }
 0x5bb   :  { %v2491_v54 = vld [vmem:[#allocation7 + $0x2c8] sm:$0xff] }
 0x5bc   :  { %2415 = vmatpush.msra.mxu3 %v2331_v63  ;;  %v2488_v63 = vld [vmem:[#allocation7 + $0x2b0] sm:$0xff] }
 0x5be   :  { %2416 = vmatpush.msra.mxu3 %v2329_v2  ;;  %v2454_v2 = vld [vmem:[#allocation7 + $0x1a0] sm:$0xff] }
 0x5c0   :  { %2417 = vmatpush.msra.mxu3 %v2327_v9  ;;  %v2487_v9 = vld [vmem:[#allocation7 + $0x2a8] sm:$0xff] }
 0x5c2   :  { %2418 = vmatpush.msra.mxu3 %v2325_v12  ;;  %v2484_v12 = vld [vmem:[#allocation7 + $0x290] sm:$0xff] }
 0x5c4   :  { %2419 = vmatpush.msra.mxu3 %v2323_v14  ;;  %v1905_v14 = vpop.f32.mrf.mxu1 }
 0x5c6   :  { %2420 = vmatpush.msra.mxu3 %v2321_v7 }
 0x5c8   :  { %2421 = vmatpush.msra.mxu3 %v2319_v48 }
 0x5ca   :  { %2422 = vmatpush.msra.mxu3 %v2317_v30  ;;  %v2723_v30 = vld [vmem:[#allocation7 + $0x420] sm:$0xff] }
 0x600   :  { %v2062_v21 = vpop.f32.mrf.mxu1  ;;  %v2102_v7 = vpop.f32.mrf.mxu0 }
 0x60e   :  { %v5696_v6 = vpop.f32.mrf.mxu3  ;;  %v5698_v61 = vpop.f32.mrf.mxu2 }
 0x60f   :  { %v2083_v48 = vadd.f32 %v5696_v6, %v2062_v21  ;;  %v2700_v21 = vld [vmem:[#allocation7 + $0x368] sm:$0xff] }
 0x616   :  { %v2149_v8 = vpop.f32.mrf.mxu3  ;;  %v2169_v15 = vpop.f32.mrf.mxu2 }
 0x617   :  { %2240 = vmatmul.f32.vlgmr.msrb.gmra.mxu3 %v2149_v8  ;;  %2280 = vmatmul.f32.vlgmr.msra.gmra.mxu2 %v2149_v8  ;;  %v2450_v8 = vld [vmem:[#allocation7 + $0x180] sm:$0xff] }
 0x618   :  { %4787 = vmatmul.msk.f32.vlgmr.msra.gmra.mxu1 %vm168_vm0, %v2169_v15  ;;  %4788 = vmatmul.msk.f32.vlgmr.msrb.gmra.mxu0 %vm168_vm0, %v2169_v15  ;;  %v2482_v15 = vld [vmem:[#allocation7 + $0x280] sm:$0xff] }
 0x619   :  { %2538 = vmatpush.msra.mxu2 %v2481_v10  ;;  %2498 = vmatpush.msrb.mxu0 %v2480_v0  ;;  %v2483_v10 = vld [vmem:[#allocation7 + $0x288] sm:$0xff]  ;;  %v1823_v0 = vadd.f32 %v5677_v38, %v5688_v26  ;;  %v2306_v38 = vld [vmem:[%s6323_s9] sm:$0x3] }
 0x61a   :  { %2526 = vmatpush.msra.mxu1 %v2496_v5  ;;  %2566 = vmatpush.msrb.mxu3 %v2497_v32 }
 0x61b   :  { %2539 = vmatpush.msra.mxu2 %v2479_v18  ;;  %2499 = vmatpush.msrb.mxu0 %v2478_v22  ;;  %v1863_v18 = vadd.f32 %v1862_v36, %v5690_v28  ;;  %v1886_v22 = vadd.f32 %v5679_v41, %v1823_v0  ;;  %v2718_v36 = vld [vmem:[#allocation7 + $0x3f8] sm:$0xff]  ;;  %v2715_v0 = vld [vmem:[#allocation7 + $0x3e0] sm:$0xff] }
 0x61c   :  { %2527 = vmatpush.msra.mxu1 %v2494_v39  ;;  %2567 = vmatpush.msrb.mxu3 %v2495_v40  ;;  %v2716_v39 = vld [vmem:[#allocation7 + $0x3e8] sm:$0xff]  ;;  %v2714_v40 = vld [vmem:[#allocation7 + $0x3d8] sm:$0xff] }
 0x61d   :  { %2540 = vmatpush.msra.mxu2 %v2477_v60  ;;  %2500 = vmatpush.msrb.mxu0 %v2476_v17  ;;  %v1926_v19 = vadd.f32 %v5692_v45, %v1863_v18  ;;  %v2123_v60 = vadd.f32 %v5698_v61, %v2102_v7  ;;  %v1906_v27 = vadd.f32 %v1905_v14, %v1886_v22  ;;  %v2728_v7 = vld [vmem:[#allocation7 + $0x448] sm:$0xff]  ;;  %v2713_v18 = vld [vmem:[#allocation7 + $0x3d0] sm:$0xff]  ;;  %v2698_v22 = vld [vmem:[#allocation7 + $0x358] sm:$0xff] }
 0x61e   :  { %2528 = vmatpush.msra.mxu1 %v2492_v47  ;;  %2568 = vmatpush.msrb.mxu3 %v2493_v51  ;;  %v2712_v47 = vld [vmem:[#allocation7 + $0x3c8] sm:$0xff] }
 0x61f   :  { %2541 = vmatpush.msra.mxu2 %v2475_v20  ;;  %2501 = vmatpush.msrb.mxu0 %v2474_v55  ;;  %v1946_v17 = vadd.f32 %v5694_v46, %v1926_v19  ;;  %v2125_v55 = vadd.f32 %v2083_v48, %v1906_v27  ;;  %v2726_v19 = vld [vmem:[#allocation7 + $0x438] sm:$0xff]  ;;  %v2711_v48 = vld [vmem:[#allocation7 + $0x3c0] sm:$0xff]  ;;  %v2709_v27 = vld [vmem:[#allocation7 + $0x3b0] sm:$0xff] }
 0x620   :  { %2529 = vmatpush.msra.mxu1 %v2490_v53  ;;  %2569 = vmatpush.msrb.mxu3 %v2491_v54  ;;  %v4793_v54 = vld [vmem:[%s6324_s10 + $0x10] sm:$0xff] }
 0x621   :  { %2542 = vmatpush.msra.mxu2 %v2473_v24  ;;  %2502 = vmatpush.msrb.mxu0 %v2472_v23  ;;  %v2126_v24 = vadd.f32 %v2123_v60, %v1946_v17  ;;  %v2696_v60 = vld [vmem:[#allocation7 + $0x348] sm:$0xff] }
 0x622   :  { %2530 = vmatpush.msra.mxu1 %v2488_v63  ;;  %2570 = vmatpush.msrb.mxu3 %v2489_v4  ;;  %v2734_v4 = vld [vmem:[#allocation7 + $0x478] sm:$0xff]  ;;  %v2724_v17 = vld [vmem:[#allocation7 + $0x428] sm:$0xff] }
 0x623   :  { %2543 = vmatpush.msra.mxu2 %v2471_v52  ;;  %2503 = vmatpush.msrb.mxu0 %v2470_v25  ;;  %v2308_v52 = vperm.slane %v2306_v38, 0  ;;  %v2309_v25 = vperm.slane %v2306_v38, 1  ;;  %v2707_v38 = vld [vmem:[#allocation7 + $0x3a0] sm:$0xff] }
 0x624   :  { %2531 = vmatpush.msra.mxu1 %v2486_v1  ;;  %2571 = vmatpush.msrb.mxu3 %v2487_v9  ;;  %v2732_v1 = vld [vmem:[#allocation7 + $0x468] sm:$0xff] }
 0x625   :  { %2544 = vmatpush.msra.mxu2 %v2469_v35  ;;  %2504 = vmatpush.msrb.mxu0 %v2468_v16 }
 0x626   :  { %2532 = vmatpush.msra.mxu1 %v2484_v12  ;;  %2572 = vmatpush.msrb.mxu3 %v2485_v13  ;;  %v2730_v13 = vld [vmem:[#allocation7 + $0x458] sm:$0xff] }
 0x627   :  { %2545 = vmatpush.msra.mxu2 %v2467_v57  ;;  %2505 = vmatpush.msrb.mxu0 %v2466_v59  ;;  %v2727_v59 = vld [vmem:[#allocation7 + $0x440] sm:$0xff] }
 0x628   :  { %2533 = vmatpush.msra.mxu1 %v2482_v15  ;;  %2573 = vmatpush.msrb.mxu3 %v2483_v10  ;;  %v2702_v15 = vld [vmem:[#allocation7 + $0x378] sm:$0xff] }
 0x629   :  { %2546 = vmatpush.msra.mxu2 %v2465_v34  ;;  %2506 = vmatpush.msrb.mxu0 %v2464_v31  ;;  %v2733_v34 = vld [vmem:[#allocation7 + $0x470] sm:$0xff]  ;;  %v2719_v31 = vld [vmem:[#allocation7 + $0x400] sm:$0xff]  ;;  %v4794_v10 = vld [vmem:[%s6324_s10 + $0x18] sm:$0xff] }
 0x62b   :  { %2547 = vmatpush.msra.mxu2 %v2463_v58  ;;  %2507 = vmatpush.msrb.mxu0 %v2462_v37  ;;  %v2731_v58 = vld [vmem:[#allocation7 + $0x460] sm:$0xff] }
 0x62c   :  { %v5734_v37 = vld [vmem:[%s6324_s10] sm:$0xff] }
 0x62d   :  { %2548 = vmatpush.msra.mxu2 %v2461_v29  ;;  %2508 = vmatpush.msrb.mxu0 %v2460_v43  ;;  %v2729_v29 = vld [vmem:[#allocation7 + $0x450] sm:$0xff] }
 0x62f   :  { %2549 = vmatpush.msra.mxu2 %v2459_v3  ;;  %2509 = vmatpush.msrb.mxu0 %v2458_v50  ;;  %v2721_v3 = vld [vmem:[#allocation7 + $0x410] sm:$0xff]  ;;  %v2710_v50 = vld [vmem:[#allocation7 + $0x3b8] sm:$0xff] }
 0x631   :  { %2550 = vmatpush.msra.mxu2 %v2457_v33  ;;  %2510 = vmatpush.msrb.mxu0 %v2456_v62  ;;  %v2708_v62 = vld [vmem:[#allocation7 + $0x3a8] sm:$0xff] }
 0x633   :  { %2551 = vmatpush.msra.mxu2 %v2455_v42  ;;  %2511 = vmatpush.msrb.mxu0 %v2454_v2  ;;  %v2706_v2 = vld [vmem:[#allocation7 + $0x398] sm:$0xff] }
 0x635   :  { %2552 = vmatpush.msra.mxu2 %v2453_v49  ;;  %2512 = vmatpush.msrb.mxu0 %v2452_v11  ;;  %v2704_v11 = vld [vmem:[#allocation7 + $0x388] sm:$0xff] }
 0x637   :  { %2553 = vmatpush.msra.mxu2 %v2451_v56  ;;  %2513 = vmatpush.msrb.mxu0 %v2450_v8  ;;  %v5744_v56 = vld [vmem:[%s6324_s10 + $0x8] sm:$0xff]  ;;  %v2717_v8 = vld [vmem:[#allocation7 + $0x3f0] sm:$0xff] }
 0x695   :  { %v2261_v20 = vpop.f32.mrf.mxu1  ;;  %v2301_v26 = vpop.f32.mrf.mxu0 }
 0x69a   :  { %v2241_v28 = vpop.f32.mrf.mxu3  ;;  %v2281_v23 = vpop.f32.mrf.mxu2 }
 0x69b   :  { %v2262_v41 = vadd.f32 %v2261_v20, %v2241_v28  ;;  %v2302_v45 = vadd.f32 %v2301_v26, %v2281_v23  ;;  %v2694_v20 = vld [vmem:[#allocation7 + $0x338] sm:$0xff]  ;;  %v2692_v26 = vld [vmem:[#allocation7 + $0x328] sm:$0xff] }
 0x69c   :  { %v2690_v28 = vld [vmem:[#allocation7 + $0x318] sm:$0xff]  ;;  %v2720_v23 = vld [vmem:[#allocation7 + $0x408] sm:$0xff] }
 0x69d   :  { %v2304_v6 = vadd.f32 %v2262_v41, %v2125_v55  ;;  %v2305_v35 = vadd.f32 %v2302_v45, %v2126_v24  ;;  %v2722_v55 = vld [vmem:[#allocation7 + $0x418] sm:$0xff]  ;;  %v2705_v24 = vld [vmem:[#allocation7 + $0x390] sm:$0xff]  ;;  %v2703_v41 = vld [vmem:[#allocation7 + $0x380] sm:$0xff] }
 0x69e   :  { %v2701_v45 = vld [vmem:[#allocation7 + $0x370] sm:$0xff] }
 0x69f   :  { %v2312_v61 = vadd.f32 %v2308_v52, %v2304_v6  ;;  %v2313_v16 = vadd.f32 %v2309_v25, %v2305_v35  ;;  %v2688_v52 = vld [vmem:[#allocation7 + $0x308] sm:$0xff]  ;;  %v2922_v25 = vld [vmem:[#allocation7 + $0x5f8] sm:$0xff]  ;;  %v2699_v6 = vld [vmem:[#allocation7 + $0x360] sm:$0xff] }
 0x6a0   :  { %v2920_v35 = vld [vmem:[#allocation7 + $0x5e8] sm:$0xff] }
 0x6a1   :  { %v5713_v46 = vmax.f32 %v2312_v61, 0.0  ;;  %v5715_v57 = vmax.f32 %v2313_v16, 0.0  ;;  %v2697_v61 = vld [vmem:[#allocation7 + $0x350] sm:$0xff]  ;;  %v2918_v16 = vld [vmem:[#allocation7 + $0x5d8] sm:$0xff] }
 0x6a3   :  { %2383 = vmatmul.f32.vlgmr.msrb.gmra.mxu1 %v5713_v46  ;;  %4789 = vmatmul.msk.f32.vlgmr.msra.gmra.mxu0 %vm168_vm0, %v5715_v57 }
 0x6a4   :  { %2423 = vmatmul.f32.vlgmr.msra.gmra.mxu3 %v5713_v46  ;;  %4790 = vmatmul.msk.f32.vlgmr.msrb.gmra.mxu2 %vm168_vm0, %v5715_v57 }
 0x6a5   :  { %2763 = vmatpush.msrb.mxu2 %v2733_v34  ;;  %v2695_v34 = vld [vmem:[#allocation7 + $0x340] sm:$0xff] }
 0x6a7   :  { %2764 = vmatpush.msrb.mxu2 %v2731_v58  ;;  %v2916_v58 = vld [vmem:[#allocation7 + $0x5c8] sm:$0xff] }
 0x6a9   :  { %2765 = vmatpush.msrb.mxu2 %v2729_v29  ;;  %v2693_v29 = vld [vmem:[#allocation7 + $0x330] sm:$0xff] }
 0x6ab   :  { %2766 = vmatpush.msrb.mxu2 %v2727_v59  ;;  %2514 = vmatmul.f32.vlgmr.msrb.gmra.mxu0 %v5713_v46  ;;  %v2914_v59 = vld [vmem:[#allocation7 + $0x5b8] sm:$0xff] }
 0x6ac   :  { %4791 = vmatmul.msk.f32.vlgmr.msra.gmra.mxu1 %vm168_vm0, %v5715_v57  ;;  %2554 = vmatmul.f32.vlgmr.msra.gmra.mxu2 %v5713_v46 }
 0x6ad   :  { %4792 = vmatmul.msk.f32.vlgmr.msrb.gmra.mxu3 %vm168_vm0, %v5715_v57  ;;  %2767 = vmatpush.msrb.mxu2 %v2725_v44  ;;  %v2691_v44 = vld [vmem:[#allocation7 + $0x320] sm:$0xff] }
 0x6af   :  { %2768 = vmatpush.msrb.mxu2 %v2723_v30  ;;  %v2912_v30 = vld [vmem:[#allocation7 + $0x5a8] sm:$0xff] }
 0x6b1   :  { %2769 = vmatpush.msrb.mxu2 %v2721_v3  ;;  %v2689_v3 = vld [vmem:[#allocation7 + $0x310] sm:$0xff] }
 0x6b3   :  { %2770 = vmatpush.msrb.mxu2 %v2719_v31  ;;  %v2910_v31 = vld [vmem:[#allocation7 + $0x598] sm:$0xff] }
 0x6b4   :  { %4803 = vmatmul.msk.f32.vlgmr.msrb.gmra.mxu2 %vm168_vm0, %v5715_v57 }
 0x720   :  { %v2384_v5 = vpop.f32.mrf.mxu1  ;;  %v2404_v32 = vpop.f32.mrf.mxu0 }
 0x721   :  { %v2405_v33 = vadd.f32 %v2404_v32, %v2384_v5  ;;  %v2687_v5 = vld [vmem:[#allocation7 + $0x300] sm:$0xff]  ;;  %v2908_v32 = vld [vmem:[#allocation7 + $0x588] sm:$0xff] }
 0x723   :  { %2655 = vmatpush.msra.mxu3 %v2405_v33  ;;  %v2921_v33 = vld [vmem:[#allocation7 + $0x5f0] sm:$0xff] }
 0x724   :  { %4799 = vmatmul.msk.f32.vlgmr.msra.gmra.mxu3 %vm2581_vm4, %v5734_v37 }
 0x725   :  { %2775 = vmatpush.msrb.mxu3 %v2718_v36  ;;  %v2919_v36 = vld [vmem:[#allocation7 + $0x5e0] sm:$0xff] }
 0x727   :  { %2776 = vmatpush.msrb.mxu3 %v2716_v39  ;;  %v2424_v42 = vpop.f32.mrf.mxu3  ;;  %v2444_v43 = vpop.f32.mrf.mxu2  ;;  %v2915_v39 = vld [vmem:[#allocation7 + $0x5c0] sm:$0xff] }
 0x728   :  { %v2515_v51 = vpop.f32.mrf.mxu0  ;;  %v2445_v63 = vadd.f32 %v2444_v43, %v2424_v42  ;;  %v2911_v42 = vld [vmem:[#allocation7 + $0x5a0] sm:$0xff]  ;;  %v2909_v43 = vld [vmem:[#allocation7 + $0x590] sm:$0xff] }
 0x729   :  { %2777 = vmatpush.msrb.mxu3 %v2714_v40  ;;  %v2535_v49 = vpop.f32.mrf.mxu1  ;;  %v2913_v40 = vld [vmem:[#allocation7 + $0x5b0] sm:$0xff] }
 0x72a   :  { %v2536_v53 = vadd.f32 %v2535_v49, %v2515_v51 }
 0x72b   :  { %2778 = vmatpush.msrb.mxu3 %v2712_v47  ;;  %v2907_v47 = vld [vmem:[#allocation7 + $0x580] sm:$0xff] }
 0x72c   :  { %2603 = vmatpush.msrb.mxu1 %v2536_v53  ;;  %4800 = vmatmul.msk.f32.gmra.mxu3 %vm2581_vm4, %v5744_v56 }
 0x72d   :  { %2779 = vmatpush.msrb.mxu3 %v2710_v50  ;;  %4795 = vmatmul.msk.f32.vlgmr.msrb.gmra.mxu1 %vm2581_vm4, %v4793_v54 }
 0x72e   :  { %2678 = vmatpush.msra.mxu1 %v2445_v63 }
 0x72f   :  { %2780 = vmatpush.msrb.mxu3 %v2708_v62  ;;  %v2555_v9 = vpop.f32.mrf.mxu2 }
 0x730   :  { %2803 = vmatpush.msrb.mxu1 %v2734_v4  ;;  %v2575_v12 = vpop.f32.mrf.mxu3 }
 0x731   :  { %2781 = vmatpush.msrb.mxu3 %v2706_v2  ;;  %v2576_v14 = vadd.f32 %v2575_v12, %v2555_v9  ;;  %v2906_v9 = vld [vmem:[#allocation7 + $0x578] sm:$0xff] }
 0x732   :  { %2804 = vmatpush.msrb.mxu1 %v2732_v1 }
 0x733   :  { %2782 = vmatpush.msrb.mxu3 %v2704_v11  ;;  %2626 = vmatpush.msra.mxu0 %v2576_v14  ;;  %v2904_v11 = vld [vmem:[#allocation7 + $0x568] sm:$0xff]  ;;  %v2902_v14 = vld [vmem:[#allocation7 + $0x558] sm:$0xff] }
 0x734   :  { %2805 = vmatpush.msrb.mxu1 %v2730_v13  ;;  %4797 = vmatmul.msk.f32.vlgmr.msra.gmra.mxu0 %vm2581_vm4, %v4793_v54 }
 0x735   :  { %2735 = vmatpush.msrb.mxu0 %v2717_v8  ;;  %2783 = vmatpush.msrb.mxu3 %v2702_v15  ;;  %v2905_v15 = vld [vmem:[#allocation7 + $0x570] sm:$0xff] }
 0x736   :  { %4796 = vmatmul.msk.f32.gmra.mxu1 %vm2581_vm4, %v4794_v10 }
 0x737   :  { %2736 = vmatpush.msrb.mxu0 %v2715_v0  ;;  %2784 = vmatpush.msrb.mxu3 %v2700_v21  ;;  %v2772_v12 = vpop.f32.mrf.mxu2  ;;  %v4806_v0 = vld [vmem:[%s6324_s10 + $0x28] sm:$0xff]  ;;  %v2903_v21 = vld [vmem:[#allocation7 + $0x560] sm:$0xff] }
 0x738   :  { %2806 = vmatpush.msrb.mxu1 %v2728_v7  ;;  %v2898_v7 = vld [vmem:[#allocation7 + $0x538] sm:$0xff] }
 0x739   :  { %2737 = vmatpush.msrb.mxu0 %v2713_v18  ;;  %2785 = vmatpush.msrb.mxu3 %v2698_v22  ;;  %v2901_v18 = vld [vmem:[#allocation7 + $0x550] sm:$0xff]  ;;  %v2896_v22 = vld [vmem:[#allocation7 + $0x528] sm:$0xff] }
 0x73a   :  { %2807 = vmatpush.msrb.mxu1 %v2726_v19  ;;  %v2899_v19 = vld [vmem:[#allocation7 + $0x540] sm:$0xff] }
 0x73b   :  { %2738 = vmatpush.msrb.mxu0 %v2711_v48  ;;  %2786 = vmatpush.msrb.mxu3 %v2696_v60  ;;  %v2894_v48 = vld [vmem:[#allocation7 + $0x518] sm:$0xff]  ;;  %v2897_v60 = vld [vmem:[#allocation7 + $0x530] sm:$0xff] }
 0x73c   :  { %2808 = vmatpush.msrb.mxu1 %v2724_v17  ;;  %4798 = vmatmul.msk.f32.gmra.mxu0 %vm2581_vm4, %v4794_v10  ;;  %v2900_v10 = vld [vmem:[#allocation7 + $0x548] sm:$0xff] }
 0x73d   :  { %2739 = vmatpush.msrb.mxu0 %v2709_v27  ;;  %2787 = vmatpush.msrb.mxu3 %v2694_v20  ;;  %v2892_v17 = vld [vmem:[#allocation7 + $0x508] sm:$0xff]  ;;  %v2895_v27 = vld [vmem:[#allocation7 + $0x520] sm:$0xff]  ;;  %v2890_v20 = vld [vmem:[#allocation7 + $0x4f8] sm:$0xff] }
 0x73e   :  { %4801 = vmatmul.msk.f32.vlgmr.msra.gmra.mxu1 %vm2581_vm4, %v5734_v37  ;;  %v2917_v37 = vld [vmem:[#allocation7 + $0x5d0] sm:$0xff] }
 0x73f   :  { %2740 = vmatpush.msrb.mxu0 %v2707_v38  ;;  %2788 = vmatpush.msrb.mxu3 %v2692_v26  ;;  %v2893_v38 = vld [vmem:[#allocation7 + $0x510] sm:$0xff]  ;;  %v2888_v26 = vld [vmem:[#allocation7 + $0x4e8] sm:$0xff] }
 0x740   :  { %2809 = vmatpush.msrb.mxu1 %v2722_v55  ;;  %v2891_v55 = vld [vmem:[#allocation7 + $0x500] sm:$0xff] }
 0x741   :  { %2741 = vmatpush.msrb.mxu0 %v2705_v24  ;;  %2789 = vmatpush.msrb.mxu3 %v2690_v28  ;;  %v2886_v24 = vld [vmem:[#allocation7 + $0x4d8] sm:$0xff]  ;;  %v2889_v28 = vld [vmem:[#allocation7 + $0x4f0] sm:$0xff] }
 0x742   :  { %2810 = vmatpush.msrb.mxu1 %v2720_v23  ;;  %v2884_v23 = vld [vmem:[#allocation7 + $0x4c8] sm:$0xff] }
 0x743   :  { %2742 = vmatpush.msrb.mxu0 %v2703_v41  ;;  %2790 = vmatpush.msrb.mxu3 %v2688_v52  ;;  %v2887_v41 = vld [vmem:[#allocation7 + $0x4e0] sm:$0xff]  ;;  %v2882_v52 = vld [vmem:[#allocation7 + $0x4b8] sm:$0xff] }
 0x744   :  { %2791 = vmatmul.f32.vlgmr.msrb.gmra.mxu3 %v5713_v46 }
 0x745   :  { %2743 = vmatpush.msrb.mxu0 %v2701_v45  ;;  %2991 = vmatpush.msra.mxu3 %v2922_v25  ;;  %v2885_v45 = vld [vmem:[#allocation7 + $0x4d0] sm:$0xff]  ;;  %v2880_v25 = vld [vmem:[#allocation7 + $0x4a8] sm:$0xff] }
 0x746   :  { %4802 = vmatmul.msk.f32.gmra.mxu1 %vm2581_vm4, %v5744_v56 }
 0x747   :  { %2744 = vmatpush.msrb.mxu0 %v2699_v6  ;;  %2992 = vmatpush.msra.mxu3 %v2920_v35  ;;  %v2883_v6 = vld [vmem:[#allocation7 + $0x4c0] sm:$0xff]  ;;  %v2878_v35 = vld [vmem:[#allocation7 + $0x498] sm:$0xff] }
 0x749   :  { %2745 = vmatpush.msrb.mxu0 %v2697_v61  ;;  %2993 = vmatpush.msra.mxu3 %v2918_v16  ;;  %v2881_v61 = vld [vmem:[#allocation7 + $0x4b0] sm:$0xff]  ;;  %v2876_v16 = vld [vmem:[#allocation7 + $0x488] sm:$0xff] }
 0x74b   :  { %2746 = vmatpush.msrb.mxu0 %v2695_v34  ;;  %2994 = vmatpush.msra.mxu3 %v2916_v58  ;;  %v2879_v34 = vld [vmem:[#allocation7 + $0x4a0] sm:$0xff]  ;;  %v2877_v58 = vld [vmem:[#allocation7 + $0x490] sm:$0xff] }
 0x74d   :  { %2747 = vmatpush.msrb.mxu0 %v2693_v29  ;;  %2995 = vmatpush.msra.mxu3 %v2914_v59  ;;  %v2875_v29 = vld [vmem:[#allocation7 + $0x480] sm:$0xff] }
 0x74e   :  { %4804 = vmatmul.msk.f32.vlgmr.msrb.gmra.mxu1 %vm168_vm0, %v5715_v57 }
 0x74f   :  { %2748 = vmatpush.msrb.mxu0 %v2691_v44  ;;  %2996 = vmatpush.msra.mxu3 %v2912_v30 }
 0x751   :  { %2749 = vmatpush.msrb.mxu0 %v2689_v3  ;;  %2997 = vmatpush.msra.mxu3 %v2910_v31  ;;  %v3122_v3 = vld [vmem:[#allocation9 + $0x170] sm:$0xff]  ;;  %v3120_v31 = vld [vmem:[#allocation9 + $0x160] sm:$0xff] }
 0x753   :  { %2750 = vmatpush.msrb.mxu0 %v2687_v5  ;;  %2998 = vmatpush.msra.mxu3 %v2908_v32  ;;  %v3118_v5 = vld [vmem:[#allocation9 + $0x150] sm:$0xff] }
 0x754   :  { %2751 = vmatmul.f32.vlgmr.msrb.gmra.mxu0 %v5713_v46  ;;  %4812 = vmatmul.msk.f32.vlgmr.msra.gmra.mxu3 %vm168_vm0, %v5715_v57 }
 0x755   :  { %2951 = vmatpush.msra.mxu0 %v2921_v33 }
 0x757   :  { %2952 = vmatpush.msra.mxu0 %v2919_v36 }
 0x759   :  { %2953 = vmatpush.msra.mxu0 %v2917_v37  ;;  %v4813_v37 = vld [vmem:[%s6324_s10 + $0x30] sm:$0xff] }
 0x75b   :  { %2954 = vmatpush.msra.mxu0 %v2915_v39  ;;  %v3107_v39 = vld [vmem:[#allocation9 + $0xf8] sm:$0xff] }
 0x75d   :  { %2955 = vmatpush.msra.mxu0 %v2913_v40  ;;  %v3114_v40 = vld [vmem:[#allocation9 + $0x130] sm:$0xff] }
 0x75f   :  { %2956 = vmatpush.msra.mxu0 %v2911_v42 }
 0x761   :  { %2957 = vmatpush.msra.mxu0 %v2909_v43  ;;  %v3105_v43 = vld [vmem:[#allocation9 + $0xe8] sm:$0xff] }
 0x763   :  { %2958 = vmatpush.msra.mxu0 %v2907_v47  ;;  %v3112_v47 = vld [vmem:[#allocation9 + $0x120] sm:$0xff] }
 0x764   :  { %4811 = vmatmul.msk.f32.vlgmr.msra.gmra.mxu0 %vm168_vm0, %v5715_v57  ;;  %v4805_v57 = vld [vmem:[%s6324_s10 + $0x20] sm:$0xff] }
 0x7a7   :  { %v5771_v50 = vpop.f32.mrf.mxu3 }
 0x7aa   :  { %v5767_v51 = vpop.f32.mrf.mxu1 }
 0x7af   :  { %v5777_v56 = vpop.f32.mrf.mxu3 }
 0x7b1   :  { %v5775_v54 = vpop.f32.mrf.mxu0 }
 0x7b3   :  { %v5769_v49 = vpop.f32.mrf.mxu1 }
 0x7b9   :  { %v5781_v63 = vpop.f32.mrf.mxu0 }
 0x7bb   :  { %v5773_v53 = vpop.f32.mrf.mxu1 }
 0x7c3   :  { %v5779_v62 = vpop.f32.mrf.mxu1 }
 0x7c7   :  { %v2792_v4 = vpop.f32.mrf.mxu3 }
 0x7cb   :  { %v2812_v2 = vpop.f32.mrf.mxu1 }
 0x7cc   :  { %v2813_v1 = vadd.f32 %v2812_v2, %v2792_v4  ;;  %v3103_v4 = vld [vmem:[#allocation9 + $0xd8] sm:$0xff]  ;;  %v3110_v2 = vld [vmem:[#allocation9 + $0x110] sm:$0xff] }
 0x7ce   :  { %2862 = vmatpush.msra.mxu1 %v2813_v1  ;;  %v3101_v1 = vld [vmem:[#allocation9 + $0xc8] sm:$0xff] }
 0x7cf   :  { %4809 = vmatmul.msk.f32.vlgmr.msra.gmra.mxu1 %vm2581_vm4, %v4805_v57 }
 0x7d0   :  { %2963 = vmatpush.msrb.mxu1 %v2906_v9  ;;  %v3108_v9 = vld [vmem:[#allocation9 + $0x100] sm:$0xff] }
 0x7d1   :  { %v2752_v13 = vpop.f32.mrf.mxu0 }
 0x7d2   :  { %v2773_v8 = vadd.f32 %v2772_v12, %v2752_v13  ;;  %2964 = vmatpush.msrb.mxu1 %v2904_v11  ;;  %v3099_v11 = vld [vmem:[#allocation9 + $0xb8] sm:$0xff]  ;;  %v3257_v13 = vld [vmem:[#allocation9 + $0x270] sm:$0xff] }
 0x7d3   :  { %v3123_v12 = vld [vmem:[#allocation9 + $0x178] sm:$0xff] }
 0x7d4   :  { %2839 = vmatpush.msra.mxu2 %v2773_v8  ;;  %2965 = vmatpush.msrb.mxu1 %v2902_v14 }
 0x7d5   :  { %4807 = vmatmul.msk.f32.vlgmr.msra.gmra.mxu2 %vm2581_vm4, %v4805_v57  ;;  %v4814_v57 = vld [vmem:[%s6324_s10 + $0x38] sm:$0xff] }
 0x7d6   :  { %2923 = vmatpush.msrb.mxu2 %v2905_v15  ;;  %2966 = vmatpush.msrb.mxu1 %v2900_v10  ;;  %v3097_v15 = vld [vmem:[#allocation9 + $0xa8] sm:$0xff] }
 0x7d7   :  { %4810 = vmatmul.msk.f32.gmra.mxu1 %vm2581_vm4, %v4806_v0  ;;  %v3000_v32 = vpop.f32.mrf.mxu3 }
 0x7d8   :  { %2924 = vmatpush.msrb.mxu2 %v2903_v21  ;;  %2967 = vmatpush.msrb.mxu1 %v2898_v7  ;;  %v3255_v21 = vld [vmem:[#allocation9 + $0x260] sm:$0xff]  ;;  %v3106_v7 = vld [vmem:[#allocation9 + $0xf0] sm:$0xff] }
 0x7da   :  { %2925 = vmatpush.msrb.mxu2 %v2901_v18  ;;  %2968 = vmatpush.msrb.mxu1 %v2896_v22  ;;  %v3095_v18 = vld [vmem:[#allocation9 + $0x98] sm:$0xff] }
 0x7db   :  { %v3119_v22 = vld [vmem:[#allocation9 + $0x158] sm:$0xff] }
 0x7dc   :  { %2926 = vmatpush.msrb.mxu2 %v2899_v19  ;;  %2969 = vmatpush.msrb.mxu1 %v2894_v48  ;;  %v3253_v19 = vld [vmem:[#allocation9 + $0x250] sm:$0xff]  ;;  %v3104_v48 = vld [vmem:[#allocation9 + $0xe0] sm:$0xff] }
 0x7dd   :  { %4808 = vmatmul.msk.f32.gmra.mxu2 %vm2581_vm4, %v4806_v0  ;;  %v3121_v0 = vld [vmem:[#allocation9 + $0x168] sm:$0xff] }
 0x7de   :  { %2927 = vmatpush.msrb.mxu2 %v2897_v60  ;;  %2970 = vmatpush.msrb.mxu1 %v2892_v17  ;;  %v3093_v60 = vld [vmem:[#allocation9 + $0x88] sm:$0xff] }
 0x7df   :  { %v3117_v17 = vld [vmem:[#allocation9 + $0x148] sm:$0xff] }
 0x7e0   :  { %2928 = vmatpush.msrb.mxu2 %v2895_v27  ;;  %2971 = vmatpush.msrb.mxu1 %v2890_v20  ;;  %v3251_v27 = vld [vmem:[#allocation9 + $0x240] sm:$0xff]  ;;  %v3102_v20 = vld [vmem:[#allocation9 + $0xd0] sm:$0xff] }
 0x7e1   :  { %v2960_v14 = vpop.f32.mrf.mxu0 }
 0x7e2   :  { %2929 = vmatpush.msrb.mxu2 %v2893_v38  ;;  %2972 = vmatpush.msrb.mxu1 %v2888_v26  ;;  %v3091_v38 = vld [vmem:[#allocation9 + $0x78] sm:$0xff]  ;;  %v3100_v26 = vld [vmem:[#allocation9 + $0xc0] sm:$0xff] }
 0x7e4   :  { %2930 = vmatpush.msrb.mxu2 %v2891_v55  ;;  %2973 = vmatpush.msrb.mxu1 %v2886_v24  ;;  %v3089_v55 = vld [vmem:[#allocation9 + $0x68] sm:$0xff]  ;;  %v3098_v24 = vld [vmem:[#allocation9 + $0xb0] sm:$0xff] }
 0x7e6   :  { %2931 = vmatpush.msrb.mxu2 %v2889_v28  ;;  %2974 = vmatpush.msrb.mxu1 %v2884_v23  ;;  %v3096_v28 = vld [vmem:[#allocation9 + $0xa0] sm:$0xff]  ;;  %v3094_v23 = vld [vmem:[#allocation9 + $0x90] sm:$0xff] }
 0x7e8   :  { %2932 = vmatpush.msrb.mxu2 %v2887_v41  ;;  %2975 = vmatpush.msrb.mxu1 %v2882_v52  ;;  %v3092_v41 = vld [vmem:[#allocation9 + $0x80] sm:$0xff]  ;;  %v3090_v52 = vld [vmem:[#allocation9 + $0x70] sm:$0xff] }
 0x7ea   :  { %2933 = vmatpush.msrb.mxu2 %v2885_v45  ;;  %2976 = vmatpush.msrb.mxu1 %v2880_v25  ;;  %v3088_v45 = vld [vmem:[#allocation9 + $0x60] sm:$0xff]  ;;  %v3086_v25 = vld [vmem:[#allocation9 + $0x50] sm:$0xff] }
 0x7ec   :  { %2934 = vmatpush.msrb.mxu2 %v2883_v6  ;;  %2977 = vmatpush.msrb.mxu1 %v2878_v35  ;;  %v3084_v6 = vld [vmem:[#allocation9 + $0x40] sm:$0xff]  ;;  %v3082_v35 = vld [vmem:[#allocation9 + $0x30] sm:$0xff] }
 0x7ee   :  { %2935 = vmatpush.msrb.mxu2 %v2881_v61  ;;  %2978 = vmatpush.msrb.mxu1 %v2876_v16  ;;  %v3080_v61 = vld [vmem:[#allocation9 + $0x20] sm:$0xff]  ;;  %v3078_v16 = vld [vmem:[#allocation9 + $0x10] sm:$0xff] }
 0x7ef   :  { %2979 = vmatmul.f32.vlgmr.msrb.gmra.mxu1 %v5713_v46 }
 0x7f0   :  { %2936 = vmatpush.msrb.mxu2 %v2879_v34  ;;  %3207 = vmatpush.msra.mxu1 %v3123_v12  ;;  %v3076_v34 = vld [vmem:[#allocation9] sm:$0xff]  ;;  %v3079_v12 = vld [vmem:[#allocation9 + $0x18] sm:$0xff] }
 0x7f2   :  { %2937 = vmatpush.msrb.mxu2 %v2877_v58  ;;  %3208 = vmatpush.msra.mxu1 %v3121_v0  ;;  %v3258_v58 = vld [vmem:[#allocation9 + $0x278] sm:$0xff]  ;;  %v3237_v0 = vld [vmem:[#allocation9 + $0x1d0] sm:$0xff] }
 0x7f4   :  { %2938 = vmatpush.msrb.mxu2 %v2875_v29  ;;  %3209 = vmatpush.msra.mxu1 %v3119_v22  ;;  %v3256_v29 = vld [vmem:[#allocation9 + $0x268] sm:$0xff]  ;;  %v3235_v22 = vld [vmem:[#allocation9 + $0x1c0] sm:$0xff] }
 0x7f5   :  { %2939 = vmatmul.f32.vlgmr.msrb.gmra.mxu2 %v5713_v46  ;;  %v3116_v46 = vld [vmem:[#allocation9 + $0x140] sm:$0xff] }
 0x7f6   :  { %3161 = vmatpush.msra.mxu2 %v3122_v3  ;;  %3210 = vmatpush.msra.mxu1 %v3117_v17  ;;  %v3115_v3 = vld [vmem:[#allocation9 + $0x138] sm:$0xff]  ;;  %v3233_v17 = vld [vmem:[#allocation9 + $0x1b0] sm:$0xff] }
 0x7f8   :  { %3162 = vmatpush.msra.mxu2 %v3120_v31  ;;  %v3249_v31 = vld [vmem:[#allocation9 + $0x230] sm:$0xff]  ;;  %3211 = vmatpush.msra.mxu1 %v3115_v3  ;;  %v3062_v3 = vld [vmem:[%s6326_s12] sm:$0x3] }
 0x7fa   :  { %3163 = vmatpush.msra.mxu2 %v3118_v5  ;;  %v3087_v5 = vld [vmem:[#allocation9 + $0x58] sm:$0xff] }
 0x7fc   :  { %3164 = vmatpush.msra.mxu2 %v3116_v46  ;;  %v3252_v46 = vld [vmem:[#allocation9 + $0x248] sm:$0xff] }
 0x7fe   :  { %3165 = vmatpush.msra.mxu2 %v3114_v40  ;;  %v3245_v40 = vld [vmem:[#allocation9 + $0x210] sm:$0xff] }
 0x800   :  { %3166 = vmatpush.msra.mxu2 %v3112_v47  ;;  %v3250_v47 = vld [vmem:[#allocation9 + $0x238] sm:$0xff] }
 0x802   :  { %3167 = vmatpush.msra.mxu2 %v3110_v2  ;;  %v3243_v2 = vld [vmem:[#allocation9 + $0x200] sm:$0xff] }
 0x804   :  { %3168 = vmatpush.msra.mxu2 %v3108_v9  ;;  %v3241_v9 = vld [vmem:[#allocation9 + $0x1f0] sm:$0xff] }
 0x806   :  { %3275 = vmatpush.msrb.mxu2 %v3257_v13  ;;  %v3246_v13 = vld [vmem:[#allocation9 + $0x218] sm:$0xff] }
 0x808   :  { %3276 = vmatpush.msrb.mxu2 %v3255_v21  ;;  %v3269_v21 = vld [vmem:[#allocation9 + $0x2d0] sm:$0xff] }
 0x80a   :  { %3277 = vmatpush.msrb.mxu2 %v3253_v19  ;;  %v3267_v19 = vld [vmem:[#allocation9 + $0x2c0] sm:$0xff] }
 0x80c   :  { %3278 = vmatpush.msrb.mxu2 %v3251_v27  ;;  %v3265_v27 = vld [vmem:[#allocation9 + $0x2b0] sm:$0xff] }
 0x80e   :  { %3279 = vmatpush.msrb.mxu2 %v3249_v31  ;;  %v2681_v31 = vadd.f32 %v5773_v53, %v5775_v54 }
 0x84c   :  { %v5795_v59 = vpop.f32.mrf.mxu1 }
 0x854   :  { %v5797_v44 = vpop.f32.mrf.mxu1 }
 0x858   :  { %v5799_v30 = vpop.f32.mrf.mxu2 }
 0x860   :  { %v5804_v42 = vpop.f32.mrf.mxu2 }
 0x86c   :  { %v2980_v33 = vpop.f32.mrf.mxu1 }
 0x86d   :  { %v3001_v36 = vadd.f32 %v3000_v32, %v2980_v33  ;;  %v3254_v32 = vld [vmem:[#allocation9 + $0x258] sm:$0xff]  ;;  %v3113_v33 = vld [vmem:[#allocation9 + $0x128] sm:$0xff] }
 0x86e   :  { %3212 = vmatpush.msra.mxu1 %v3113_v33 }
 0x86f   :  { %3050 = vmatpush.msrb.mxu3 %v3001_v36  ;;  %v3247_v36 = vld [vmem:[#allocation9 + $0x220] sm:$0xff] }
 0x870   :  { %4817 = vmatmul.msk.f32.vlgmr.msrb.gmra.mxu3 %vm2581_vm4, %v4813_v37  ;;  %3280 = vmatpush.msrb.mxu2 %v3247_v36 }
 0x871   :  { %3176 = vmatpush.msra.mxu3 %v3107_v39  ;;  %v3111_v39 = vld [vmem:[#allocation9 + $0x118] sm:$0xff] }
 0x872   :  { %3213 = vmatpush.msra.mxu1 %v3111_v39  ;;  %3281 = vmatpush.msrb.mxu2 %v3245_v40  ;;  %v2684_v39 = vadd.f32 %v5779_v62, %v5781_v63  ;;  %v2661_v62 = vadd.f32 %v5777_v56, %v5769_v49 }
 0x873   :  { %3177 = vmatpush.msra.mxu3 %v3105_v43  ;;  %v3083_v43 = vld [vmem:[#allocation9 + $0x38] sm:$0xff] }
 0x874   :  { %3282 = vmatpush.msrb.mxu2 %v3243_v2  ;;  %v2873_v53 = vadd.f32 %v5797_v44, %v2684_v39  ;;  %v2872_v2 = vadd.f32 %v5804_v42, %v2661_v62  ;;  %v3225_v39 = vld [vmem:[%s6327_s13 + $0x18] sm:$0xff]  ;;  %v3531_v62 = vld [vmem:[#allocation9 + $0x390] sm:$0xff] }
 0x875   :  { %3178 = vmatpush.msra.mxu3 %v3103_v4  ;;  %v3109_v4 = vld [vmem:[#allocation9 + $0x108] sm:$0xff] }
 0x876   :  { %3214 = vmatpush.msra.mxu1 %v3109_v4  ;;  %3283 = vmatpush.msrb.mxu2 %v3241_v9 }
 0x877   :  { %3179 = vmatpush.msra.mxu3 %v3101_v1  ;;  %v3081_v1 = vld [vmem:[#allocation9 + $0x28] sm:$0xff] }
 0x878   :  { %v2940_v8 = vpop.f32.mrf.mxu2  ;;  %4818 = vmatmul.msk.f32.gmra.mxu3 %vm2581_vm4, %v4814_v57 }
 0x879   :  { %v2961_v10 = vadd.f32 %v2960_v14, %v2940_v8  ;;  %3180 = vmatpush.msra.mxu3 %v3099_v11  ;;  %v3273_v11 = vld [vmem:[#allocation9 + $0x2f0] sm:$0xff]  ;;  %v3239_v14 = vld [vmem:[#allocation9 + $0x1e0] sm:$0xff] }
 0x87a   :  { %3306 = vmatpush.msrb.mxu1 %v3273_v11  ;;  %v3271_v8 = vld [vmem:[#allocation9 + $0x2e0] sm:$0xff]  ;;  %3284 = vmatpush.msrb.mxu2 %v3239_v14 }
 0x87b   :  { %3027 = vmatpush.msrb.mxu0 %v2961_v10  ;;  %3181 = vmatpush.msra.mxu3 %v3097_v15  ;;  %v3077_v15 = vld [vmem:[#allocation9 + $0x8] sm:$0xff] }
 0x87c   :  { %4815 = vmatmul.msk.f32.vlgmr.msrb.gmra.mxu0 %vm2581_vm4, %v4813_v37  ;;  %v3085_v37 = vld [vmem:[#allocation9 + $0x48] sm:$0xff]  ;;  %3307 = vmatpush.msrb.mxu1 %v3271_v8 }
 0x87d   :  { %3130 = vmatpush.msra.mxu0 %v3106_v7  ;;  %3182 = vmatpush.msra.mxu3 %v3095_v18  ;;  %v3244_v10 = vld [vmem:[#allocation9 + $0x208] sm:$0xff]  ;;  %v3242_v7 = vld [vmem:[#allocation9 + $0x1f8] sm:$0xff] }
 0x87e   :  { %3285 = vmatpush.msrb.mxu2 %v3237_v0  ;;  %3308 = vmatpush.msrb.mxu1 %v3269_v21  ;;  %v3274_v18 = vld [vmem:[#allocation9 + $0x2f8] sm:$0xff]  ;;  %v3222_v0 = vld [vmem:[%s6327_s13] sm:$0xff] }
 0x87f   :  { %3131 = vmatpush.msra.mxu0 %v3104_v48  ;;  %3183 = vmatpush.msra.mxu3 %v3093_v60  ;;  %v3240_v48 = vld [vmem:[#allocation9 + $0x1e8] sm:$0xff]  ;;  %v3544_v21 = vld [vmem:[#allocation9 + $0x3f8] sm:$0xff] }
 0x880   :  { %3286 = vmatpush.msrb.mxu2 %v3235_v22  ;;  %3309 = vmatpush.msrb.mxu1 %v3267_v19  ;;  %v3272_v60 = vld [vmem:[#allocation9 + $0x2e8] sm:$0xff] }
 0x881   :  { %3132 = vmatpush.msra.mxu0 %v3102_v20  ;;  %3184 = vmatpush.msra.mxu3 %v3091_v38  ;;  %v3238_v20 = vld [vmem:[#allocation9 + $0x1d8] sm:$0xff]  ;;  %v3542_v22 = vld [vmem:[#allocation9 + $0x3e8] sm:$0xff] }
 0x882   :  { %3287 = vmatpush.msrb.mxu2 %v3233_v17  ;;  %3310 = vmatpush.msrb.mxu1 %v3265_v27  ;;  %v3270_v38 = vld [vmem:[#allocation9 + $0x2d8] sm:$0xff]  ;;  %v3538_v27 = vld [vmem:[#allocation9 + $0x3c8] sm:$0xff] }
 0x883   :  { %3133 = vmatpush.msra.mxu0 %v3100_v26  ;;  %3185 = vmatpush.msra.mxu3 %v3089_v55  ;;  %v3231_v26 = vld [vmem:[#allocation9 + $0x1a0] sm:$0xff] }
 0x884   :  { %4816 = vmatmul.msk.f32.gmra.mxu0 %vm2581_vm4, %v4814_v57  ;;  %v3248_v57 = vld [vmem:[#allocation9 + $0x228] sm:$0xff]  ;;  %v3263_v55 = vld [vmem:[#allocation9 + $0x2a0] sm:$0xff]  ;;  %3288 = vmatpush.msrb.mxu2 %v3231_v26  ;;  %v3536_v26 = vld [vmem:[#allocation9 + $0x3b8] sm:$0xff] }
 0x885   :  { %3134 = vmatpush.msra.mxu0 %v3098_v24  ;;  %3186 = vmatpush.msra.mxu3 %v3087_v5  ;;  %v3236_v24 = vld [vmem:[#allocation9 + $0x1c8] sm:$0xff]  ;;  %v2871_v5 = vadd.f32 %v5795_v59, %v2681_v31  ;;  %v3541_v31 = vld [vmem:[#allocation9 + $0x3e0] sm:$0xff] }
 0x886   :  { %3311 = vmatpush.msrb.mxu1 %v3263_v55 }
 0x887   :  { %3135 = vmatpush.msra.mxu0 %v3096_v28  ;;  %3187 = vmatpush.msra.mxu3 %v3085_v37  ;;  %v3268_v28 = vld [vmem:[#allocation9 + $0x2c8] sm:$0xff]  ;;  %v2658_v37 = vadd.f32 %v5771_v50, %v5767_v51 }
 0x889   :  { %3136 = vmatpush.msra.mxu0 %v3094_v23  ;;  %3188 = vmatpush.msra.mxu3 %v3083_v43  ;;  %v3229_v23 = vld [vmem:[#allocation9 + $0x190] sm:$0xff]  ;;  %v2870_v40 = vadd.f32 %v5799_v30, %v2658_v37 }
 0x88a   :  { %3289 = vmatpush.msrb.mxu2 %v3229_v23  ;;  %v3559_v37 = vld [vmem:[#allocation9 + $0x470] sm:$0xff] }
 0x88b   :  { %3137 = vmatpush.msra.mxu0 %v3092_v41  ;;  %3189 = vmatpush.msra.mxu3 %v3081_v1  ;;  %v3261_v41 = vld [vmem:[#allocation9 + $0x290] sm:$0xff] }
 0x88c   :  { %3312 = vmatpush.msrb.mxu1 %v3261_v41  ;;  %v3532_v41 = vld [vmem:[#allocation9 + $0x398] sm:$0xff] }
 0x88d   :  { %3138 = vmatpush.msra.mxu0 %v3090_v52  ;;  %3190 = vmatpush.msra.mxu3 %v3079_v12  ;;  %v3234_v52 = vld [vmem:[#allocation9 + $0x1b8] sm:$0xff] }
 0x88f   :  { %3139 = vmatpush.msra.mxu0 %v3088_v45  ;;  %3191 = vmatpush.msra.mxu3 %v3077_v15  ;;  %v3266_v45 = vld [vmem:[#allocation9 + $0x2b8] sm:$0xff] }
 0x891   :  { %3140 = vmatpush.msra.mxu0 %v3086_v25  ;;  %3352 = vmatpush.msrb.mxu3 %v3274_v18  ;;  %v3227_v25 = vld [vmem:[#allocation9 + $0x180] sm:$0xff] }
 0x892   :  { %3290 = vmatpush.msrb.mxu2 %v3227_v25 }
 0x893   :  { %3141 = vmatpush.msra.mxu0 %v3084_v6  ;;  %3353 = vmatpush.msrb.mxu3 %v3272_v60  ;;  %v3259_v6 = vld [vmem:[#allocation9 + $0x280] sm:$0xff]  ;;  %v3540_v60 = vld [vmem:[#allocation9 + $0x3d8] sm:$0xff] }
 0x894   :  { %3313 = vmatpush.msrb.mxu1 %v3259_v6  ;;  %v4827_v6 = vld [vmem:[%s6327_s13 + $0x20] sm:$0xff] }
 0x895   :  { %3142 = vmatpush.msra.mxu0 %v3082_v35  ;;  %3354 = vmatpush.msrb.mxu3 %v3270_v38  ;;  %v3232_v35 = vld [vmem:[#allocation9 + $0x1a8] sm:$0xff] }
 0x897   :  { %3143 = vmatpush.msra.mxu0 %v3080_v61  ;;  %3355 = vmatpush.msrb.mxu3 %v3268_v28  ;;  %v3264_v61 = vld [vmem:[#allocation9 + $0x2a8] sm:$0xff] }
 0x899   :  { %3144 = vmatpush.msra.mxu0 %v3078_v16  ;;  %3356 = vmatpush.msrb.mxu3 %v3266_v45  ;;  %v3230_v16 = vld [vmem:[#allocation9 + $0x198] sm:$0xff]  ;;  %v3530_v45 = vld [vmem:[#allocation9 + $0x388] sm:$0xff] }
 0x89b   :  { %3145 = vmatpush.msra.mxu0 %v3076_v34  ;;  %3357 = vmatpush.msrb.mxu3 %v3264_v61  ;;  %v3262_v34 = vld [vmem:[#allocation9 + $0x298] sm:$0xff] }
 0x89c   :  { %v3528_v61 = vld [vmem:[#allocation9 + $0x378] sm:$0xff] }
 0x89d   :  { %3321 = vmatpush.msrb.mxu0 %v3258_v58  ;;  %v3228_v58 = vld [vmem:[#allocation9 + $0x188] sm:$0xff]  ;;  %3358 = vmatpush.msrb.mxu3 %v3262_v34 }
 0x89f   :  { %3322 = vmatpush.msrb.mxu0 %v3256_v29  ;;  %v3260_v29 = vld [vmem:[#allocation9 + $0x288] sm:$0xff] }
 0x8a0   :  { %3359 = vmatpush.msrb.mxu3 %v3260_v29  ;;  %v3526_v29 = vld [vmem:[#allocation9 + $0x368] sm:$0xff] }
 0x8a1   :  { %3323 = vmatpush.msrb.mxu0 %v3254_v32  ;;  %v3065_v32 = vperm.slane %v3062_v3, 1 }
 0x8a3   :  { %3324 = vmatpush.msrb.mxu0 %v3252_v46 }
 0x8a5   :  { %3325 = vmatpush.msrb.mxu0 %v3250_v47  ;;  %v3064_v47 = vperm.slane %v3062_v3, 0 }
 0x8a7   :  { %3326 = vmatpush.msrb.mxu0 %v3248_v57 }
 0x8a9   :  { %3327 = vmatpush.msrb.mxu0 %v3246_v13 }
 0x8ab   :  { %3328 = vmatpush.msrb.mxu0 %v3244_v10 }
 0x8ad   :  { %3329 = vmatpush.msrb.mxu0 %v3242_v7 }
 0x8af   :  { %3330 = vmatpush.msrb.mxu0 %v3240_v48 }
 0x8b1   :  { %3331 = vmatpush.msrb.mxu0 %v3238_v20  ;;  %v3223_v20 = vld [vmem:[%s6327_s13 + $0x8] sm:$0xff] }
 0x8b3   :  { %3332 = vmatpush.msrb.mxu0 %v3236_v24  ;;  %v3534_v24 = vld [vmem:[#allocation9 + $0x3a8] sm:$0xff] }
 0x8b5   :  { %3333 = vmatpush.msrb.mxu0 %v3234_v52 }
 0x8b7   :  { %3334 = vmatpush.msrb.mxu0 %v3232_v35  ;;  %v3224_v35 = vld [vmem:[%s6327_s13 + $0x10] sm:$0xff] }
 0x8b9   :  { %3335 = vmatpush.msrb.mxu0 %v3230_v16  ;;  %v3543_v16 = vld [vmem:[#allocation9 + $0x3f0] sm:$0xff] }
 0x8bb   :  { %3336 = vmatpush.msrb.mxu0 %v3228_v58 }
 0x8f3   :  { %v3052_v33 = vpop.f32.mrf.mxu3 }
 0x8f4   :  { %v3059_v36 = vadd.f32 %v3052_v33, %v2871_v5  ;;  %v3524_v5 = vld [vmem:[#allocation9 + $0x358] sm:$0xff]  ;;  %v3539_v33 = vld [vmem:[#allocation9 + $0x3d0] sm:$0xff] }
 0x8f6   :  { %v3069_v46 = vadd.f32 %v3065_v32, %v3059_v36  ;;  %v3522_v36 = vld [vmem:[#allocation9 + $0x348] sm:$0xff] }
 0x8f8   :  { %v5824_v43 = vmax.f32 %v3069_v46, 0.0  ;;  %v3537_v46 = vld [vmem:[#allocation9 + $0x3c0] sm:$0xff] }
 0x8f9   :  { %v3029_v4 = vpop.f32.mrf.mxu0 }
 0x8fa   :  { %v3058_v54 = vadd.f32 %v3029_v4, %v2870_v40  ;;  %4819 = vmatmul.msk.f32.vlgmr.msra.gmra.mxu2 %vm168_vm0, %v5824_v43  ;;  %4821 = vmatmul.msk.f32.vlgmr.msra.gmra.mxu1 %vm168_vm0, %v5824_v43  ;;  %v4828_v40 = vld [vmem:[%s6327_s13 + $0x28] sm:$0xff]  ;;  %v3535_v4 = vld [vmem:[#allocation9 + $0x3b0] sm:$0xff] }
 0x8fb   :  { %v3055_v51 = vpop.f32.mrf.mxu3 }
 0x8fc   :  { %v3068_v50 = vadd.f32 %v3064_v47, %v3058_v54  ;;  %v3061_v59 = vadd.f32 %v3055_v51, %v2873_v53  ;;  %v3557_v53 = vld [vmem:[#allocation9 + $0x460] sm:$0xff]  ;;  %v3518_v54 = vld [vmem:[#allocation9 + $0x328] sm:$0xff] }
 0x8fd   :  { %v3533_v51 = vld [vmem:[#allocation9 + $0x3a0] sm:$0xff] }
 0x8fe   :  { %v5833_v63 = vmax.f32 %v3068_v50, 0.0  ;;  %v3071_v30 = vadd.f32 %v3065_v32, %v3061_v59  ;;  %v3555_v50 = vld [vmem:[#allocation9 + $0x450] sm:$0xff]  ;;  %v3516_v59 = vld [vmem:[#allocation9 + $0x318] sm:$0xff] }
 0x900   :  { %v5836_v1 = vmax.f32 %v3071_v30, 0.0  ;;  %3146 = vmatmul.f32.vlgmr.msra.gmra.mxu0 %v5833_v63  ;;  %3192 = vmatmul.f32.vlgmr.msra.gmra.mxu3 %v5833_v63  ;;  %v3514_v30 = vld [vmem:[#allocation9 + $0x308] sm:$0xff] }
 0x901   :  { %v3032_v44 = vpop.f32.mrf.mxu0 }
 0x902   :  { %v3060_v57 = vadd.f32 %v3032_v44, %v2872_v2  ;;  %4820 = vmatmul.msk.f32.gmra.mxu2 %vm168_vm0, %v5836_v1  ;;  %4822 = vmatmul.msk.f32.gmra.mxu1 %vm168_vm0, %v5836_v1  ;;  %v3553_v2 = vld [vmem:[#allocation9 + $0x440] sm:$0xff] }
 0x903   :  { %v3529_v44 = vld [vmem:[#allocation9 + $0x380] sm:$0xff] }
 0x904   :  { %v3070_v49 = vadd.f32 %v3064_v47, %v3060_v57  ;;  %v3520_v47 = vld [vmem:[#allocation9 + $0x338] sm:$0xff]  ;;  %v3767_v57 = vld [vmem:[#allocation9 + $0x570] sm:$0xff] }
 0x906   :  { %v5844_v56 = vmax.f32 %v3070_v49, 0.0  ;;  %v4829_v49 = vld [vmem:[%s6327_s13 + $0x30] sm:$0xff] }
 0x908   :  { %3149 = vmatmul.f32.gmra.mxu0 %v5844_v56  ;;  %3195 = vmatmul.f32.gmra.mxu3 %v5844_v56 }
 0x90a   :  { %3291 = vmatmul.f32.vlgmr.msrb.gmra.mxu2 %v5833_v63  ;;  %4823 = vmatmul.msk.f32.vlgmr.msrb.gmra.mxu1 %vm168_vm0, %v5824_v43 }
 0x910   :  { %3337 = vmatmul.f32.vlgmr.msrb.gmra.mxu0 %v5833_v63  ;;  %4825 = vmatmul.msk.f32.vlgmr.msrb.gmra.mxu3 %vm168_vm0, %v5824_v43 }
 0x912   :  { %3294 = vmatmul.f32.gmra.mxu2 %v5844_v56  ;;  %4824 = vmatmul.msk.f32.gmra.mxu1 %vm168_vm0, %v5836_v1 }
 0x918   :  { %3340 = vmatmul.f32.gmra.mxu0 %v5844_v56  ;;  %4826 = vmatmul.msk.f32.gmra.mxu3 %vm168_vm0, %v5836_v1 }
 0x977   :  { %v3216_v42 = vpop.f32.mrf.mxu1 }
 0x97d   :  { %v3147_v9 = vpop.f32.mrf.mxu0  ;;  %v3170_v11 = vpop.f32.mrf.mxu2 }
 0x97e   :  { %v3171_v10 = vadd.f32 %v3170_v11, %v3147_v9  ;;  %v3765_v9 = vld [vmem:[#allocation9 + $0x560] sm:$0xff]  ;;  %v3551_v11 = vld [vmem:[#allocation9 + $0x430] sm:$0xff] }
 0x97f   :  { %v3219_v12 = vpop.f32.mrf.mxu1 }
 0x983   :  { %v3193_v13 = vpop.f32.mrf.mxu3 }
 0x984   :  { %v3217_v17 = vadd.f32 %v3216_v42, %v3193_v13  ;;  %v3527_v42 = vld [vmem:[#allocation9 + $0x370] sm:$0xff] }
 0x985   :  { %v3150_v14 = vpop.f32.mrf.mxu0  ;;  %v3173_v8 = vpop.f32.mrf.mxu2  ;;  %v3763_v13 = vld [vmem:[#allocation9 + $0x550] sm:$0xff] }
 0x986   :  { %v3174_v15 = vadd.f32 %v3173_v8, %v3150_v14  ;;  %v3549_v14 = vld [vmem:[#allocation9 + $0x420] sm:$0xff]  ;;  %v3523_v8 = vld [vmem:[#allocation9 + $0x350] sm:$0xff] }
 0x987   :  { %v3315_v7 = vpop.f32.mrf.mxu1 }
 0x988   :  { %3468 = vmatpush.msra.mxu3 %v3174_v15  ;;  %v3761_v15 = vld [vmem:[#allocation9 + $0x540] sm:$0xff] }
 0x98a   :  { %3469 = vmatpush.msra.mxu3 %v3171_v10  ;;  %v3547_v10 = vld [vmem:[#allocation9 + $0x410] sm:$0xff] }
 0x98b   :  { %v3196_v18 = vpop.f32.mrf.mxu3  ;;  %4839 = vmatmul.msk.f32.vlgmr.msra.gmra.mxu3 %vm1596_vm3, %v3222_v0 }
 0x98c   :  { %v3220_v19 = vadd.f32 %v3219_v12, %v3196_v18  ;;  %3607 = vmatpush.msrb.mxu3 %v3544_v21  ;;  %v3525_v12 = vld [vmem:[#allocation9 + $0x360] sm:$0xff]  ;;  %v3759_v21 = vld [vmem:[#allocation9 + $0x530] sm:$0xff] }
 0x98d   :  { %v3292_v48 = vpop.f32.mrf.mxu2  ;;  %v3338_v38 = vpop.f32.mrf.mxu0  ;;  %v3519_v18 = vld [vmem:[#allocation9 + $0x330] sm:$0xff] }
 0x98e   :  { %3497 = vmatpush.msra.mxu0 %v3220_v19  ;;  %3608 = vmatpush.msrb.mxu3 %v3542_v22  ;;  %v3316_v25 = vadd.f32 %v3315_v7, %v3292_v48  ;;  %v4830_v7 = vld [vmem:[%s6327_s13 + $0x38] sm:$0xff]  ;;  %v3757_v22 = vld [vmem:[#allocation9 + $0x520] sm:$0xff] }
 0x98f   :  { %v3318_v28 = vpop.f32.mrf.mxu1  ;;  %v3545_v19 = vld [vmem:[#allocation9 + $0x400] sm:$0xff] }
 0x990   :  { %3498 = vmatpush.msra.mxu0 %v3217_v17  ;;  %3609 = vmatpush.msrb.mxu3 %v3540_v60  ;;  %v3517_v48 = vld [vmem:[#allocation9 + $0x320] sm:$0xff]  ;;  %v3755_v60 = vld [vmem:[#allocation9 + $0x510] sm:$0xff] }
 0x991   :  { %4843 = vmatmul.msk.f32.vlgmr.msra.gmra.mxu0 %vm1596_vm3, %v3222_v0  ;;  %v3521_v0 = vld [vmem:[#allocation9 + $0x340] sm:$0xff]  ;;  %v3515_v17 = vld [vmem:[#allocation9 + $0x310] sm:$0xff] }
 0x992   :  { %3610 = vmatpush.msrb.mxu3 %v3538_v27  ;;  %v3753_v27 = vld [vmem:[#allocation9 + $0x500] sm:$0xff] }
 0x993   :  { %v3361_v55 = vpop.f32.mrf.mxu3  ;;  %4840 = vmatmul.msk.f32.gmra.mxu3 %vm1596_vm3, %v3223_v20 }
 0x994   :  { %3611 = vmatpush.msrb.mxu3 %v3536_v26  ;;  %v3362_v32 = vadd.f32 %v3361_v55, %v3338_v38  ;;  %v3751_v38 = vld [vmem:[#allocation9 + $0x4f0] sm:$0xff]  ;;  %v3560_v26 = vld [vmem:[#allocation9 + $0x478] sm:$0xff]  ;;  %v3749_v55 = vld [vmem:[#allocation9 + $0x4e0] sm:$0xff] }
 0x995   :  { %v3295_v23 = vpop.f32.mrf.mxu2  ;;  %v3341_v34 = vpop.f32.mrf.mxu0 }
 0x996   :  { %v3319_v52 = vadd.f32 %v3318_v28, %v3295_v23  ;;  %3612 = vmatpush.msrb.mxu3 %v3534_v24  ;;  %v3558_v24 = vld [vmem:[#allocation9 + $0x468] sm:$0xff]  ;;  %v3747_v28 = vld [vmem:[#allocation9 + $0x4d0] sm:$0xff]  ;;  %v3556_v23 = vld [vmem:[#allocation9 + $0x458] sm:$0xff] }
 0x998   :  { %3613 = vmatpush.msrb.mxu3 %v3532_v41  ;;  %3398 = vmatpush.msra.mxu1 %v3319_v52  ;;  %v3745_v41 = vld [vmem:[#allocation9 + $0x4c0] sm:$0xff]  ;;  %v3554_v52 = vld [vmem:[#allocation9 + $0x448] sm:$0xff] }
 0x999   :  { %4844 = vmatmul.msk.f32.gmra.mxu0 %vm1596_vm3, %v3223_v20  ;;  %v3513_v20 = vld [vmem:[#allocation9 + $0x300] sm:$0xff] }
 0x99a   :  { %3614 = vmatpush.msrb.mxu3 %v3530_v45  ;;  %3399 = vmatpush.msra.mxu1 %v3316_v25  ;;  %v3743_v45 = vld [vmem:[#allocation9 + $0x4b0] sm:$0xff]  ;;  %v3552_v25 = vld [vmem:[#allocation9 + $0x438] sm:$0xff] }
 0x99b   :  { %v3364_v58 = vpop.f32.mrf.mxu3  ;;  %4831 = vmatmul.msk.f32.vlgmr.msra.gmra.mxu1 %vm1596_vm3, %v4827_v6  ;;  %4841 = vmatmul.msk.f32.gmra.mxu3 %vm1596_vm3, %v3224_v35 }
 0x99c   :  { %v3365_v3 = vadd.f32 %v3364_v58, %v3341_v34  ;;  %3615 = vmatpush.msrb.mxu3 %v3528_v61  ;;  %3561 = vmatpush.msrb.mxu1 %v3543_v16  ;;  %v3739_v61 = vld [vmem:[#allocation9 + $0x490] sm:$0xff]  ;;  %v3548_v16 = vld [vmem:[#allocation9 + $0x418] sm:$0xff]  ;;  %v3737_v34 = vld [vmem:[#allocation9 + $0x480] sm:$0xff] }
 0x99d   :  { %v3546_v58 = vld [vmem:[#allocation9 + $0x408] sm:$0xff] }
 0x99e   :  { %3427 = vmatpush.msra.mxu2 %v3365_v3  ;;  %3616 = vmatpush.msrb.mxu3 %v3526_v29  ;;  %v3783_v29 = vld [vmem:[#allocation9 + $0x5f0] sm:$0xff]  ;;  %v3781_v3 = vld [vmem:[#allocation9 + $0x5e0] sm:$0xff] }
 0x99f   :  { %3562 = vmatpush.msrb.mxu1 %v3541_v31  ;;  %v3779_v31 = vld [vmem:[#allocation9 + $0x5d0] sm:$0xff] }
 0x9a0   :  { %3428 = vmatpush.msra.mxu2 %v3362_v32  ;;  %3617 = vmatpush.msrb.mxu3 %v3524_v5  ;;  %v3777_v5 = vld [vmem:[#allocation9 + $0x5c0] sm:$0xff]  ;;  %v3775_v32 = vld [vmem:[#allocation9 + $0x5b0] sm:$0xff] }
 0x9a1   :  { %4835 = vmatmul.msk.f32.vlgmr.msra.gmra.mxu2 %vm1596_vm3, %v4827_v6  ;;  %3563 = vmatpush.msrb.mxu1 %v3539_v33  ;;  %v3741_v6 = vld [vmem:[#allocation9 + $0x4a0] sm:$0xff] }
 0x9a2   :  { %3618 = vmatpush.msrb.mxu3 %v3522_v36  ;;  %3592 = vmatpush.msrb.mxu2 %v3559_v37  ;;  %v3773_v33 = vld [vmem:[#allocation9 + $0x5a0] sm:$0xff]  ;;  %v3771_v36 = vld [vmem:[#allocation9 + $0x590] sm:$0xff] }
 0x9a3   :  { %3564 = vmatpush.msrb.mxu1 %v3537_v46  ;;  %4842 = vmatmul.msk.f32.gmra.mxu3 %vm1596_vm3, %v3225_v39  ;;  %v3769_v37 = vld [vmem:[#allocation9 + $0x580] sm:$0xff]  ;;  %v3784_v46 = vld [vmem:[#allocation9 + $0x5f8] sm:$0xff] }
 0x9a4   :  { %4832 = vmatmul.msk.f32.gmra.mxu1 %vm1596_vm3, %v4828_v40  ;;  %3619 = vmatpush.msrb.mxu3 %v3520_v47  ;;  %v3778_v47 = vld [vmem:[#allocation9 + $0x5c8] sm:$0xff] }
 0x9a5   :  { %3565 = vmatpush.msrb.mxu1 %v3535_v4  ;;  %3593 = vmatpush.msrb.mxu2 %v3557_v53  ;;  %v3776_v4 = vld [vmem:[#allocation9 + $0x5b8] sm:$0xff]  ;;  %v3774_v53 = vld [vmem:[#allocation9 + $0x5a8] sm:$0xff] }
 0x9a6   :  { %3620 = vmatpush.msrb.mxu3 %v3518_v54  ;;  %4845 = vmatmul.msk.f32.gmra.mxu0 %vm1596_vm3, %v3224_v35  ;;  %v3550_v35 = vld [vmem:[#allocation9 + $0x428] sm:$0xff]  ;;  %v3772_v54 = vld [vmem:[#allocation9 + $0x598] sm:$0xff] }
 0x9a7   :  { %3566 = vmatpush.msrb.mxu1 %v3533_v51  ;;  %3594 = vmatpush.msrb.mxu2 %v3555_v50  ;;  %v3770_v51 = vld [vmem:[#allocation9 + $0x588] sm:$0xff] }
 0x9a8   :  { %3621 = vmatpush.msrb.mxu3 %v3516_v59 }
 0x9a9   :  { %4836 = vmatmul.msk.f32.gmra.mxu2 %vm1596_vm3, %v4828_v40  ;;  %3567 = vmatpush.msrb.mxu1 %v3531_v62  ;;  %v3780_v40 = vld [vmem:[#allocation9 + $0x5d8] sm:$0xff] }
 0x9aa   :  { %3622 = vmatpush.msrb.mxu3 %v3514_v30  ;;  %3595 = vmatpush.msrb.mxu2 %v3553_v2 }
 0x9ab   :  { %3568 = vmatpush.msrb.mxu1 %v3529_v44  ;;  %3623 = vmatmul.f32.vlgmr.msrb.gmra.mxu3 %v5833_v63 }
 0x9ac   :  { %3785 = vmatpush.msra.mxu3 %v3767_v57  ;;  %4833 = vmatmul.msk.f32.gmra.mxu1 %vm1596_vm3, %v4829_v49 }
 0x9ad   :  { %3569 = vmatpush.msrb.mxu1 %v3527_v42  ;;  %3596 = vmatpush.msrb.mxu2 %v3551_v11 }
 0x9ae   :  { %3786 = vmatpush.msra.mxu3 %v3765_v9  ;;  %4846 = vmatmul.msk.f32.gmra.mxu0 %vm1596_vm3, %v3225_v39  ;;  %v3782_v39 = vld [vmem:[#allocation9 + $0x5e8] sm:$0xff] }
 0x9af   :  { %3570 = vmatpush.msrb.mxu1 %v3525_v12  ;;  %3597 = vmatpush.msrb.mxu2 %v3549_v14 }
 0x9b0   :  { %3787 = vmatpush.msra.mxu3 %v3763_v13 }
 0x9b1   :  { %4837 = vmatmul.msk.f32.gmra.mxu2 %vm1596_vm3, %v4829_v49  ;;  %3571 = vmatpush.msrb.mxu1 %v3523_v8 }
 0x9b2   :  { %3788 = vmatpush.msra.mxu3 %v3761_v15  ;;  %3598 = vmatpush.msrb.mxu2 %v3547_v10 }
 0x9b3   :  { %3572 = vmatpush.msrb.mxu1 %v3521_v0  ;;  %3626 = vmatmul.f32.gmra.mxu3 %v5844_v56 }
 0x9b4   :  { %3789 = vmatpush.msra.mxu3 %v3759_v21  ;;  %4834 = vmatmul.msk.f32.gmra.mxu1 %vm1596_vm3, %v4830_v7 }
 0x9b5   :  { %3573 = vmatpush.msrb.mxu1 %v3519_v18  ;;  %3599 = vmatpush.msrb.mxu2 %v3545_v19  ;;  %v3768_v18 = vld [vmem:[#allocation9 + $0x578] sm:$0xff] }
 0x9b6   :  { %3790 = vmatpush.msra.mxu3 %v3757_v22 }
 0x9b7   :  { %3574 = vmatpush.msrb.mxu1 %v3517_v48  ;;  %v3766_v48 = vld [vmem:[#allocation9 + $0x568] sm:$0xff] }
 0x9b8   :  { %3791 = vmatpush.msra.mxu3 %v3755_v60 }
 0x9b9   :  { %4838 = vmatmul.msk.f32.gmra.mxu2 %vm1596_vm3, %v4830_v7  ;;  %3575 = vmatpush.msrb.mxu1 %v3515_v17  ;;  %v4851_v7 = vld [vmem:[%s6327_s13 + $0x40] sm:$0xff]  ;;  %v3764_v17 = vld [vmem:[#allocation9 + $0x558] sm:$0xff] }
 0x9ba   :  { %3792 = vmatpush.msra.mxu3 %v3753_v27  ;;  %v3762_v27 = vld [vmem:[#allocation9 + $0x548] sm:$0xff] }
 0x9bb   :  { %3576 = vmatpush.msrb.mxu1 %v3513_v20 }
 0x9bc   :  { %3793 = vmatpush.msra.mxu3 %v3751_v38  ;;  %3577 = vmatmul.f32.vlgmr.msrb.gmra.mxu1 %v5833_v63  ;;  %v4852_v38 = vld [vmem:[%s6327_s13 + $0x48] sm:$0xff] }
 0x9bd   :  { %3638 = vmatpush.msra.mxu1 %v3560_v26  ;;  %v3760_v26 = vld [vmem:[#allocation9 + $0x538] sm:$0xff] }
 0x9be   :  { %3794 = vmatpush.msra.mxu3 %v3749_v55 }
 0x9bf   :  { %3639 = vmatpush.msra.mxu1 %v3558_v24  ;;  %v3758_v24 = vld [vmem:[#allocation9 + $0x528] sm:$0xff] }
 0x9c0   :  { %3795 = vmatpush.msra.mxu3 %v3747_v28  ;;  %v3756_v28 = vld [vmem:[#allocation9 + $0x518] sm:$0xff] }
 0x9c1   :  { %4847 = vmatmul.msk.f32.vlgmr.msrb.gmra.mxu2 %vm168_vm0, %v5824_v43  ;;  %3640 = vmatpush.msra.mxu1 %v3556_v23  ;;  %v3754_v23 = vld [vmem:[#allocation9 + $0x508] sm:$0xff] }
 0x9c2   :  { %3796 = vmatpush.msra.mxu3 %v3745_v41  ;;  %v4853_v41 = vld [vmem:[%s6327_s13 + $0x50] sm:$0xff] }
 0x9c3   :  { %3641 = vmatpush.msra.mxu1 %v3554_v52  ;;  %v3752_v52 = vld [vmem:[#allocation9 + $0x4f8] sm:$0xff] }
 0x9c4   :  { %3797 = vmatpush.msra.mxu3 %v3743_v45  ;;  %3580 = vmatmul.f32.gmra.mxu1 %v5844_v56 }
 0x9c5   :  { %3642 = vmatpush.msra.mxu1 %v3552_v25 }
 0x9c6   :  { %3798 = vmatpush.msra.mxu3 %v3741_v6 }
 0x9c7   :  { %3643 = vmatpush.msra.mxu1 %v3550_v35  ;;  %v3750_v35 = vld [vmem:[#allocation9 + $0x4e8] sm:$0xff] }
 0x9c8   :  { %3799 = vmatpush.msra.mxu3 %v3739_v61 }
 0x9c9   :  { %4848 = vmatmul.msk.f32.gmra.mxu2 %vm168_vm0, %v5836_v1  ;;  %3644 = vmatpush.msra.mxu1 %v3548_v16  ;;  %v3748_v16 = vld [vmem:[#allocation9 + $0x4d8] sm:$0xff] }
 0x9ca   :  { %3800 = vmatpush.msra.mxu3 %v3737_v34  ;;  %v3746_v34 = vld [vmem:[#allocation9 + $0x4c8] sm:$0xff] }
 0x9cb   :  { %3801 = vmatmul.f32.vlgmr.msra.gmra.mxu3 %v5833_v63  ;;  %3645 = vmatpush.msra.mxu1 %v3546_v58  ;;  %v4854_v58 = vld [vmem:[%s6327_s13 + $0x58] sm:$0xff] }
 0x9cc   :  { %4849 = vmatmul.msk.f32.vlgmr.msra.gmra.mxu1 %vm168_vm0, %v5824_v43 }
 0x9cd   :  { %3816 = vmatpush.msrb.mxu1 %v3783_v29  ;;  %v3744_v29 = vld [vmem:[#allocation9 + $0x4b8] sm:$0xff] }
 0x9cf   :  { %3817 = vmatpush.msrb.mxu1 %v3781_v3  ;;  %v3742_v3 = vld [vmem:[#allocation9 + $0x4a8] sm:$0xff] }
 0x9d1   :  { %3818 = vmatpush.msrb.mxu1 %v3779_v31  ;;  %v3740_v31 = vld [vmem:[#allocation9 + $0x498] sm:$0xff] }
 0x9d3   :  { %3804 = vmatmul.f32.gmra.mxu3 %v5844_v56  ;;  %3819 = vmatpush.msrb.mxu1 %v3777_v5  ;;  %v3738_v5 = vld [vmem:[#allocation9 + $0x488] sm:$0xff] }
 0x9d4   :  { %4850 = vmatmul.msk.f32.gmra.mxu1 %vm168_vm0, %v5836_v1 }
 0x9d5   :  { %3820 = vmatpush.msrb.mxu1 %v3775_v32  ;;  %v5970_v32 = vld [vmem:[%s6327_s13 + $0x60] sm:$0xff] }
 0x9d7   :  { %3821 = vmatpush.msrb.mxu1 %v3773_v33  ;;  %v5978_v33 = vld [vmem:[%s6327_s13 + $0x68] sm:$0xff] }
 0x9d9   :  { %3822 = vmatpush.msrb.mxu1 %v3771_v36 }
 0x9db   :  { %3823 = vmatpush.msrb.mxu1 %v3769_v37 }
 0x9dc   :  { %4863 = vmatmul.msk.f32.vlgmr.msrb.gmra.mxu1 %vm168_vm0, %v5824_v43 }
 0x9dd   :  { %3862 = vmatpush.msra.mxu1 %v3784_v46 }
 0x9df   :  { %3863 = vmatpush.msra.mxu1 %v3782_v39  ;;  %v3997_v39 = vld [vmem:[#allocation10 + $0x78] sm:$0xff] }
 0x9e1   :  { %3864 = vmatpush.msra.mxu1 %v3780_v40  ;;  %v4100_v40 = vld [vmem:[#allocation10 + $0x138] sm:$0xff] }
 0x9e3   :  { %3865 = vmatpush.msra.mxu1 %v3778_v47  ;;  %v3996_v47 = vld [vmem:[#allocation10 + $0x70] sm:$0xff] }
 0x9e4   :  { %4864 = vmatmul.msk.f32.gmra.mxu1 %vm168_vm0, %v5836_v1 }
 0x9e5   :  { %3866 = vmatpush.msra.mxu1 %v3776_v4  ;;  %v4099_v4 = vld [vmem:[#allocation10 + $0x130] sm:$0xff] }
 0x9e7   :  { %3867 = vmatpush.msra.mxu1 %v3774_v53  ;;  %v3995_v53 = vld [vmem:[#allocation10 + $0x68] sm:$0xff] }
 0x9e9   :  { %3868 = vmatpush.msra.mxu1 %v3772_v54  ;;  %v4098_v54 = vld [vmem:[#allocation10 + $0x128] sm:$0xff] }
 0x9eb   :  { %3869 = vmatpush.msra.mxu1 %v3770_v51 }
 0x9ec   :  { %4865 = vmatmul.msk.f32.vlgmr.msra.gmra.mxu1 %vm168_vm0, %v5824_v43 }
 0x9ed   :  { %4018 = vmatpush.msrb.mxu1 %v3997_v39  ;;  %v4318_v39 = vld [vmem:[#allocation10 + $0x1d8] sm:$0xff] }
 0x9ef   :  { %4019 = vmatpush.msrb.mxu1 %v3996_v47  ;;  %v4317_v47 = vld [vmem:[#allocation10 + $0x1d0] sm:$0xff] }
 0x9f1   :  { %4020 = vmatpush.msrb.mxu1 %v3995_v53  ;;  %v4316_v53 = vld [vmem:[#allocation10 + $0x1c8] sm:$0xff] }
 0x9f4   :  { %4866 = vmatmul.msk.f32.gmra.mxu1 %vm168_vm0, %v5836_v1 }
 0xa0e   :  { %v5924_v59 = vpop.f32.mrf.mxu3  ;;  %v5996_v36 = vpop.f32.mrf.mxu0 }
 0xa16   :  { %v5930_v2 = vpop.f32.mrf.mxu3  ;;  %v5998_v37 = vpop.f32.mrf.mxu0 }
 0xa18   :  { %v5922_v50 = vpop.f32.mrf.mxu1 }
 0xa1e   :  { %v5936_v49 = vpop.f32.mrf.mxu3 }
 0xa21   :  { %v5926_v62 = vpop.f32.mrf.mxu1 }
 0xa23   :  { %v6000_v46 = vpop.f32.mrf.mxu0 }
 0xa24   :  { %v5928_v30 = vpop.f32.mrf.mxu2 }
 0xa26   :  { %v5942_v9 = vpop.f32.mrf.mxu3 }
 0xa29   :  { %v5932_v44 = vpop.f32.mrf.mxu1 }
 0xa2b   :  { %v6002_v51 = vpop.f32.mrf.mxu0 }
 0xa2c   :  { %v5934_v57 = vpop.f32.mrf.mxu2 }
 0xa2e   :  { %v3624_v14 = vpop.f32.mrf.mxu3 }
 0xa31   :  { %v5938_v43 = vpop.f32.mrf.mxu1 }
 0xa34   :  { %v5940_v42 = vpop.f32.mrf.mxu2 }
 0xa36   :  { %v3627_v0 = vpop.f32.mrf.mxu3 }
 0xa39   :  { %v3578_v1 = vpop.f32.mrf.mxu1 }
 0xa3c   :  { %v5944_v11 = vpop.f32.mrf.mxu2 }
 0xa41   :  { %v3581_v12 = vpop.f32.mrf.mxu1 }
 0xa44   :  { %v3601_v13 = vpop.f32.mrf.mxu2 }
 0xa45   :  { %v3602_v21 = vadd.f32 %v3601_v13, %v3578_v1  ;;  %v3994_v1 = vld [vmem:[#allocation10 + $0x60] sm:$0xff]  ;;  %v3993_v13 = vld [vmem:[#allocation10 + $0x58] sm:$0xff] }
 0xa46   :  { %4021 = vmatpush.msrb.mxu1 %v3994_v1  ;;  %v4315_v1 = vld [vmem:[#allocation10 + $0x1c0] sm:$0xff] }
 0xa48   :  { %4022 = vmatpush.msrb.mxu1 %v3993_v13  ;;  %v4314_v13 = vld [vmem:[#allocation10 + $0x1b8] sm:$0xff] }
 0xa49   :  { %v3647_v8 = vpop.f32.mrf.mxu1 }
 0xa4a   :  { %v3648_v60 = vadd.f32 %v3647_v8, %v3624_v14  ;;  %v4096_v14 = vld [vmem:[#allocation10 + $0x118] sm:$0xff]  ;;  %v3992_v8 = vld [vmem:[#allocation10 + $0x50] sm:$0xff] }
 0xa4b   :  { %4023 = vmatpush.msrb.mxu1 %v3992_v8  ;;  %v3472_v8 = vadd.f32 %v5924_v59, %v5922_v50  ;;  %v3475_v59 = vadd.f32 %v5930_v2, %v5926_v62  ;;  %v3478_v62 = vadd.f32 %v5936_v49, %v5932_v44 }
 0xa4c   :  { %v3604_v15 = vpop.f32.mrf.mxu2 }
 0xa4d   :  { %v3605_v10 = vadd.f32 %v3604_v15, %v3581_v12  ;;  %v4097_v12 = vld [vmem:[#allocation10 + $0x120] sm:$0xff]  ;;  %v4095_v15 = vld [vmem:[#allocation10 + $0x110] sm:$0xff] }
 0xa4e   :  { %v3802_v20 = vpop.f32.mrf.mxu3 }
 0xa4f   :  { %3684 = vmatpush.msrb.mxu0 %v3605_v10  ;;  %v3991_v10 = vld [vmem:[#allocation10 + $0x48] sm:$0xff] }
 0xa50   :  { %4024 = vmatpush.msrb.mxu1 %v3991_v10 }
 0xa51   :  { %v3650_v22 = vpop.f32.mrf.mxu1  ;;  %3685 = vmatpush.msrb.mxu0 %v3602_v21 }
 0xa52   :  { %v3651_v19 = vadd.f32 %v3650_v22, %v3627_v0  ;;  %4855 = vmatmul.msk.f32.vlgmr.msrb.gmra.mxu0 %vm1596_vm3, %v4851_v7  ;;  %v4094_v0 = vld [vmem:[#allocation10 + $0x108] sm:$0xff]  ;;  %v3989_v22 = vld [vmem:[#allocation10 + $0x38] sm:$0xff] }
 0xa53   :  { %3831 = vmatpush.msra.mxu0 %v3768_v18  ;;  %v4093_v18 = vld [vmem:[#allocation10 + $0x100] sm:$0xff] }
 0xa54   :  { %3713 = vmatpush.msra.mxu2 %v3651_v19  ;;  %v4092_v19 = vld [vmem:[#allocation10 + $0xf8] sm:$0xff] }
 0xa55   :  { %3832 = vmatpush.msra.mxu0 %v3766_v48  ;;  %v3988_v48 = vld [vmem:[#allocation10 + $0x30] sm:$0xff] }
 0xa56   :  { %3714 = vmatpush.msra.mxu2 %v3648_v60  ;;  %v3805_v45 = vpop.f32.mrf.mxu3  ;;  %v4091_v60 = vld [vmem:[#allocation10 + $0xf0] sm:$0xff] }
 0xa57   :  { %4859 = vmatmul.msk.f32.vlgmr.msra.gmra.mxu2 %vm1596_vm3, %v4851_v7  ;;  %3833 = vmatpush.msra.mxu0 %v3764_v17  ;;  %v3990_v7 = vld [vmem:[#allocation10 + $0x40] sm:$0xff]  ;;  %v3987_v17 = vld [vmem:[#allocation10 + $0x28] sm:$0xff] }
 0xa58   :  { %4025 = vmatpush.msrb.mxu1 %v3990_v7 }
 0xa59   :  { %v3825_v55 = vpop.f32.mrf.mxu1  ;;  %3834 = vmatpush.msra.mxu0 %v3762_v27  ;;  %v4090_v27 = vld [vmem:[#allocation10 + $0xe8] sm:$0xff] }
 0xa5a   :  { %4856 = vmatmul.msk.f32.gmra.mxu0 %vm1596_vm3, %v4852_v38  ;;  %v3826_v61 = vadd.f32 %v3825_v55, %v3802_v20  ;;  %4026 = vmatpush.msrb.mxu1 %v3989_v22 }
 0xa5b   :  { %3835 = vmatpush.msra.mxu0 %v3760_v26  ;;  %v4089_v26 = vld [vmem:[#allocation10 + $0xe0] sm:$0xff] }
 0xa5c   :  { %4027 = vmatpush.msrb.mxu1 %v3988_v48 }
 0xa5d   :  { %3836 = vmatpush.msra.mxu0 %v3758_v24  ;;  %v3985_v24 = vld [vmem:[#allocation10 + $0x18] sm:$0xff] }
 0xa5e   :  { %4028 = vmatpush.msrb.mxu1 %v3987_v17  ;;  %v4309_v17 = vld [vmem:[#allocation10 + $0x190] sm:$0xff] }
 0xa5f   :  { %4860 = vmatmul.msk.f32.gmra.mxu2 %vm1596_vm3, %v4852_v38  ;;  %3837 = vmatpush.msra.mxu0 %v3756_v28  ;;  %v3986_v38 = vld [vmem:[#allocation10 + $0x20] sm:$0xff]  ;;  %v4088_v28 = vld [vmem:[#allocation10 + $0xd8] sm:$0xff] }
 0xa60   :  { %4029 = vmatpush.msrb.mxu1 %v3986_v38  ;;  %v4308_v38 = vld [vmem:[#allocation10 + $0x188] sm:$0xff] }
 0xa61   :  { %v3828_v25 = vpop.f32.mrf.mxu1  ;;  %3838 = vmatpush.msra.mxu0 %v3754_v23  ;;  %v3984_v23 = vld [vmem:[#allocation10 + $0x10] sm:$0xff] }
 0xa62   :  { %v3829_v6 = vadd.f32 %v3828_v25, %v3805_v45  ;;  %4857 = vmatmul.msk.f32.gmra.mxu0 %vm1596_vm3, %v4853_v41  ;;  %4030 = vmatpush.msrb.mxu1 %v3985_v24  ;;  %v4086_v45 = vld [vmem:[#allocation10 + $0xc8] sm:$0xff] }
 0xa63   :  { %3839 = vmatpush.msra.mxu0 %v3752_v52  ;;  %v3983_v52 = vld [vmem:[#allocation10 + $0x8] sm:$0xff] }
 0xa64   :  { %3908 = vmatpush.msrb.mxu2 %v3829_v6  ;;  %4031 = vmatpush.msrb.mxu1 %v3984_v23  ;;  %v3982_v6 = vld [vmem:[#allocation10] sm:$0xff] }
 0xa65   :  { %3840 = vmatpush.msra.mxu0 %v3750_v35  ;;  %v4085_v35 = vld [vmem:[#allocation10 + $0xc0] sm:$0xff] }
 0xa66   :  { %3909 = vmatpush.msrb.mxu2 %v3826_v61  ;;  %4032 = vmatpush.msrb.mxu1 %v3983_v52 }
 0xa67   :  { %4861 = vmatmul.msk.f32.gmra.mxu2 %vm1596_vm3, %v4853_v41  ;;  %3841 = vmatpush.msra.mxu0 %v3748_v16  ;;  %v4087_v41 = vld [vmem:[#allocation10 + $0xd0] sm:$0xff]  ;;  %v4322_v16 = vld [vmem:[#allocation10 + $0x1f8] sm:$0xff] }
 0xa68   :  { %4109 = vmatpush.msra.mxu2 %v4100_v40  ;;  %4033 = vmatpush.msrb.mxu1 %v3982_v6 }
 0xa69   :  { %3842 = vmatpush.msra.mxu0 %v3746_v34  ;;  %v4321_v34 = vld [vmem:[#allocation10 + $0x1f0] sm:$0xff] }
 0xa6a   :  { %4858 = vmatmul.msk.f32.gmra.mxu0 %vm1596_vm3, %v4854_v58  ;;  %4110 = vmatpush.msra.mxu2 %v4099_v4  ;;  %v3871_v4 = vpop.f32.mrf.mxu1 }
 0xa6b   :  { %3843 = vmatpush.msra.mxu0 %v3744_v29 }
 0xa6c   :  { %4111 = vmatpush.msra.mxu2 %v4098_v54 }
 0xa6d   :  { %3844 = vmatpush.msra.mxu0 %v3742_v3  ;;  %v4319_v3 = vld [vmem:[#allocation10 + $0x1e0] sm:$0xff] }
 0xa6e   :  { %4112 = vmatpush.msra.mxu2 %v4097_v12 }
 0xa6f   :  { %4862 = vmatmul.msk.f32.gmra.mxu2 %vm1596_vm3, %v4854_v58  ;;  %3845 = vmatpush.msra.mxu0 %v3740_v31  ;;  %v4320_v58 = vld [vmem:[#allocation10 + $0x1e8] sm:$0xff]  ;;  %v3507_v31 = vadd.f32 %v6000_v46, %v5940_v42  ;;  %v6025_v42 = vld [vmem:[%s6329_s15] sm:$0x3] }
 0xa70   :  { %4113 = vmatpush.msra.mxu2 %v4096_v14  ;;  %v4313_v14 = vld [vmem:[#allocation10 + $0x1b0] sm:$0xff]  ;;  %v4312_v46 = vld [vmem:[#allocation10 + $0x1a8] sm:$0xff]  ;;  %v3962_v22 = vperm.slane %v6025_v42, 0 }
 0xa71   :  { %3846 = vmatpush.msra.mxu0 %v3738_v5 }
 0xa72   :  { %3847 = vmatmul.f32.vlgmr.msra.gmra.mxu0 %v5833_v63  ;;  %v5985_v63 = vld [vmem:[%s6327_s13 + $0x70] sm:$0xff]  ;;  %4114 = vmatpush.msra.mxu2 %v4095_v15  ;;  %v3874_v15 = vpop.f32.mrf.mxu1 }
 0xa74   :  { %4115 = vmatpush.msra.mxu2 %v4094_v0  ;;  %v4311_v0 = vld [vmem:[#allocation10 + $0x1a0] sm:$0xff] }
 0xa76   :  { %4116 = vmatpush.msra.mxu2 %v4093_v18 }
 0xa77   :  { %4871 = vmatmul.msk.f32.vlgmr.msrb.gmra.mxu2 %vm1596_vm3, %v5970_v32 }
 0xa78   :  { %4117 = vmatpush.msra.mxu2 %v4092_v19  ;;  %v4310_v19 = vld [vmem:[#allocation10 + $0x198] sm:$0xff] }
 0xa7a   :  { %3850 = vmatmul.f32.gmra.mxu0 %v5844_v56  ;;  %v5992_v56 = vld [vmem:[%s6327_s13 + $0x78] sm:$0xff]  ;;  %4118 = vmatpush.msra.mxu2 %v4091_v60 }
 0xa7c   :  { %4119 = vmatpush.msra.mxu2 %v4090_v27 }
 0xa7e   :  { %4120 = vmatpush.msra.mxu2 %v4089_v26  ;;  %v4307_v26 = vld [vmem:[#allocation10 + $0x180] sm:$0xff] }
 0xa7f   :  { %4872 = vmatmul.msk.f32.gmra.mxu2 %vm1596_vm3, %v5978_v33 }
 0xa80   :  { %4121 = vmatpush.msra.mxu2 %v4088_v28 }
 0xa82   :  { %4122 = vmatpush.msra.mxu2 %v4087_v41 }
 0xa84   :  { %4123 = vmatpush.msra.mxu2 %v4086_v45 }
 0xa86   :  { %4124 = vmatpush.msra.mxu2 %v4085_v35 }
 0xa87   :  { %4873 = vmatmul.msk.f32.gmra.mxu2 %vm1596_vm3, %v5985_v63 }
 0xa88   :  { %4331 = vmatpush.msrb.mxu2 %v4322_v16 }
 0xa8a   :  { %4332 = vmatpush.msrb.mxu2 %v4321_v34  ;;  %v4107_v34 = vld [vmem:[#allocation10 + $0x170] sm:$0xff] }
 0xa8c   :  { %4333 = vmatpush.msrb.mxu2 %v4320_v58  ;;  %v4003_v58 = vld [vmem:[#allocation10 + $0xa8] sm:$0xff] }
 0xa8e   :  { %4334 = vmatpush.msrb.mxu2 %v4319_v3  ;;  %v4105_v3 = vld [vmem:[#allocation10 + $0x160] sm:$0xff] }
 0xa8f   :  { %4874 = vmatmul.msk.f32.gmra.mxu2 %vm1596_vm3, %v5992_v56 }
 0xa90   :  { %4335 = vmatpush.msrb.mxu2 %v4318_v39  ;;  %v4000_v39 = vld [vmem:[#allocation10 + $0x90] sm:$0xff] }
 0xa92   :  { %4336 = vmatpush.msrb.mxu2 %v4317_v47  ;;  %v4103_v47 = vld [vmem:[#allocation10 + $0x150] sm:$0xff] }
 0xa94   :  { %4337 = vmatpush.msrb.mxu2 %v4316_v53  ;;  %v4102_v53 = vld [vmem:[#allocation10 + $0x148] sm:$0xff] }
 0xa96   :  { %4338 = vmatpush.msrb.mxu2 %v4315_v1  ;;  %v4101_v1 = vld [vmem:[#allocation10 + $0x140] sm:$0xff] }
 0xa98   :  { %4339 = vmatpush.msrb.mxu2 %v4314_v13  ;;  %v4330_v13 = vld [vmem:[#allocation10 + $0x238] sm:$0xff] }
 0xa9a   :  { %4340 = vmatpush.msrb.mxu2 %v4313_v14  ;;  %v4329_v14 = vld [vmem:[#allocation10 + $0x230] sm:$0xff] }
 0xa9c   :  { %4341 = vmatpush.msrb.mxu2 %v4312_v46  ;;  %v4328_v46 = vld [vmem:[#allocation10 + $0x228] sm:$0xff] }
 0xa9e   :  { %4342 = vmatpush.msrb.mxu2 %v4311_v0  ;;  %v3963_v0 = vperm.slane %v6025_v42, 1 }
 0xaa0   :  { %4343 = vmatpush.msrb.mxu2 %v4310_v19 }
 0xaa2   :  { %4344 = vmatpush.msrb.mxu2 %v4309_v17  ;;  %v3504_v17 = vadd.f32 %v5998_v37, %v5934_v57  ;;  %v4485_v57 = vld [vmem:[#allocation10 + $0x2a8] sm:$0xff] }
 0xaa4   :  { %4345 = vmatpush.msrb.mxu2 %v4308_v38  ;;  %v4486_v38 = vld [vmem:[#allocation10 + $0x2b0] sm:$0xff] }
 0xaa6   :  { %4346 = vmatpush.msrb.mxu2 %v4307_v26  ;;  %v4484_v26 = vld [vmem:[#allocation10 + $0x2a0] sm:$0xff] }
 0xacf   :  { %v6004_v21 = vpop.f32.mrf.mxu0 }
 0xad0   :  { %v3728_v18 = vadd.f32 %v6004_v21, %v3472_v8  ;;  %v3501_v8 = vadd.f32 %v5996_v36, %v5928_v30  ;;  %v4323_v30 = vld [vmem:[#allocation10 + $0x200] sm:$0xff] }
 0xad7   :  { %v6006_v20 = vpop.f32.mrf.mxu0 }
 0xad8   :  { %v3730_v24 = vadd.f32 %v6006_v20, %v3475_v59 }
 0xada   :  { %v6008_v55 = vpop.f32.mrf.mxu2 }
 0xadf   :  { %v6010_v25 = vpop.f32.mrf.mxu0 }
 0xae2   :  { %v6012_v61 = vpop.f32.mrf.mxu2 }
 0xae3   :  { %v3731_v36 = vadd.f32 %v6012_v61, %v3504_v17  ;;  %v4483_v61 = vld [vmem:[#allocation10 + $0x298] sm:$0xff]  ;;  %v4888_v17 = vld [vmem:[%s6330_s16 + $0x48] sm:$0xff] }
 0xae7   :  { %v6014_v29 = vpop.f32.mrf.mxu0 }
 0xaea   :  { %v3722_v5 = vpop.f32.mrf.mxu2 }
 0xaeb   :  { %v6018_v40 = vadd.f32 %v3722_v5, %v3507_v31  ;;  %v4001_v31 = vld [vmem:[#allocation10 + $0x98] sm:$0xff] }
 0xaec   :  { %v4104_v5 = vld [vmem:[#allocation10 + $0x158] sm:$0xff] }
 0xaef   :  { %v3848_v54 = vpop.f32.mrf.mxu0 }
 0xaf0   :  { %v3872_v48 = vadd.f32 %v3871_v4, %v3848_v54  ;;  %v3999_v4 = vld [vmem:[#allocation10 + $0x88] sm:$0xff]  ;;  %v3998_v54 = vld [vmem:[#allocation10 + $0x80] sm:$0xff] }
 0xaf2   :  { %v6020_v12 = vpop.f32.mrf.mxu2 }
 0xaf7   :  { %v3851_v10 = vpop.f32.mrf.mxu0 }
 0xaf8   :  { %v3875_v7 = vadd.f32 %v3874_v15, %v3851_v10  ;;  %v4327_v15 = vld [vmem:[#allocation10 + $0x220] sm:$0xff]  ;;  %v3729_v10 = vadd.f32 %v6008_v55, %v3501_v8  ;;  %v4487_v55 = vld [vmem:[#allocation10 + $0x2b8] sm:$0xff] }
 0xafa   :  { %v3911_v60 = vpop.f32.mrf.mxu2  ;;  %3937 = vmatpush.msrb.mxu3 %v3875_v7  ;;  %v4326_v7 = vld [vmem:[#allocation10 + $0x218] sm:$0xff] }
 0xafb   :  { %v3952_v27 = vadd.f32 %v3911_v60, %v3728_v18  ;;  %v4324_v60 = vld [vmem:[#allocation10 + $0x208] sm:$0xff] }
 0xafc   :  { %3938 = vmatpush.msrb.mxu3 %v3872_v48 }
 0xafd   :  { %v3966_v50 = vadd.f32 %v3962_v22, %v3952_v27  ;;  %4875 = vmatmul.msk.f32.vlgmr.msrb.gmra.mxu3 %vm1596_vm3, %v5970_v32  ;;  %v3732_v32 = vadd.f32 %v6010_v25, %v3478_v62  ;;  %v4481_v62 = vld [vmem:[#allocation10 + $0x288] sm:$0xff] }
 0xaff   :  { %v6035_v21 = vmax.f32 %v3966_v50, 0.0 }
 0xb01   :  { %4034 = vmatmul.f32.vlgmr.msrb.gmra.mxu1 %v6035_v21  ;;  %4125 = vmatmul.f32.vlgmr.msra.gmra.mxu2 %v6035_v21 }
 0xb02   :  { %v3914_v28 = vpop.f32.mrf.mxu2 }
 0xb03   :  { %v3954_v23 = vadd.f32 %v3914_v28, %v3730_v24 }
 0xb05   :  { %v3968_v41 = vadd.f32 %v3962_v22, %v3954_v23  ;;  %4876 = vmatmul.msk.f32.gmra.mxu3 %vm1596_vm3, %v5978_v33  ;;  %v3481_v33 = vadd.f32 %v5942_v9, %v5938_v43  ;;  %v4005_v43 = vld [vmem:[#allocation10 + $0xb8] sm:$0xff]  ;;  %v4482_v23 = vld [vmem:[#allocation10 + $0x290] sm:$0xff] }
 0xb06   :  { %v4108_v9 = vld [vmem:[#allocation10 + $0x178] sm:$0xff]  ;;  %4055 = vmatpush.msrb.mxu0 %v4005_v43  ;;  %v4474_v43 = vld [vmem:[#allocation10 + $0x250] sm:$0xff] }
 0xb07   :  { %v6044_v2 = vmax.f32 %v3968_v41, 0.0  ;;  %v3734_v44 = vadd.f32 %v6014_v29, %v3481_v33  ;;  %4146 = vmatpush.msra.mxu3 %v4108_v9  ;;  %v4106_v29 = vld [vmem:[#allocation10 + $0x168] sm:$0xff] }
 0xb08   :  { %v4473_v9 = vld [vmem:[#allocation10 + $0x248] sm:$0xff] }
 0xb09   :  { %4037 = vmatmul.f32.gmra.mxu1 %v6044_v2  ;;  %4128 = vmatmul.f32.gmra.mxu2 %v6044_v2 }
 0xb0a   :  { %v3917_v20 = vpop.f32.mrf.mxu2  ;;  %4147 = vmatpush.msra.mxu3 %v4107_v34 }
 0xb0b   :  { %v3956_v52 = vadd.f32 %v3917_v20, %v3732_v32  ;;  %v3510_v32 = vadd.f32 %v6002_v51, %v5944_v11  ;;  %v4477_v11 = vld [vmem:[#allocation10 + $0x268] sm:$0xff] }
 0xb0c   :  { %4148 = vmatpush.msra.mxu3 %v4106_v29 }
 0xb0d   :  { %v3970_v45 = vadd.f32 %v3962_v22, %v3956_v52  ;;  %4877 = vmatmul.msk.f32.gmra.mxu3 %vm1596_vm3, %v5985_v63  ;;  %v4004_v63 = vld [vmem:[#allocation10 + $0xb0] sm:$0xff]  ;;  %v4480_v52 = vld [vmem:[#allocation10 + $0x280] sm:$0xff] }
 0xb0e   :  { %4056 = vmatpush.msrb.mxu0 %v4004_v63  ;;  %4149 = vmatpush.msra.mxu3 %v4105_v3  ;;  %v4472_v63 = vld [vmem:[#allocation10 + $0x240] sm:$0xff] }
 0xb0f   :  { %v6053_v6 = vmax.f32 %v3970_v45, 0.0  ;;  %v3735_v45 = vadd.f32 %v6020_v12, %v3510_v32  ;;  %v4475_v12 = vld [vmem:[#allocation10 + $0x258] sm:$0xff] }
 0xb10   :  { %4057 = vmatpush.msrb.mxu0 %v4003_v58  ;;  %4150 = vmatpush.msra.mxu3 %v4104_v5  ;;  %v4491_v32 = vld [vmem:[#allocation10 + $0x2d8] sm:$0xff] }
 0xb11   :  { %4040 = vmatmul.f32.gmra.mxu1 %v6053_v6  ;;  %4131 = vmatmul.f32.gmra.mxu2 %v6053_v6 }
 0xb12   :  { %v3920_v49 = vpop.f32.mrf.mxu2  ;;  %4151 = vmatpush.msra.mxu3 %v4103_v47 }
 0xb13   :  { %v3958_v25 = vadd.f32 %v3920_v49, %v3734_v44  ;;  %v4478_v49 = vld [vmem:[#allocation10 + $0x270] sm:$0xff] }
 0xb14   :  { %4152 = vmatpush.msra.mxu3 %v4102_v53 }
 0xb15   :  { %v3972_v35 = vadd.f32 %v3962_v22, %v3958_v25  ;;  %4878 = vmatmul.msk.f32.gmra.mxu3 %vm1596_vm3, %v5992_v56  ;;  %v4002_v56 = vld [vmem:[#allocation10 + $0xa0] sm:$0xff]  ;;  %v4325_v22 = vld [vmem:[#allocation10 + $0x210] sm:$0xff] }
 0xb16   :  { %4058 = vmatpush.msrb.mxu0 %v4002_v56  ;;  %4153 = vmatpush.msra.mxu3 %v4101_v1 }
 0xb17   :  { %v6060_v16 = vmax.f32 %v3972_v35, 0.0  ;;  %v4476_v35 = vld [vmem:[#allocation10 + $0x260] sm:$0xff] }
 0xb18   :  { %4059 = vmatpush.msrb.mxu0 %v4001_v31  ;;  %4368 = vmatpush.msrb.mxu3 %v4330_v13 }
 0xb19   :  { %4043 = vmatmul.f32.gmra.mxu1 %v6060_v16  ;;  %4134 = vmatmul.f32.gmra.mxu2 %v6060_v16 }
 0xb1a   :  { %4060 = vmatpush.msrb.mxu0 %v4000_v39  ;;  %4369 = vmatpush.msrb.mxu3 %v4329_v14 }
 0xb1c   :  { %4061 = vmatpush.msrb.mxu0 %v3999_v4  ;;  %4370 = vmatpush.msrb.mxu3 %v4328_v46 }
 0xb1e   :  { %4062 = vmatpush.msrb.mxu0 %v3998_v54  ;;  %4371 = vmatpush.msrb.mxu3 %v4327_v15  ;;  %v4076_v15 = vld [vmem:[%s6330_s16] sm:$0xff] }
 0xb20   :  { %4372 = vmatpush.msrb.mxu3 %v4326_v7 }
 0xb21   :  { %4347 = vmatmul.f32.vlgmr.msrb.gmra.mxu2 %v6035_v21 }
 0xb22   :  { %4373 = vmatpush.msrb.mxu3 %v4325_v22  ;;  %v4887_v22 = vld [vmem:[%s6330_s16 + $0x40] sm:$0xff] }
 0xb24   :  { %4374 = vmatpush.msrb.mxu3 %v4324_v60 }
 0xb26   :  { %4375 = vmatpush.msrb.mxu3 %v4323_v30 }
 0xb29   :  { %4350 = vmatmul.f32.gmra.mxu2 %v6044_v2 }
 0xb31   :  { %4353 = vmatmul.f32.gmra.mxu2 %v6053_v6 }
 0xb39   :  { %4356 = vmatmul.f32.gmra.mxu2 %v6060_v16 }
 0xb7e   :  { %v4035_v58 = vpop.f32.mrf.mxu1 }
 0xb80   :  { %v3940_v18 = vpop.f32.mrf.mxu3 }
 0xb81   :  { %v3953_v19 = vadd.f32 %v3940_v18, %v3729_v10 }
 0xb83   :  { %v3967_v48 = vadd.f32 %v3963_v0, %v3953_v19 }
 0xb84   :  { %v4126_v34 = vpop.f32.mrf.mxu2 }
 0xb85   :  { %v6074_v27 = vmax.f32 %v3967_v48, 0.0  ;;  %v4077_v48 = vld [vmem:[%s6330_s16 + $0x8] sm:$0xff] }
 0xb86   :  { %v4038_v3 = vpop.f32.mrf.mxu1 }
 0xb87   :  { %4879 = vmatmul.msk.f32.vlgmr.msrb.gmra.mxu0 %vm168_vm0, %v6074_v27  ;;  %4883 = vmatmul.msk.f32.vlgmr.msra.gmra.mxu3 %vm168_vm0, %v6074_v27 }
 0xb88   :  { %v3943_v42 = vpop.f32.mrf.mxu3  ;;  %4496 = vmatpush.msra.mxu3 %v4487_v55 }
 0xb89   :  { %v3955_v50 = vadd.f32 %v3943_v42, %v3731_v36  ;;  %v4078_v36 = vld [vmem:[%s6330_s16 + $0x10] sm:$0xff] }
 0xb8a   :  { %4497 = vmatpush.msra.mxu3 %v4486_v38  ;;  %v4889_v42 = vld [vmem:[%s6330_s16 + $0x50] sm:$0xff] }
 0xb8b   :  { %v3969_v59 = vadd.f32 %v3963_v0, %v3955_v50  ;;  %v4079_v50 = vld [vmem:[%s6330_s16 + $0x18] sm:$0xff] }
 0xb8c   :  { %4498 = vmatpush.msra.mxu3 %v4485_v57  ;;  %v4129_v56 = vpop.f32.mrf.mxu2  ;;  %v4494_v57 = vld [vmem:[#allocation10 + $0x2f0] sm:$0xff] }
 0xb8d   :  { %v6081_v37 = vmax.f32 %v3969_v59, 0.0  ;;  %v4495_v59 = vld [vmem:[#allocation10 + $0x2f8] sm:$0xff] }
 0xb8e   :  { %4499 = vmatpush.msra.mxu3 %v4484_v26  ;;  %v4041_v47 = vpop.f32.mrf.mxu1  ;;  %v4493_v26 = vld [vmem:[#allocation10 + $0x2e8] sm:$0xff] }
 0xb8f   :  { %4880 = vmatmul.msk.f32.gmra.mxu0 %vm168_vm0, %v6081_v37  ;;  %4884 = vmatmul.msk.f32.gmra.mxu3 %vm168_vm0, %v6081_v37 }
 0xb90   :  { %v3946_v24 = vpop.f32.mrf.mxu3  ;;  %4500 = vmatpush.msra.mxu3 %v4483_v61  ;;  %v4890_v61 = vld [vmem:[%s6330_s16 + $0x58] sm:$0xff] }
 0xb91   :  { %v3957_v28 = vadd.f32 %v3946_v24, %v6018_v40  ;;  %v4479_v40 = vld [vmem:[#allocation10 + $0x278] sm:$0xff] }
 0xb92   :  { %4501 = vmatpush.msra.mxu3 %v4482_v23  ;;  %v4492_v23 = vld [vmem:[#allocation10 + $0x2e0] sm:$0xff] }
 0xb93   :  { %v3971_v41 = vadd.f32 %v3963_v0, %v3957_v28 }
 0xb94   :  { %4502 = vmatpush.msra.mxu3 %v4481_v62  ;;  %v4132_v39 = vpop.f32.mrf.mxu2  ;;  %v4080_v62 = vld [vmem:[%s6330_s16 + $0x20] sm:$0xff] }
 0xb95   :  { %v6090_v20 = vmax.f32 %v3971_v41, 0.0 }
 0xb96   :  { %4503 = vmatpush.msra.mxu3 %v4480_v52 }
 0xb97   :  { %4881 = vmatmul.msk.f32.gmra.mxu0 %vm168_vm0, %v6090_v20  ;;  %4885 = vmatmul.msk.f32.gmra.mxu3 %vm168_vm0, %v6090_v20 }
 0xb98   :  { %v3949_v33 = vpop.f32.mrf.mxu3  ;;  %4504 = vmatpush.msra.mxu3 %v4479_v40  ;;  %v4489_v40 = vld [vmem:[#allocation10 + $0x2c8] sm:$0xff] }
 0xb99   :  { %v3959_v44 = vadd.f32 %v3949_v33, %v3735_v45  ;;  %v4490_v45 = vld [vmem:[#allocation10 + $0x2d0] sm:$0xff] }
 0xb9a   :  { %4505 = vmatpush.msra.mxu3 %v4478_v49 }
 0xb9b   :  { %v3973_v25 = vadd.f32 %v3963_v0, %v3959_v44  ;;  %v4488_v44 = vld [vmem:[#allocation10 + $0x2c0] sm:$0xff] }
 0xb9c   :  { %4506 = vmatpush.msra.mxu3 %v4477_v11  ;;  %v4135_v54 = vpop.f32.mrf.mxu2  ;;  %v4915_v11 = vld [vmem:[%s6330_s16 + $0x80] sm:$0xff] }
 0xb9d   :  { %v6097_v51 = vmax.f32 %v3973_v25, 0.0  ;;  %v4891_v25 = vld [vmem:[%s6330_s16 + $0x60] sm:$0xff] }
 0xb9e   :  { %4507 = vmatpush.msra.mxu3 %v4476_v35  ;;  %v4081_v35 = vld [vmem:[%s6330_s16 + $0x28] sm:$0xff] }
 0xb9f   :  { %4882 = vmatmul.msk.f32.gmra.mxu0 %vm168_vm0, %v6097_v51  ;;  %4886 = vmatmul.msk.f32.gmra.mxu3 %vm168_vm0, %v6097_v51 }
 0xba0   :  { %4508 = vmatpush.msra.mxu3 %v4475_v12  ;;  %v4892_v12 = vld [vmem:[%s6330_s16 + $0x68] sm:$0xff] }
 0xba2   :  { %4509 = vmatpush.msra.mxu3 %v4474_v43  ;;  %v4916_v43 = vld [vmem:[%s6330_s16 + $0x88] sm:$0xff] }
 0xba4   :  { %4510 = vmatpush.msra.mxu3 %v4473_v9  ;;  %v4348_v10 = vpop.f32.mrf.mxu2  ;;  %v4082_v9 = vld [vmem:[%s6330_s16 + $0x30] sm:$0xff] }
 0xba6   :  { %4511 = vmatpush.msra.mxu3 %v4472_v63  ;;  %v4893_v63 = vld [vmem:[%s6330_s16 + $0x70] sm:$0xff] }
 0xba7   :  { %4911 = vmatmul.msk.f32.vlgmr.msrb.gmra.mxu3 %vm168_vm0, %v6074_v27 }
 0xbac   :  { %v4351_v60 = vpop.f32.mrf.mxu2 }
 0xbaf   :  { %4912 = vmatmul.msk.f32.gmra.mxu3 %vm168_vm0, %v6081_v37 }
 0xbb4   :  { %v4354_v55 = vpop.f32.mrf.mxu2 }
 0xbb7   :  { %4913 = vmatmul.msk.f32.gmra.mxu3 %vm168_vm0, %v6090_v20 }
 0xbbc   :  { %v4357_v24 = vpop.f32.mrf.mxu2 }
 0xbbf   :  { %4914 = vmatmul.msk.f32.gmra.mxu3 %vm168_vm0, %v6097_v51 }
 0xbc7   :  { %4512 = vmatmul.f32.vlgmr.msra.gmra.mxu3 %v6035_v21  ;;  %v4044_v21 = vpop.f32.mrf.mxu1 }
 0xbcf   :  { %4515 = vmatmul.f32.gmra.mxu3 %v6044_v2 }
 0xbd7   :  { %4518 = vmatmul.f32.gmra.mxu3 %v6053_v6 }
 0xbdf   :  { %4521 = vmatmul.f32.gmra.mxu3 %v6060_v16 }
 0xc04   :  { %v4064_v29 = vpop.f32.mrf.mxu0 }
 0xc05   :  { %v4065_v46 = vadd.f32 %v4064_v29, %v4035_v58  ;;  %v4083_v58 = vld [vmem:[%s6330_s16 + $0x38] sm:$0xff] }
 0xc06   :  { %v4894_v29 = vld [vmem:[%s6330_s16 + $0x78] sm:$0xff] }
 0xc0a   :  { %v4155_v31 = vpop.f32.mrf.mxu3 }
 0xc0b   :  { %v4156_v18 = vadd.f32 %v4155_v31, %v4126_v34  ;;  %v4917_v34 = vld [vmem:[%s6330_s16 + $0x90] sm:$0xff]  ;;  %v4920_v31 = vld [vmem:[%s6330_s16 + $0xa8] sm:$0xff] }
 0xc0c   :  { %v4067_v5 = vpop.f32.mrf.mxu0 }
 0xc0d   :  { %v4068_v6 = vadd.f32 %v4067_v5, %v4038_v3  ;;  %v4919_v3 = vld [vmem:[%s6330_s16 + $0xa0] sm:$0xff]  ;;  %v4921_v5 = vld [vmem:[%s6330_s16 + $0xb0] sm:$0xff] }
 0xc12   :  { %v4158_v4 = vpop.f32.mrf.mxu3 }
 0xc13   :  { %v4159_v7 = vadd.f32 %v4158_v4, %v4129_v56  ;;  %v4918_v56 = vld [vmem:[%s6330_s16 + $0x98] sm:$0xff] }
 0xc14   :  { %v4070_v53 = vpop.f32.mrf.mxu0 }
 0xc15   :  { %v4071_v14 = vadd.f32 %v4070_v53, %v4041_v47 }
 0xc1a   :  { %v4161_v1 = vpop.f32.mrf.mxu3 }
 0xc1b   :  { %v4162_v0 = vadd.f32 %v4161_v1, %v4132_v39 }
 0xc1c   :  { %v4073_v13 = vpop.f32.mrf.mxu0 }
 0xc1d   :  { %v4074_v2 = vadd.f32 %v4073_v13, %v4044_v21 }
 0xc1f   :  { %4277 = vmatpush.msra.mxu1 %v4074_v2 }
 0xc21   :  { %4278 = vmatpush.msra.mxu1 %v4071_v14 }
 0xc22   :  { %v4164_v16 = vpop.f32.mrf.mxu3 }
 0xc23   :  { %v4165_v8 = vadd.f32 %v4164_v16, %v4135_v54  ;;  %4279 = vmatpush.msra.mxu1 %v4068_v6 }
 0xc25   :  { %4212 = vmatpush.msra.mxu0 %v4165_v8  ;;  %4280 = vmatpush.msra.mxu1 %v4065_v46 }
 0xc26   :  { %4903 = vmatmul.msk.f32.vlgmr.msra.gmra.mxu1 %vm768_vm2, %v4076_v15 }
 0xc27   :  { %4213 = vmatpush.msra.mxu0 %v4162_v0 }
 0xc29   :  { %4214 = vmatpush.msra.mxu0 %v4159_v7  ;;  %v4935_v7 = vld [vmem:[%s6330_s16 + $0xc0] sm:$0xff] }
 0xc2a   :  { %v4377_v19 = vpop.f32.mrf.mxu3 }
 0xc2b   :  { %4215 = vmatpush.msra.mxu0 %v4156_v18  ;;  %v4378_v49 = vadd.f32 %v4377_v19, %v4348_v10  ;;  %v4936_v18 = vld [vmem:[%s6330_s16 + $0xc8] sm:$0xff]  ;;  %v4938_v19 = vld [vmem:[%s6330_s16 + $0xd8] sm:$0xff] }
 0xc2c   :  { %4895 = vmatmul.msk.f32.vlgmr.msra.gmra.mxu0 %vm768_vm2, %v4887_v22  ;;  %v4937_v22 = vld [vmem:[%s6330_s16 + $0xd0] sm:$0xff] }
 0xc2d   :  { %4533 = vmatpush.msrb.mxu0 %v4495_v59 }
 0xc2e   :  { %4904 = vmatmul.msk.f32.gmra.mxu1 %vm768_vm2, %v4077_v48  ;;  %v4939_v48 = vld [vmem:[%s6330_s16 + $0xe0] sm:$0xff] }
 0xc2f   :  { %4534 = vmatpush.msrb.mxu0 %v4494_v57 }
 0xc31   :  { %4535 = vmatpush.msrb.mxu0 %v4493_v26 }
 0xc32   :  { %v4380_v30 = vpop.f32.mrf.mxu3 }
 0xc33   :  { %4536 = vmatpush.msrb.mxu0 %v4492_v23  ;;  %v4381_v33 = vadd.f32 %v4380_v30, %v4351_v60  ;;  %v4940_v60 = vld [vmem:[%s6330_s16 + $0xe8] sm:$0xff] }
 0xc34   :  { %4896 = vmatmul.msk.f32.gmra.mxu0 %vm768_vm2, %v4888_v17  ;;  %v4941_v17 = vld [vmem:[%s6330_s16 + $0xf0] sm:$0xff] }
 0xc35   :  { %4537 = vmatpush.msrb.mxu0 %v4491_v32 }
 0xc36   :  { %4905 = vmatmul.msk.f32.gmra.mxu1 %vm768_vm2, %v4078_v36  ;;  %v4942_v36 = vld [vmem:[%s6330_s16 + $0xf8] sm:$0xff] }
 0xc37   :  { %4538 = vmatpush.msrb.mxu0 %v4490_v45 }
 0xc39   :  { %4539 = vmatpush.msrb.mxu0 %v4489_v40 }
 0xc3a   :  { %v4383_v38 = vpop.f32.mrf.mxu3 }
 0xc3b   :  { %v4384_v52 = vadd.f32 %v4383_v38, %v4354_v55  ;;  %4540 = vmatpush.msrb.mxu0 %v4488_v44 }
 0xc3c   :  { %4897 = vmatmul.msk.f32.gmra.mxu0 %vm768_vm2, %v4889_v42 }
 0xc3e   :  { %4906 = vmatmul.msk.f32.gmra.mxu1 %vm768_vm2, %v4079_v50 }
 0xc42   :  { %v4386_v28 = vpop.f32.mrf.mxu3 }
 0xc43   :  { %v4387_v41 = vadd.f32 %v4386_v28, %v4357_v24 }
 0xc44   :  { %4898 = vmatmul.msk.f32.gmra.mxu0 %vm768_vm2, %v4890_v61 }
 0xc45   :  { %4434 = vmatpush.msra.mxu2 %v4387_v41  ;;  %v6266_v41 = vld [vmem:[%s6332_s18] ss:$0 sm:$0xff] }
 0xc46   :  { %4907 = vmatmul.msk.f32.gmra.mxu1 %vm768_vm2, %v4080_v62 }
 0xc47   :  { %4435 = vmatpush.msra.mxu2 %v4384_v52 }
 0xc49   :  { %4436 = vmatpush.msra.mxu2 %v4381_v33 }
 0xc4a   :  { %v4513_v21 = vpop.f32.mrf.mxu3 }
 0xc4b   :  { %4437 = vmatpush.msra.mxu2 %v4378_v49 }
 0xc4c   :  { %4899 = vmatmul.msk.f32.gmra.mxu0 %vm768_vm2, %v4891_v25  ;;  %4923 = vmatmul.msk.f32.vlgmr.msra.gmra.mxu2 %vm768_vm2, %v4915_v11 }
 0xc4e   :  { %4908 = vmatmul.msk.f32.gmra.mxu1 %vm768_vm2, %v4081_v35 }
 0xc52   :  { %v4516_v2 = vpop.f32.mrf.mxu3 }
 0xc54   :  { %4900 = vmatmul.msk.f32.gmra.mxu0 %vm768_vm2, %v4892_v12  ;;  %4924 = vmatmul.msk.f32.gmra.mxu2 %vm768_vm2, %v4916_v43 }
 0xc56   :  { %4909 = vmatmul.msk.f32.gmra.mxu1 %vm768_vm2, %v4082_v9 }
 0xc5a   :  { %v4519_v6 = vpop.f32.mrf.mxu3 }
 0xc5c   :  { %4901 = vmatmul.msk.f32.gmra.mxu0 %vm768_vm2, %v4893_v63  ;;  %4925 = vmatmul.msk.f32.gmra.mxu2 %vm768_vm2, %v4917_v34 }
 0xc5e   :  { %4910 = vmatmul.msk.f32.gmra.mxu1 %vm768_vm2, %v4083_v58 }
 0xc62   :  { %v4522_v16 = vpop.f32.mrf.mxu3 }
 0xc64   :  { %4902 = vmatmul.msk.f32.gmra.mxu0 %vm768_vm2, %v4894_v29  ;;  %4926 = vmatmul.msk.f32.gmra.mxu2 %vm768_vm2, %v4918_v56 }
 0xc6c   :  { %4927 = vmatmul.msk.f32.gmra.mxu2 %vm768_vm2, %v4919_v3  ;;  %4931 = vmatmul.msk.f32.vlgmr.msrb.gmra.mxu0 %vm168_vm0, %v6074_v27  ;;  %v4922_v27 = vld [vmem:[%s6330_s16 + $0xb8] sm:$0xff] }
 0xc74   :  { %4928 = vmatmul.msk.f32.gmra.mxu2 %vm768_vm2, %v4920_v31  ;;  %4932 = vmatmul.msk.f32.gmra.mxu0 %vm168_vm0, %v6081_v37 }
 0xc7c   :  { %4929 = vmatmul.msk.f32.gmra.mxu2 %vm768_vm2, %v4921_v5  ;;  %4933 = vmatmul.msk.f32.gmra.mxu0 %vm168_vm0, %v6090_v20 }
 0xc84   :  { %4930 = vmatmul.msk.f32.gmra.mxu2 %vm768_vm2, %v4922_v27  ;;  %4934 = vmatmul.msk.f32.gmra.mxu0 %vm168_vm0, %v6097_v51 }
 0xca3   :  { %v4282_v30 = vpop.f32.mrf.mxu1 }
 0xca9   :  { %v4217_v39 = vpop.f32.mrf.mxu0 }
 0xcaa   :  { %v4283_v28 = vadd.f32 %v4282_v30, %v4217_v39 }
 0xcab   :  { %v4285_v55 = vpop.f32.mrf.mxu1 }
 0xcb1   :  { %v4220_v37 = vpop.f32.mrf.mxu0 }
 0xcb2   :  { %v4286_v40 = vadd.f32 %v4285_v55, %v4220_v37 }
 0xcb3   :  { %v4288_v42 = vpop.f32.mrf.mxu1 }
 0xcb9   :  { %v6219_v47 = vpop.f32.mrf.mxu0 }
 0xcba   :  { %v4289_v12 = vadd.f32 %v4288_v42, %v6219_v47 }
 0xcbb   :  { %v4291_v38 = vpop.f32.mrf.mxu1 }
 0xcc1   :  { %v6221_v4 = vpop.f32.mrf.mxu0 }
 0xcc2   :  { %v4292_v29 = vadd.f32 %v4291_v38, %v6221_v4 }
 0xcc3   :  { %v4294_v50 = vpop.f32.mrf.mxu1 }
 0xcc9   :  { %v6223_v53 = vpop.f32.mrf.mxu0 }
 0xcca   :  { %v4295_v37 = vadd.f32 %v4294_v50, %v6223_v53 }
 0xccb   :  { %v4297_v59 = vpop.f32.mrf.mxu1 }
 0xccf   :  { %v4439_v57 = vpop.f32.mrf.mxu2 }
 0xcd0   :  { %v4463_v23 = vadd.f32 %v4439_v57, %v4283_v28 }
 0xcd1   :  { %v6225_v54 = vpop.f32.mrf.mxu0 }
 0xcd3   :  { %v4300_v26 = vpop.f32.mrf.mxu1 }
 0xcd7   :  { %v4442_v61 = vpop.f32.mrf.mxu2 }
 0xcd8   :  { %v4464_v33 = vadd.f32 %v4442_v61, %v4286_v40 }
 0xcd9   :  { %v6227_v20 = vpop.f32.mrf.mxu0 }
 0xcdb   :  { %v4303_v24 = vpop.f32.mrf.mxu1 }
 0xcdf   :  { %v4445_v52 = vpop.f32.mrf.mxu2 }
 0xce0   :  { %v4465_v43 = vadd.f32 %v4445_v52, %v4289_v12 }
 0xce1   :  { %v6229_v1 = vpop.f32.mrf.mxu0 }
 0xce7   :  { %v4448_v35 = vpop.f32.mrf.mxu2 }
 0xce8   :  { %v4466_v3 = vadd.f32 %v4448_v35, %v4292_v29 }
 0xce9   :  { %v4542_v13 = vpop.f32.mrf.mxu0 }
 0xcea   :  { %v4543_v0 = vadd.f32 %v4542_v13, %v4513_v21 }
 0xcef   :  { %v4451_v56 = vpop.f32.mrf.mxu2 }
 0xcf0   :  { %v4467_v47 = vadd.f32 %v4451_v56, %v4295_v37 }
 0xcf1   :  { %v4545_v14 = vpop.f32.mrf.mxu0 }
 0xcf2   :  { %v4546_v10 = vadd.f32 %v4545_v14, %v4516_v2 }
 0xcf7   :  { %v4454_v21 = vpop.f32.mrf.mxu2 }
 0xcf9   :  { %v4548_v51 = vpop.f32.mrf.mxu0 }
 0xcfa   :  { %v4549_v15 = vadd.f32 %v4548_v51, %v4519_v6  ;;  %v4298_v6 = vadd.f32 %v4297_v59, %v6225_v54 }
 0xcfc   :  { %v4468_v51 = vadd.f32 %v4454_v21, %v4298_v6 }
 0xcff   :  { %v4457_v53 = vpop.f32.mrf.mxu2 }
 0xd01   :  { %v4551_v46 = vpop.f32.mrf.mxu0 }
 0xd02   :  { %v4552_v8 = vadd.f32 %v4551_v46, %v4522_v16 }
 0xd04   :  { %4599 = vmatpush.msrb.mxu1 %v4552_v8 }
 0xd06   :  { %4600 = vmatpush.msrb.mxu1 %v4549_v15 }
 0xd08   :  { %4601 = vmatpush.msrb.mxu1 %v4546_v10  ;;  %v4301_v10 = vadd.f32 %v4300_v26, %v6227_v20 }
 0xd0a   :  { %4602 = vmatpush.msrb.mxu1 %v4543_v0  ;;  %v4469_v0 = vadd.f32 %v4457_v53, %v4301_v10 }
 0xd0b   :  { %4943 = vmatmul.msk.f32.vlgmr.msrb.gmra.mxu1 %vm768_vm2, %v4935_v7 }
 0xd13   :  { %4944 = vmatmul.msk.f32.gmra.mxu1 %vm768_vm2, %v4936_v18 }
 0xd1b   :  { %4945 = vmatmul.msk.f32.gmra.mxu1 %vm768_vm2, %v4937_v22 }
 0xd23   :  { %4946 = vmatmul.msk.f32.gmra.mxu1 %vm768_vm2, %v4938_v19  ;;  %v4460_v19 = vpop.f32.mrf.mxu2 }
 0xd2b   :  { %4947 = vmatmul.msk.f32.gmra.mxu1 %vm768_vm2, %v4939_v48  ;;  %v4304_v48 = vadd.f32 %v4303_v24, %v6229_v1 }
 0xd33   :  { %4948 = vmatmul.msk.f32.gmra.mxu1 %vm768_vm2, %v4940_v60  ;;  %v4470_v60 = vadd.f32 %v4460_v19, %v4304_v48 }
 0xd3b   :  { %4949 = vmatmul.msk.f32.gmra.mxu1 %vm768_vm2, %v4941_v17 }
 0xd43   :  { %4950 = vmatmul.msk.f32.gmra.mxu1 %vm768_vm2, %v4942_v36 }
 0xd88   :  { %v4604_v62 = vpop.f32.mrf.mxu1 }
 0xd89   :  { %v4628_v32 = vadd.f32 %v4604_v62, %v4463_v23 }
 0xd8b   :  { %v4640_v45 = vadd.f32 %v6266_v41, %v4628_v32 }
 0xd8d   :  { %4962 = vtanh.f32 %v4640_v45 }
 0xd90   :  { %v4607_v44 = vpop.f32.mrf.mxu1 }
 0xd91   :  { %v4629_v49 = vadd.f32 %v4607_v44, %v4464_v33 }
 0xd93   :  { %v4963_v25 = vpop.eup %4962  ;;  %v4641_v11 = vadd.f32 %v6266_v41, %v4629_v49 }
 0xd94   :  { %4656 = vst.msk [vmem:[%s6333_s19] sm:$0xff] %vm305_vm1, %v4963_v25 }
 0xd95   :  { %4964 = vtanh.f32 %v4641_v11 }
 0xd98   :  { %v4610_v9 = vpop.f32.mrf.mxu1 }
 0xd99   :  { %v4630_v63 = vadd.f32 %v4610_v9, %v4465_v43 }
 0xd9b   :  { %v4965_v34 = vpop.eup %4964  ;;  %v4642_v58 = vadd.f32 %v6266_v41, %v4630_v63 }
 0xd9c   :  { %4657 = vst.msk [vmem:[%s6333_s19 + $0x8] sm:$0xff] %vm305_vm1, %v4965_v34 }
 0xd9d   :  { %4966 = vtanh.f32 %v4642_v58 }
 0xda0   :  { %v4613_v31 = vpop.f32.mrf.mxu1 }
 0xda1   :  { %v4631_v5 = vadd.f32 %v4613_v31, %v4466_v3 }
 0xda3   :  { %v4967_v27 = vpop.eup %4966  ;;  %v4643_v39 = vadd.f32 %v6266_v41, %v4631_v5 }
 0xda4   :  { %4658 = vst.msk [vmem:[%s6333_s19 + $0x10] sm:$0xff] %vm305_vm1, %v4967_v27 }
 0xda5   :  { %4968 = vtanh.f32 %v4643_v39 }
 0xda8   :  { %v4616_v13 = vpop.f32.mrf.mxu1 }
 0xda9   :  { %v4632_v4 = vadd.f32 %v4616_v13, %v4467_v47 }
 0xdab   :  { %v4969_v2 = vpop.eup %4968  ;;  %v4644_v14 = vadd.f32 %v6266_v41, %v4632_v4 }
 0xdac   :  { %4659 = vst.msk [vmem:[%s6333_s19 + $0x18] sm:$0xff] %vm305_vm1, %v4969_v2 }
 0xdad   :  { %4970 = vtanh.f32 %v4644_v14 }
 0xdb0   :  { %v4619_v16 = vpop.f32.mrf.mxu1 }
 0xdb1   :  { %v4633_v46 = vadd.f32 %v4619_v16, %v4468_v51 }
 0xdb3   :  { %v4971_v8 = vpop.eup %4970  ;;  %v4645_v15 = vadd.f32 %v6266_v41, %v4633_v46 }
 0xdb4   :  { %4660 = vst.msk [vmem:[%s6333_s19 + $0x20] sm:$0xff] %vm305_vm1, %v4971_v8 }
 0xdb5   :  { %4972 = vtanh.f32 %v4645_v15 }
 0xdb8   :  { %v4622_v7 = vpop.f32.mrf.mxu1 }
 0xdb9   :  { %v4634_v18 = vadd.f32 %v4622_v7, %v4469_v0 }
 0xdbb   :  { %v4973_v54 = vpop.eup %4972  ;;  %v4646_v22 = vadd.f32 %v6266_v41, %v4634_v18 }
 0xdbc   :  { %4661 = vst.msk [vmem:[%s6333_s19 + $0x28] sm:$0xff] %vm305_vm1, %v4973_v54 }
 0xdbd   :  { %4974 = vtanh.f32 %v4646_v22 }
 0xdc0   :  { %v4625_v17 = vpop.f32.mrf.mxu1 }
 0xdc1   :  { %v4635_v30 = vadd.f32 %v4625_v17, %v4470_v60 }
 0xdc3   :  { %v4975_v20 = vpop.eup %4974  ;;  %v4647_v36 = vadd.f32 %v6266_v41, %v4635_v30 }
 0xdc4   :  { %4662 = vst.msk [vmem:[%s6333_s19 + $0x30] sm:$0xff] %vm305_vm1, %v4975_v20 }
 0xdc5   :  { %4976 = vtanh.f32 %v4647_v36 }
 0xdcb   :  { %v4977_v55 = vpop.eup %4976 }
 0xdcc   :  { %4663 = vst.msk [vmem:[%s6333_s19 + $0x38] sm:$0xff] %vm305_vm1, %v4977_v55 }
 0xdcd   :  { %4668 = vsyncpa [#allocation3], 1 }
 0xdce   :  { %4669 = vsyncpa [#allocation5], 1 }
 0xdcf   :  { %4670 = vsyncpa [#allocation8], 1 }
 0xdd0   :  { %4671 = vsyncpa [#allocation11], 1 }

</bundles_post_ra>
